<compile_context>
chip_gen: v7x
topology: tpu7x:2x2x1
jax: 0.10.0
libtpu: 0.0.40
codegen_flags: <defaults>
</compile_context>

<pallas_src>
import jax
import jax.numpy as jnp
import numpy as np
from jax.experimental import pallas as pl
from jax.experimental.pallas import tpu as pltpu

EPS = 1e-5      # torch.nn.GroupNorm default
LANE = 128      # TPU lane width


def _round_up(x, m):
    return ((x + m - 1) // m) * m


# ----------------------------------------------------------------------------
# Pallas kernel (one batch element per grid step, whole block fused)
# ----------------------------------------------------------------------------
def _down_kernel(ph_ref, mask_ref, wdw_ref, wpw_ref,
                 gmat0_ref, g0_ref, b0_ref,
                 w1_ref, gmat1_ref, g1_ref, b1_ref,
                 w2_ref, g2_ref, b2_ref,
                 o_ref):
    _, Hp1, Wp1, Cinp = ph_ref.shape          # (4, Ho+1, Wo+1, Cinp)
    Ho, Wo = Hp1 - 1, Wp1 - 1
    HW = Ho * Wo
    cdt = wpw_ref.dtype                        # matmul compute dtype (f32 default)

    def silu(z):
        # exact sigmoid via tanh: runs on the EUP, no VALU divide
        return z * (0.5 * jnp.tanh(0.5 * z) + 0.5)

    # ---- depthwise 3x3 stride-2 conv from the 4 even/odd phase planes ----
    # padded-input row 2i+kh lives in phase a = kh%2 at offset di = kh//2
    acc = None
    for kh in range(3):
        a, di = kh % 2, kh // 2
        for kw in range(3):
            b, dj = kw % 2, kw // 2
            tap = ph_ref[2 * a + b, di:di + Ho, dj:dj + Wo, :]   # (Ho, Wo, Cinp)
            contrib = tap * wdw_ref[kh * 3 + kw]                 # (1,1,Cinp) bcast
            acc = contrib if acc is None else acc + contrib
    y = acc.reshape(HW, Cinp)

    # ---- pointwise 1x1 conv -> (HW, Coutp) ----
    y = jnp.dot(y.astype(cdt), wpw_ref[...], preferred_element_type=jnp.float32)

    def gn_silu(z, gmat_ref, gamma_ref, beta_ref):
        # GroupNorm: per-channel sums (XLU) + one batched (2,C)x(C,C) group-avg dot.
        s1 = jnp.sum(z, axis=0, keepdims=True)            # (1, C)
        s2 = jnp.sum(z * z, axis=0, keepdims=True)        # (1, C)
        stats = jnp.dot(jnp.concatenate([s1, s2], axis=0), gmat_ref[...],
                        preferred_element_type=jnp.float32)
        mean = stats[0:1, :]
        var = jnp.maximum(stats[1:2, :] - mean * mean, 0.0)   # clamp: E[x^2]-m^2
        scale = jax.lax.rsqrt(var + EPS) * gamma_ref[...]
        return silu((z - mean) * scale + beta_ref[...])

    def conv3x3(z, w_ref):
        # 3x3 same-padding conv == 9 shifted copies of the flattened activation
        # (pltpu.roll on the sublane axis, XLU) masked at the image border, each
        # feeding one (HW, C) x (C, C) MXU matmul.
        zc = z.astype(cdt)
        out = None
        k = 0
        for dh in (-1, 0, 1):
            for dw in (-1, 0, 1):
                s = dh * Wo + dw                       # flat spatial shift
                zs = zc if s == 0 else pltpu.roll(zc, shift=(-s) % HW, axis=0)
                c = jnp.dot(zs, w_ref[k], preferred_element_type=jnp.float32)
                if s != 0:
                    c = c * mask_ref[k]                # (HW, 1) 0/1 border mask
                out = c if out is None else out + c
                k += 1
        return out

    # Down head: GN + SiLU, then DoubleConv: (3x3 conv -> GN -> SiLU) x 2
    y = gn_silu(y, gmat0_ref, g0_ref, b0_ref)
    y = conv3x3(y, w1_ref)
    y = gn_silu(y, gmat1_ref, g1_ref, b1_ref)
    y = conv3x3(y, w2_ref)
    y = gn_silu(y, gmat1_ref, g2_ref, b2_ref)
    o_ref[0] = y


# ----------------------------------------------------------------------------
# Wrapper / glue
# ----------------------------------------------------------------------------
def _down_group(Cout):   # GroupNorm groups used in Down's head
    return min(8, Cout // 4) if Cout >= 16 else 1


def _dc_group(Cout):     # GroupNorm groups used inside DoubleConv
    g = min(8, Cout // 4) if Cout >= 16 else min(8, Cout)
    return max(1, g)


def _make_group_mat(Cout, Cpad, G, HW):
    # (Cpad, Cpad) matrix that maps per-channel sums to per-channel group means.
    Cg = Cout // G
    ch = np.arange(Cpad)
    gid = np.where(ch < Cout, ch // Cg, -1)            # padded channels: no group
    same = (gid[:, None] == gid[None, :]) & (gid[:, None] >= 0)
    return jnp.asarray(same.astype(np.float32) / float(HW * Cg))


def down_pallas(x_nhwc, params, compute_dtype=jnp.float32):
    N, H, W, Cin = x_nhwc.shape
    assert H % 2 == 0 and W % 2 == 0
    Ho, Wo = H // 2, W // 2
    HW = Ho * Wo
    Cout = params['w_pw'].shape[-1]
    Cinp = _round_up(Cin, LANE)
    Coutp = _round_up(Cout, LANE)

    # -- even/odd phase split of the zero-padded input (~1x the input bytes) --
    x_pad = jnp.pad(x_nhwc, ((0, 0), (1, 1), (1, 1), (0, Cinp - Cin)))
    phases = x_pad.reshape(N, Ho + 1, 2, Wo + 1, 2, Cinp)
    phases = phases.transpose(0, 2, 4, 1, 3, 5)          # (N, 2, 2, Ho+1, Wo+1, C)
    phases = phases.reshape(N * 4, Ho + 1, Wo + 1, Cinp)

    # -- weights / affine params, zero-padded to lane-dense channel counts --
    cpad_o = (0, Coutp - Cout)
    wdw = jnp.pad(params['w_dw'].reshape(9, 1, 1, Cin),
                  ((0, 0), (0, 0), (0, 0), (0, Cinp - Cin)))
    wpw = jnp.pad(params['w_pw'].reshape(Cin, Cout),
                  ((0, Cinp - Cin), cpad_o)).astype(compute_dtype)
    w1 = jnp.pad(params['w1'].reshape(9, Cout, Cout),
                 ((0, 0), cpad_o, cpad_o)).astype(compute_dtype)
    w2 = jnp.pad(params['w2'].reshape(9, Cout, Cout),
                 ((0, 0), cpad_o, cpad_o)).astype(compute_dtype)

    def vec(v):
        return jnp.pad(v.reshape(1, Cout), ((0, 0), cpad_o))

    g0, b0 = vec(params['gamma0']), vec(params['beta0'])
    g1, b1 = vec(params['gamma1']), vec(params['beta1'])
    g2, b2 = vec(params['gamma2']), vec(params['beta2'])

    gmat0 = _make_group_mat(Cout, Coutp, _down_group(Cout), HW)
    gmat1 = _make_group_mat(Cout, Coutp, _dc_group(Cout), HW)

    # -- 0/1 border-validity masks for the 9 roll-based conv3x3 taps --
    ii, jj = np.meshgrid(np.arange(Ho), np.arange(Wo), indexing='ij')
    mlist = []
    for dh in (-1, 0, 1):
        for dw in (-1, 0, 1):
            valid = ((ii + dh >= 0) & (ii + dh < Ho) &
                     (jj + dw >= 0) & (jj + dw < Wo))
            mlist.append(valid.reshape(HW, 1))
    masks = jnp.asarray(np.stack(mlist, axis=0).astype(np.float32))   # (9, HW, 1)

    def const(shape):
        return pl.BlockSpec(shape, lambda n, _nd=len(shape): (0,) * _nd)

    grid_spec = pltpu.PrefetchScalarGridSpec(
        num_scalar_prefetch=0,
        grid=(N,),
        in_specs=[
            pl.BlockSpec((4, Ho + 1, Wo + 1, Cinp), lambda n: (n, 0, 0, 0)),
            const((9, HW, 1)),
            const((9, 1, 1, Cinp)),
            const((Cinp, Coutp)),
            const((Coutp, Coutp)), const((1, Coutp)), const((1, Coutp)),
            const((9, Coutp, Coutp)),
            const((Coutp, Coutp)), const((1, Coutp)), const((1, Coutp)),
            const((9, Coutp, Coutp)),
            const((1, Coutp)), const((1, Coutp)),
        ],
        out_specs=pl.BlockSpec((1, HW, Coutp), lambda n: (n, 0, 0)),
    )

    # advisory cost estimate: pointwise + 18 conv-tap matmuls + 3 SiLU passes
    itemsize = jnp.dtype(compute_dtype).itemsize
    flops = N * (2 * HW * Cinp * Coutp + 18 * 2 * HW * Coutp * Coutp
                 + 9 * 2 * HW * Cinp)
    transc = N * 3 * HW * Coutp
    bytes_accessed = (phases.size * 4 + masks.size * 4 + wdw.size * 4
                      + (wpw.size + w1.size + w2.size) * itemsize
                      + (2 * Coutp * Coutp + 6 * Coutp) * 4
                      + N * HW * Coutp * 4)

    out = pl.pallas_call(
        _down_kernel,
        out_shape=jax.ShapeDtypeStruct((N, HW, Coutp), jnp.float32),
        grid_spec=grid_spec,
        compiler_params=pltpu.CompilerParams(
            dimension_semantics=("parallel",),
            vmem_limit_bytes=48 * 1024 * 1024),
        cost_estimate=pl.CostEstimate(flops=int(flops),
                                      transcendentals=int(transc),
                                      bytes_accessed=int(bytes_accessed)),
    )(phases, masks, wdw, wpw, gmat0, g0, b0, w1, gmat1, g1, b1, w2, g2, b2)

    # TODO(synk): add spatial tiling (halo + two-pass GroupNorm) for resolutions
    # whose whole-image activations would not fit v7x's 64 MiB VMEM.
    return out[:, :, :Cout].reshape(N, Ho, Wo, Cout)


# ----------------------------------------------------------------------------
# Pure-JAX reference (mirrors the PyTorch forward) for verification
# ----------------------------------------------------------------------------
def _group_norm_ref(x, G, gamma, beta):
    N, H, W, C = x.shape
    xg = x.reshape(N, H, W, G, C // G)
    mean = jnp.mean(xg, axis=(1, 2, 4), keepdims=True)
    var = jnp.mean((xg - mean) ** 2, axis=(1, 2, 4), keepdims=True)
    xn = ((xg - mean) / jnp.sqrt(var + EPS)).reshape(N, H, W, C)
    return xn * gamma + beta


def down_reference(x, p):
    Cin = x.shape[-1]
    Cout = p['w_pw'].shape[-1]

    def conv(z, w, s, g, pad):
        return jax.lax.conv_general_dilated(
            z, w, (s, s), ((pad, pad), (pad, pad)),
            dimension_numbers=('NHWC', 'HWIO', 'NHWC'),
            feature_group_count=g)

    def silu(z):
        return z * jax.nn.sigmoid(z)

    y = conv(x, p['w_dw'], 2, Cin, 1)                 # depthwise s2
    y = conv(y, p['w_pw'], 1, 1, 0)                   # pointwise
    y = silu(_group_norm_ref(y, _down_group(Cout), p['gamma0'], p['beta0']))
    y = conv(y, p['w1'], 1, 1, 1)
    y = silu(_group_norm_ref(y, _dc_group(Cout), p['gamma1'], p['beta1']))
    y = conv(y, p['w2'], 1, 1, 1)
    y = silu(_group_norm_ref(y, _dc_group(Cout), p['gamma2'], p['beta2']))
    return y


# ----------------------------------------------------------------------------
if __name__ == "__main__":
    N, Cin, Cout, H, W = 2, 4, 8, 16, 16

    key = jax.random.PRNGKey(0)
    ks = jax.random.split(key, 12)
    params = {
        'w_dw':  jax.random.normal(ks[0], (3, 3, 1, Cin), jnp.float32) * 0.30,
        'w_pw':  jax.random.normal(ks[1], (1, 1, Cin, Cout), jnp.float32) * 0.30,
        'w1':    jax.random.normal(ks[2], (3, 3, Cout, Cout), jnp.float32) * 0.15,
        'w2':    jax.random.normal(ks[3], (3, 3, Cout, Cout), jnp.float32) * 0.15,
        'gamma0': 1.0 + 0.1 * jax.random.normal(ks[4], (Cout,), jnp.float32),
        'beta0':        0.1 * jax.random.normal(ks[5], (Cout,), jnp.float32),
        'gamma1': 1.0 + 0.1 * jax.random.normal(ks[6], (Cout,), jnp.float32),
        'beta1':        0.1 * jax.random.normal(ks[7], (Cout,), jnp.float32),
        'gamma2': 1.0 + 0.1 * jax.random.normal(ks[8], (Cout,), jnp.float32),
        'beta2':        0.1 * jax.random.normal(ks[9], (Cout,), jnp.float32),
    }

    x_nchw = jax.random.normal(ks[10], (N, Cin, H, W), jnp.float32)  # PyTorch NCHW
    x_nhwc = jnp.transpose(x_nchw, (0, 2, 3, 1))

    y_nhwc = down_pallas(x_nhwc, params)
    y_nchw = jnp.transpose(y_nhwc, (0, 3, 1, 2))      # back to NCHW like PyTorch
    jax.block_until_ready(y_nchw)

    ref_nhwc = down_reference(x_nhwc, params)
    if not np.allclose(np.asarray(y_nhwc), np.asarray(ref_nhwc),
                       atol=1e-4, rtol=1e-3):
        raise SystemExit("Pallas output mismatch vs JAX reference")

    print("KERNEL_OK")
</pallas_src>

<mosaic_0001>
module attributes {stable_mosaic.version = 11 : i64} {
  func.func @_down_kernel(%arg0: i32, %arg1: memref<4x9x9x128xf32, #tpu.memory_space<vmem>>, %arg2: memref<9x64x1xf32, #tpu.memory_space<vmem>>, %arg3: memref<9x1x1x128xf32, #tpu.memory_space<vmem>>, %arg4: memref<128x128xf32, #tpu.memory_space<vmem>>, %arg5: memref<128x128xf32, #tpu.memory_space<vmem>>, %arg6: memref<1x128xf32, #tpu.memory_space<vmem>>, %arg7: memref<1x128xf32, #tpu.memory_space<vmem>>, %arg8: memref<9x128x128xf32, #tpu.memory_space<vmem>>, %arg9: memref<128x128xf32, #tpu.memory_space<vmem>>, %arg10: memref<1x128xf32, #tpu.memory_space<vmem>>, %arg11: memref<1x128xf32, #tpu.memory_space<vmem>>, %arg12: memref<9x128x128xf32, #tpu.memory_space<vmem>>, %arg13: memref<1x128xf32, #tpu.memory_space<vmem>>, %arg14: memref<1x128xf32, #tpu.memory_space<vmem>>, %arg15: memref<1x64x128xf32, #tpu.memory_space<vmem>>) attributes {dimension_semantics = [#tpu.dimension_semantics<parallel>], iteration_bounds = array<i64: 2>, scalar_prefetch = 0 : i64, scratch_operands = 0 : i64, tpu.core_type = #tpu.core_type<tc>, window_params = [{transform_indices = @transform_0, window_bounds = array<i64: 4, 9, 9, 128>}, {pipeline_mode = #tpu.pipeline_mode<synchronous>, transform_indices = @transform_1, window_bounds = array<i64: 9, 64, 1>}, {pipeline_mode = #tpu.pipeline_mode<synchronous>, transform_indices = @transform_2, window_bounds = array<i64: 9, 1, 1, 128>}, {pipeline_mode = #tpu.pipeline_mode<synchronous>, transform_indices = @transform_3, window_bounds = array<i64: 128, 128>}, {pipeline_mode = #tpu.pipeline_mode<synchronous>, transform_indices = @transform_4, window_bounds = array<i64: 128, 128>}, {pipeline_mode = #tpu.pipeline_mode<synchronous>, transform_indices = @transform_5, window_bounds = array<i64: 1, 128>}, {pipeline_mode = #tpu.pipeline_mode<synchronous>, transform_indices = @transform_6, window_bounds = array<i64: 1, 128>}, {pipeline_mode = #tpu.pipeline_mode<synchronous>, transform_indices = @transform_7, window_bounds = array<i64: 9, 128, 128>}, {pipeline_mode = #tpu.pipeline_mode<synchronous>, transform_indices = @transform_8, window_bounds = array<i64: 128, 128>}, {pipeline_mode = #tpu.pipeline_mode<synchronous>, transform_indices = @transform_9, window_bounds = array<i64: 1, 128>}, {pipeline_mode = #tpu.pipeline_mode<synchronous>, transform_indices = @transform_10, window_bounds = array<i64: 1, 128>}, {pipeline_mode = #tpu.pipeline_mode<synchronous>, transform_indices = @transform_11, window_bounds = array<i64: 9, 128, 128>}, {pipeline_mode = #tpu.pipeline_mode<synchronous>, transform_indices = @transform_12, window_bounds = array<i64: 1, 128>}, {pipeline_mode = #tpu.pipeline_mode<synchronous>, transform_indices = @transform_13, window_bounds = array<i64: 1, 128>}, {transform_indices = @transform_14, window_bounds = array<i64: 1, 64, 128>}]} {
    %c0 = arith.constant 0 : index
    %c0_0 = arith.constant 0 : index
    %c0_1 = arith.constant 0 : index
    %c0_2 = arith.constant 0 : index
    %0 = vector.load %arg1[%c0, %c0_0, %c0_1, %c0_2] : memref<4x9x9x128xf32, #tpu.memory_space<vmem>>, vector<1x8x8x128xf32>
    %1 = vector.shape_cast %0 : vector<1x8x8x128xf32> to vector<8x8x128xf32>
    %c0_3 = arith.constant 0 : index
    %c0_4 = arith.constant 0 : index
    %c0_5 = arith.constant 0 : index
    %c0_6 = arith.constant 0 : index
    %2 = vector.load %arg3[%c0_3, %c0_4, %c0_5, %c0_6] : memref<9x1x1x128xf32, #tpu.memory_space<vmem>>, vector<1x1x1x128xf32>
    %3 = vector.shape_cast %2 : vector<1x1x1x128xf32> to vector<1x1x128xf32>
    %4 = vector.broadcast %3 : vector<1x1x128xf32> to vector<8x8x128xf32>
    %5 = arith.mulf %1, %4 : vector<8x8x128xf32>
    %c1 = arith.constant 1 : index
    %c0_7 = arith.constant 0 : index
    %c0_8 = arith.constant 0 : index
    %c0_9 = arith.constant 0 : index
    %6 = vector.load %arg1[%c1, %c0_7, %c0_8, %c0_9] : memref<4x9x9x128xf32, #tpu.memory_space<vmem>>, vector<1x8x8x128xf32>
    %7 = vector.shape_cast %6 : vector<1x8x8x128xf32> to vector<8x8x128xf32>
    %c1_10 = arith.constant 1 : index
    %c0_11 = arith.constant 0 : index
    %c0_12 = arith.constant 0 : index
    %c0_13 = arith.constant 0 : index
    %8 = vector.load %arg3[%c1_10, %c0_11, %c0_12, %c0_13] : memref<9x1x1x128xf32, #tpu.memory_space<vmem>>, vector<1x1x1x128xf32>
    %9 = vector.shape_cast %8 : vector<1x1x1x128xf32> to vector<1x1x128xf32>
    %10 = vector.broadcast %9 : vector<1x1x128xf32> to vector<8x8x128xf32>
    %11 = arith.mulf %7, %10 : vector<8x8x128xf32>
    %12 = arith.addf %5, %11 : vector<8x8x128xf32>
    %c0_14 = arith.constant 0 : index
    %c0_15 = arith.constant 0 : index
    %c1_16 = arith.constant 1 : index
    %c0_17 = arith.constant 0 : index
    %13 = vector.load %arg1[%c0_14, %c0_15, %c1_16, %c0_17] : memref<4x9x9x128xf32, #tpu.memory_space<vmem>>, vector<1x8x8x128xf32>
    %14 = vector.shape_cast %13 : vector<1x8x8x128xf32> to vector<8x8x128xf32>
    %c2 = arith.constant 2 : index
    %c0_18 = arith.constant 0 : index
    %c0_19 = arith.constant 0 : index
    %c0_20 = arith.constant 0 : index
    %15 = vector.load %arg3[%c2, %c0_18, %c0_19, %c0_20] : memref<9x1x1x128xf32, #tpu.memory_space<vmem>>, vector<1x1x1x128xf32>
    %16 = vector.shape_cast %15 : vector<1x1x1x128xf32> to vector<1x1x128xf32>
    %17 = vector.broadcast %16 : vector<1x1x128xf32> to vector<8x8x128xf32>
    %18 = arith.mulf %14, %17 : vector<8x8x128xf32>
    %19 = arith.addf %12, %18 : vector<8x8x128xf32>
    %c2_21 = arith.constant 2 : index
    %c0_22 = arith.constant 0 : index
    %c0_23 = arith.constant 0 : index
    %c0_24 = arith.constant 0 : index
    %20 = vector.load %arg1[%c2_21, %c0_22, %c0_23, %c0_24] : memref<4x9x9x128xf32, #tpu.memory_space<vmem>>, vector<1x8x8x128xf32>
    %21 = vector.shape_cast %20 : vector<1x8x8x128xf32> to vector<8x8x128xf32>
    %c3 = arith.constant 3 : index
    %c0_25 = arith.constant 0 : index
    %c0_26 = arith.constant 0 : index
    %c0_27 = arith.constant 0 : index
    %22 = vector.load %arg3[%c3, %c0_25, %c0_26, %c0_27] : memref<9x1x1x128xf32, #tpu.memory_space<vmem>>, vector<1x1x1x128xf32>
    %23 = vector.shape_cast %22 : vector<1x1x1x128xf32> to vector<1x1x128xf32>
    %24 = vector.broadcast %23 : vector<1x1x128xf32> to vector<8x8x128xf32>
    %25 = arith.mulf %21, %24 : vector<8x8x128xf32>
    %26 = arith.addf %19, %25 : vector<8x8x128xf32>
    %c3_28 = arith.constant 3 : index
    %c0_29 = arith.constant 0 : index
    %c0_30 = arith.constant 0 : index
    %c0_31 = arith.constant 0 : index
    %27 = vector.load %arg1[%c3_28, %c0_29, %c0_30, %c0_31] : memref<4x9x9x128xf32, #tpu.memory_space<vmem>>, vector<1x8x8x128xf32>
    %28 = vector.shape_cast %27 : vector<1x8x8x128xf32> to vector<8x8x128xf32>
    %c4 = arith.constant 4 : index
    %c0_32 = arith.constant 0 : index
    %c0_33 = arith.constant 0 : index
    %c0_34 = arith.constant 0 : index
    %29 = vector.load %arg3[%c4, %c0_32, %c0_33, %c0_34] : memref<9x1x1x128xf32, #tpu.memory_space<vmem>>, vector<1x1x1x128xf32>
    %30 = vector.shape_cast %29 : vector<1x1x1x128xf32> to vector<1x1x128xf32>
    %31 = vector.broadcast %30 : vector<1x1x128xf32> to vector<8x8x128xf32>
    %32 = arith.mulf %28, %31 : vector<8x8x128xf32>
    %33 = arith.addf %26, %32 : vector<8x8x128xf32>
    %c2_35 = arith.constant 2 : index
    %c0_36 = arith.constant 0 : index
    %c1_37 = arith.constant 1 : index
    %c0_38 = arith.constant 0 : index
    %34 = vector.load %arg1[%c2_35, %c0_36, %c1_37, %c0_38] : memref<4x9x9x128xf32, #tpu.memory_space<vmem>>, vector<1x8x8x128xf32>
    %35 = vector.shape_cast %34 : vector<1x8x8x128xf32> to vector<8x8x128xf32>
    %c5 = arith.constant 5 : index
    %c0_39 = arith.constant 0 : index
    %c0_40 = arith.constant 0 : index
    %c0_41 = arith.constant 0 : index
    %36 = vector.load %arg3[%c5, %c0_39, %c0_40, %c0_41] : memref<9x1x1x128xf32, #tpu.memory_space<vmem>>, vector<1x1x1x128xf32>
    %37 = vector.shape_cast %36 : vector<1x1x1x128xf32> to vector<1x1x128xf32>
    %38 = vector.broadcast %37 : vector<1x1x128xf32> to vector<8x8x128xf32>
    %39 = arith.mulf %35, %38 : vector<8x8x128xf32>
    %40 = arith.addf %33, %39 : vector<8x8x128xf32>
    %c0_42 = arith.constant 0 : index
    %c1_43 = arith.constant 1 : index
    %c0_44 = arith.constant 0 : index
    %c0_45 = arith.constant 0 : index
    %41 = vector.load %arg1[%c0_42, %c1_43, %c0_44, %c0_45] : memref<4x9x9x128xf32, #tpu.memory_space<vmem>>, vector<1x8x8x128xf32>
    %42 = vector.shape_cast %41 : vector<1x8x8x128xf32> to vector<8x8x128xf32>
    %c6 = arith.constant 6 : index
    %c0_46 = arith.constant 0 : index
    %c0_47 = arith.constant 0 : index
    %c0_48 = arith.constant 0 : index
    %43 = vector.load %arg3[%c6, %c0_46, %c0_47, %c0_48] : memref<9x1x1x128xf32, #tpu.memory_space<vmem>>, vector<1x1x1x128xf32>
    %44 = vector.shape_cast %43 : vector<1x1x1x128xf32> to vector<1x1x128xf32>
    %45 = vector.broadcast %44 : vector<1x1x128xf32> to vector<8x8x128xf32>
    %46 = arith.mulf %42, %45 : vector<8x8x128xf32>
    %47 = arith.addf %40, %46 : vector<8x8x128xf32>
    %c1_49 = arith.constant 1 : index
    %c1_50 = arith.constant 1 : index
    %c0_51 = arith.constant 0 : index
    %c0_52 = arith.constant 0 : index
    %48 = vector.load %arg1[%c1_49, %c1_50, %c0_51, %c0_52] : memref<4x9x9x128xf32, #tpu.memory_space<vmem>>, vector<1x8x8x128xf32>
    %49 = vector.shape_cast %48 : vector<1x8x8x128xf32> to vector<8x8x128xf32>
    %c7 = arith.constant 7 : index
    %c0_53 = arith.constant 0 : index
    %c0_54 = arith.constant 0 : index
    %c0_55 = arith.constant 0 : index
    %50 = vector.load %arg3[%c7, %c0_53, %c0_54, %c0_55] : memref<9x1x1x128xf32, #tpu.memory_space<vmem>>, vector<1x1x1x128xf32>
    %51 = vector.shape_cast %50 : vector<1x1x1x128xf32> to vector<1x1x128xf32>
    %52 = vector.broadcast %51 : vector<1x1x128xf32> to vector<8x8x128xf32>
    %53 = arith.mulf %49, %52 : vector<8x8x128xf32>
    %54 = arith.addf %47, %53 : vector<8x8x128xf32>
    %c0_56 = arith.constant 0 : index
    %c1_57 = arith.constant 1 : index
    %c1_58 = arith.constant 1 : index
    %c0_59 = arith.constant 0 : index
    %55 = vector.load %arg1[%c0_56, %c1_57, %c1_58, %c0_59] : memref<4x9x9x128xf32, #tpu.memory_space<vmem>>, vector<1x8x8x128xf32>
    %56 = vector.shape_cast %55 : vector<1x8x8x128xf32> to vector<8x8x128xf32>
    %c8 = arith.constant 8 : index
    %c0_60 = arith.constant 0 : index
    %c0_61 = arith.constant 0 : index
    %c0_62 = arith.constant 0 : index
    %57 = vector.load %arg3[%c8, %c0_60, %c0_61, %c0_62] : memref<9x1x1x128xf32, #tpu.memory_space<vmem>>, vector<1x1x1x128xf32>
    %58 = vector.shape_cast %57 : vector<1x1x1x128xf32> to vector<1x1x128xf32>
    %59 = vector.broadcast %58 : vector<1x1x128xf32> to vector<8x8x128xf32>
    %60 = arith.mulf %56, %59 : vector<8x8x128xf32>
    %61 = arith.addf %54, %60 : vector<8x8x128xf32>
    %62 = vector.shape_cast %61 : vector<8x8x128xf32> to vector<64x128xf32>
    %c0_63 = arith.constant 0 : index
    %c0_64 = arith.constant 0 : index
    %63 = vector.load %arg4[%c0_63, %c0_64] : memref<128x128xf32, #tpu.memory_space<vmem>>, vector<128x128xf32>
    %cst = arith.constant dense<0.000000e+00> : vector<64x128xf32>
    %64 = tpu.matmul %62, %63, %cst {dimension_numbers = #tpu.dot_dimension_numbers<[1], [0], [0], [1], [0, 0, 1, 1], [], []>} : vector<64x128xf32>, vector<128x128xf32>, vector<64x128xf32> -> vector<64x128xf32>
    %cst_65 = arith.constant dense<0.000000e+00> : vector<128xf32>
    %65 = vector.multi_reduction <add>, %64, %cst_65 [0] : vector<64x128xf32> to vector<128xf32>
    %66 = vector.shape_cast %65 : vector<128xf32> to vector<1x128xf32>
    %67 = arith.mulf %64, %64 : vector<64x128xf32>
    %cst_66 = arith.constant dense<0.000000e+00> : vector<128xf32>
    %68 = vector.multi_reduction <add>, %67, %cst_66 [0] : vector<64x128xf32> to vector<128xf32>
    %69 = vector.shape_cast %68 : vector<128xf32> to vector<1x128xf32>
    %70 = tpu.concatenate %66, %69 in 0 : vector<1x128xf32>, vector<1x128xf32> -> vector<2x128xf32>
    %c0_67 = arith.constant 0 : index
    %c0_68 = arith.constant 0 : index
    %71 = vector.load %arg5[%c0_67, %c0_68] : memref<128x128xf32, #tpu.memory_space<vmem>>, vector<128x128xf32>
    %cst_69 = arith.constant dense<0.000000e+00> : vector<2x128xf32>
    %72 = tpu.matmul %70, %71, %cst_69 {dimension_numbers = #tpu.dot_dimension_numbers<[1], [0], [0], [1], [0, 0, 1, 1], [], []>} : vector<2x128xf32>, vector<128x128xf32>, vector<2x128xf32> -> vector<2x128xf32>
    %73 = vector.extract_strided_slice %72 {offsets = [0, 0], sizes = [1, 128], strides = [1, 1]} : vector<2x128xf32> to vector<1x128xf32>
    %74 = vector.extract_strided_slice %72 {offsets = [1, 0], sizes = [1, 128], strides = [1, 1]} : vector<2x128xf32> to vector<1x128xf32>
    %75 = arith.mulf %73, %73 : vector<1x128xf32>
    %76 = arith.subf %74, %75 : vector<1x128xf32>
    %cst_70 = arith.constant 0.000000e+00 : f32
    %77 = vector.broadcast %cst_70 : f32 to vector<1x128xf32>
    %78 = arith.maximumf %76, %77 : vector<1x128xf32>
    %cst_71 = arith.constant 9.99999974E-6 : f32
    %79 = vector.broadcast %cst_71 : f32 to vector<1x128xf32>
    %80 = arith.addf %78, %79 : vector<1x128xf32>
    %81 = math.rsqrt %80 : vector<1x128xf32>
    %c0_72 = arith.constant 0 : index
    %c0_73 = arith.constant 0 : index
    %82 = vector.load %arg6[%c0_72, %c0_73] : memref<1x128xf32, #tpu.memory_space<vmem>>, vector<1x128xf32>
    %83 = arith.mulf %81, %82 : vector<1x128xf32>
    %84 = vector.broadcast %73 : vector<1x128xf32> to vector<64x128xf32>
    %85 = arith.subf %64, %84 : vector<64x128xf32>
    %86 = vector.broadcast %83 : vector<1x128xf32> to vector<64x128xf32>
    %87 = arith.mulf %85, %86 : vector<64x128xf32>
    %c0_74 = arith.constant 0 : index
    %c0_75 = arith.constant 0 : index
    %88 = vector.load %arg7[%c0_74, %c0_75] : memref<1x128xf32, #tpu.memory_space<vmem>>, vector<1x128xf32>
    %89 = vector.broadcast %88 : vector<1x128xf32> to vector<64x128xf32>
    %90 = arith.addf %87, %89 : vector<64x128xf32>
    %cst_76 = arith.constant 5.000000e-01 : f32
    %91 = vector.broadcast %cst_76 : f32 to vector<64x128xf32>
    %92 = arith.mulf %91, %90 : vector<64x128xf32>
    %93 = math.tanh %92 : vector<64x128xf32>
    %cst_77 = arith.constant 5.000000e-01 : f32
    %94 = vector.broadcast %cst_77 : f32 to vector<64x128xf32>
    %95 = arith.mulf %94, %93 : vector<64x128xf32>
    %cst_78 = arith.constant 5.000000e-01 : f32
    %96 = vector.broadcast %cst_78 : f32 to vector<64x128xf32>
    %97 = arith.addf %95, %96 : vector<64x128xf32>
    %98 = arith.mulf %90, %97 : vector<64x128xf32>
    %c9_i32 = arith.constant 9 : i32
    %99 = tpu.dynamic_rotate %98 by %c9_i32 dim 0 : vector<64x128xf32>, i32 -> vector<64x128xf32>
    %c0_79 = arith.constant 0 : index
    %c0_80 = arith.constant 0 : index
    %c0_81 = arith.constant 0 : index
    %100 = vector.load %arg8[%c0_79, %c0_80, %c0_81] : memref<9x128x128xf32, #tpu.memory_space<vmem>>, vector<1x128x128xf32>
    %101 = vector.shape_cast %100 : vector<1x128x128xf32> to vector<128x128xf32>
    %cst_82 = arith.constant dense<0.000000e+00> : vector<64x128xf32>
    %102 = tpu.matmul %99, %101, %cst_82 {dimension_numbers = #tpu.dot_dimension_numbers<[1], [0], [0], [1], [0, 0, 1, 1], [], []>} : vector<64x128xf32>, vector<128x128xf32>, vector<64x128xf32> -> vector<64x128xf32>
    %c0_83 = arith.constant 0 : index
    %c0_84 = arith.constant 0 : index
    %c0_85 = arith.constant 0 : index
    %103 = vector.load %arg2[%c0_83, %c0_84, %c0_85] : memref<9x64x1xf32, #tpu.memory_space<vmem>>, vector<1x64x1xf32>
    %104 = vector.shape_cast %103 : vector<1x64x1xf32> to vector<64x1xf32>
    %105 = vector.broadcast %104 : vector<64x1xf32> to vector<64x128xf32>
    %106 = arith.mulf %102, %105 : vector<64x128xf32>
    %c8_i32 = arith.constant 8 : i32
    %107 = tpu.dynamic_rotate %98 by %c8_i32 dim 0 : vector<64x128xf32>, i32 -> vector<64x128xf32>
    %c1_86 = arith.constant 1 : index
    %c0_87 = arith.constant 0 : index
    %c0_88 = arith.constant 0 : index
    %108 = vector.load %arg8[%c1_86, %c0_87, %c0_88] : memref<9x128x128xf32, #tpu.memory_space<vmem>>, vector<1x128x128xf32>
    %109 = vector.shape_cast %108 : vector<1x128x128xf32> to vector<128x128xf32>
    %cst_89 = arith.constant dense<0.000000e+00> : vector<64x128xf32>
    %110 = tpu.matmul %107, %109, %cst_89 {dimension_numbers = #tpu.dot_dimension_numbers<[1], [0], [0], [1], [0, 0, 1, 1], [], []>} : vector<64x128xf32>, vector<128x128xf32>, vector<64x128xf32> -> vector<64x128xf32>
    %c1_90 = arith.constant 1 : index
    %c0_91 = arith.constant 0 : index
    %c0_92 = arith.constant 0 : index
    %111 = vector.load %arg2[%c1_90, %c0_91, %c0_92] : memref<9x64x1xf32, #tpu.memory_space<vmem>>, vector<1x64x1xf32>
    %112 = vector.shape_cast %111 : vector<1x64x1xf32> to vector<64x1xf32>
    %113 = vector.broadcast %112 : vector<64x1xf32> to vector<64x128xf32>
    %114 = arith.mulf %110, %113 : vector<64x128xf32>
    %115 = arith.addf %106, %114 : vector<64x128xf32>
    %c7_i32 = arith.constant 7 : i32
    %116 = tpu.dynamic_rotate %98 by %c7_i32 dim 0 : vector<64x128xf32>, i32 -> vector<64x128xf32>
    %c2_93 = arith.constant 2 : index
    %c0_94 = arith.constant 0 : index
    %c0_95 = arith.constant 0 : index
    %117 = vector.load %arg8[%c2_93, %c0_94, %c0_95] : memref<9x128x128xf32, #tpu.memory_space<vmem>>, vector<1x128x128xf32>
    %118 = vector.shape_cast %117 : vector<1x128x128xf32> to vector<128x128xf32>
    %cst_96 = arith.constant dense<0.000000e+00> : vector<64x128xf32>
    %119 = tpu.matmul %116, %118, %cst_96 {dimension_numbers = #tpu.dot_dimension_numbers<[1], [0], [0], [1], [0, 0, 1, 1], [], []>} : vector<64x128xf32>, vector<128x128xf32>, vector<64x128xf32> -> vector<64x128xf32>
    %c2_97 = arith.constant 2 : index
    %c0_98 = arith.constant 0 : index
    %c0_99 = arith.constant 0 : index
    %120 = vector.load %arg2[%c2_97, %c0_98, %c0_99] : memref<9x64x1xf32, #tpu.memory_space<vmem>>, vector<1x64x1xf32>
    %121 = vector.shape_cast %120 : vector<1x64x1xf32> to vector<64x1xf32>
    %122 = vector.broadcast %121 : vector<64x1xf32> to vector<64x128xf32>
    %123 = arith.mulf %119, %122 : vector<64x128xf32>
    %124 = arith.addf %115, %123 : vector<64x128xf32>
    %c1_i32 = arith.constant 1 : i32
    %125 = tpu.dynamic_rotate %98 by %c1_i32 dim 0 : vector<64x128xf32>, i32 -> vector<64x128xf32>
    %c3_100 = arith.constant 3 : index
    %c0_101 = arith.constant 0 : index
    %c0_102 = arith.constant 0 : index
    %126 = vector.load %arg8[%c3_100, %c0_101, %c0_102] : memref<9x128x128xf32, #tpu.memory_space<vmem>>, vector<1x128x128xf32>
    %127 = vector.shape_cast %126 : vector<1x128x128xf32> to vector<128x128xf32>
    %cst_103 = arith.constant dense<0.000000e+00> : vector<64x128xf32>
    %128 = tpu.matmul %125, %127, %cst_103 {dimension_numbers = #tpu.dot_dimension_numbers<[1], [0], [0], [1], [0, 0, 1, 1], [], []>} : vector<64x128xf32>, vector<128x128xf32>, vector<64x128xf32> -> vector<64x128xf32>
    %c3_104 = arith.constant 3 : index
    %c0_105 = arith.constant 0 : index
    %c0_106 = arith.constant 0 : index
    %129 = vector.load %arg2[%c3_104, %c0_105, %c0_106] : memref<9x64x1xf32, #tpu.memory_space<vmem>>, vector<1x64x1xf32>
    %130 = vector.shape_cast %129 : vector<1x64x1xf32> to vector<64x1xf32>
    %131 = vector.broadcast %130 : vector<64x1xf32> to vector<64x128xf32>
    %132 = arith.mulf %128, %131 : vector<64x128xf32>
    %133 = arith.addf %124, %132 : vector<64x128xf32>
    %c4_107 = arith.constant 4 : index
    %c0_108 = arith.constant 0 : index
    %c0_109 = arith.constant 0 : index
    %134 = vector.load %arg8[%c4_107, %c0_108, %c0_109] : memref<9x128x128xf32, #tpu.memory_space<vmem>>, vector<1x128x128xf32>
    %135 = vector.shape_cast %134 : vector<1x128x128xf32> to vector<128x128xf32>
    %cst_110 = arith.constant dense<0.000000e+00> : vector<64x128xf32>
    %136 = tpu.matmul %98, %135, %cst_110 {dimension_numbers = #tpu.dot_dimension_numbers<[1], [0], [0], [1], [0, 0, 1, 1], [], []>} : vector<64x128xf32>, vector<128x128xf32>, vector<64x128xf32> -> vector<64x128xf32>
    %137 = arith.addf %133, %136 : vector<64x128xf32>
    %c63_i32 = arith.constant 63 : i32
    %138 = tpu.dynamic_rotate %98 by %c63_i32 dim 0 : vector<64x128xf32>, i32 -> vector<64x128xf32>
    %c5_111 = arith.constant 5 : index
    %c0_112 = arith.constant 0 : index
    %c0_113 = arith.constant 0 : index
    %139 = vector.load %arg8[%c5_111, %c0_112, %c0_113] : memref<9x128x128xf32, #tpu.memory_space<vmem>>, vector<1x128x128xf32>
    %140 = vector.shape_cast %139 : vector<1x128x128xf32> to vector<128x128xf32>
    %cst_114 = arith.constant dense<0.000000e+00> : vector<64x128xf32>
    %141 = tpu.matmul %138, %140, %cst_114 {dimension_numbers = #tpu.dot_dimension_numbers<[1], [0], [0], [1], [0, 0, 1, 1], [], []>} : vector<64x128xf32>, vector<128x128xf32>, vector<64x128xf32> -> vector<64x128xf32>
    %c5_115 = arith.constant 5 : index
    %c0_116 = arith.constant 0 : index
    %c0_117 = arith.constant 0 : index
    %142 = vector.load %arg2[%c5_115, %c0_116, %c0_117] : memref<9x64x1xf32, #tpu.memory_space<vmem>>, vector<1x64x1xf32>
    %143 = vector.shape_cast %142 : vector<1x64x1xf32> to vector<64x1xf32>
    %144 = vector.broadcast %143 : vector<64x1xf32> to vector<64x128xf32>
    %145 = arith.mulf %141, %144 : vector<64x128xf32>
    %146 = arith.addf %137, %145 : vector<64x128xf32>
    %c57_i32 = arith.constant 57 : i32
    %147 = tpu.dynamic_rotate %98 by %c57_i32 dim 0 : vector<64x128xf32>, i32 -> vector<64x128xf32>
    %c6_118 = arith.constant 6 : index
    %c0_119 = arith.constant 0 : index
    %c0_120 = arith.constant 0 : index
    %148 = vector.load %arg8[%c6_118, %c0_119, %c0_120] : memref<9x128x128xf32, #tpu.memory_space<vmem>>, vector<1x128x128xf32>
    %149 = vector.shape_cast %148 : vector<1x128x128xf32> to vector<128x128xf32>
    %cst_121 = arith.constant dense<0.000000e+00> : vector<64x128xf32>
    %150 = tpu.matmul %147, %149, %cst_121 {dimension_numbers = #tpu.dot_dimension_numbers<[1], [0], [0], [1], [0, 0, 1, 1], [], []>} : vector<64x128xf32>, vector<128x128xf32>, vector<64x128xf32> -> vector<64x128xf32>
    %c6_122 = arith.constant 6 : index
    %c0_123 = arith.constant 0 : index
    %c0_124 = arith.constant 0 : index
    %151 = vector.load %arg2[%c6_122, %c0_123, %c0_124] : memref<9x64x1xf32, #tpu.memory_space<vmem>>, vector<1x64x1xf32>
    %152 = vector.shape_cast %151 : vector<1x64x1xf32> to vector<64x1xf32>
    %153 = vector.broadcast %152 : vector<64x1xf32> to vector<64x128xf32>
    %154 = arith.mulf %150, %153 : vector<64x128xf32>
    %155 = arith.addf %146, %154 : vector<64x128xf32>
    %c56_i32 = arith.constant 56 : i32
    %156 = tpu.dynamic_rotate %98 by %c56_i32 dim 0 : vector<64x128xf32>, i32 -> vector<64x128xf32>
    %c7_125 = arith.constant 7 : index
    %c0_126 = arith.constant 0 : index
    %c0_127 = arith.constant 0 : index
    %157 = vector.load %arg8[%c7_125, %c0_126, %c0_127] : memref<9x128x128xf32, #tpu.memory_space<vmem>>, vector<1x128x128xf32>
    %158 = vector.shape_cast %157 : vector<1x128x128xf32> to vector<128x128xf32>
    %cst_128 = arith.constant dense<0.000000e+00> : vector<64x128xf32>
    %159 = tpu.matmul %156, %158, %cst_128 {dimension_numbers = #tpu.dot_dimension_numbers<[1], [0], [0], [1], [0, 0, 1, 1], [], []>} : vector<64x128xf32>, vector<128x128xf32>, vector<64x128xf32> -> vector<64x128xf32>
    %c7_129 = arith.constant 7 : index
    %c0_130 = arith.constant 0 : index
    %c0_131 = arith.constant 0 : index
    %160 = vector.load %arg2[%c7_129, %c0_130, %c0_131] : memref<9x64x1xf32, #tpu.memory_space<vmem>>, vector<1x64x1xf32>
    %161 = vector.shape_cast %160 : vector<1x64x1xf32> to vector<64x1xf32>
    %162 = vector.broadcast %161 : vector<64x1xf32> to vector<64x128xf32>
    %163 = arith.mulf %159, %162 : vector<64x128xf32>
    %164 = arith.addf %155, %163 : vector<64x128xf32>
    %c55_i32 = arith.constant 55 : i32
    %165 = tpu.dynamic_rotate %98 by %c55_i32 dim 0 : vector<64x128xf32>, i32 -> vector<64x128xf32>
    %c8_132 = arith.constant 8 : index
    %c0_133 = arith.constant 0 : index
    %c0_134 = arith.constant 0 : index
    %166 = vector.load %arg8[%c8_132, %c0_133, %c0_134] : memref<9x128x128xf32, #tpu.memory_space<vmem>>, vector<1x128x128xf32>
    %167 = vector.shape_cast %166 : vector<1x128x128xf32> to vector<128x128xf32>
    %cst_135 = arith.constant dense<0.000000e+00> : vector<64x128xf32>
    %168 = tpu.matmul %165, %167, %cst_135 {dimension_numbers = #tpu.dot_dimension_numbers<[1], [0], [0], [1], [0, 0, 1, 1], [], []>} : vector<64x128xf32>, vector<128x128xf32>, vector<64x128xf32> -> vector<64x128xf32>
    %c8_136 = arith.constant 8 : index
    %c0_137 = arith.constant 0 : index
    %c0_138 = arith.constant 0 : index
    %169 = vector.load %arg2[%c8_136, %c0_137, %c0_138] : memref<9x64x1xf32, #tpu.memory_space<vmem>>, vector<1x64x1xf32>
    %170 = vector.shape_cast %169 : vector<1x64x1xf32> to vector<64x1xf32>
    %171 = vector.broadcast %170 : vector<64x1xf32> to vector<64x128xf32>
    %172 = arith.mulf %168, %171 : vector<64x128xf32>
    %173 = arith.addf %164, %172 : vector<64x128xf32>
    %cst_139 = arith.constant dense<0.000000e+00> : vector<128xf32>
    %174 = vector.multi_reduction <add>, %173, %cst_139 [0] : vector<64x128xf32> to vector<128xf32>
    %175 = vector.shape_cast %174 : vector<128xf32> to vector<1x128xf32>
    %176 = arith.mulf %173, %173 : vector<64x128xf32>
    %cst_140 = arith.constant dense<0.000000e+00> : vector<128xf32>
    %177 = vector.multi_reduction <add>, %176, %cst_140 [0] : vector<64x128xf32> to vector<128xf32>
    %178 = vector.shape_cast %177 : vector<128xf32> to vector<1x128xf32>
    %179 = tpu.concatenate %175, %178 in 0 : vector<1x128xf32>, vector<1x128xf32> -> vector<2x128xf32>
    %c0_141 = arith.constant 0 : index
    %c0_142 = arith.constant 0 : index
    %180 = vector.load %arg9[%c0_141, %c0_142] : memref<128x128xf32, #tpu.memory_space<vmem>>, vector<128x128xf32>
    %cst_143 = arith.constant dense<0.000000e+00> : vector<2x128xf32>
    %181 = tpu.matmul %179, %180, %cst_143 {dimension_numbers = #tpu.dot_dimension_numbers<[1], [0], [0], [1], [0, 0, 1, 1], [], []>} : vector<2x128xf32>, vector<128x128xf32>, vector<2x128xf32> -> vector<2x128xf32>
    %182 = vector.extract_strided_slice %181 {offsets = [0, 0], sizes = [1, 128], strides = [1, 1]} : vector<2x128xf32> to vector<1x128xf32>
    %183 = vector.extract_strided_slice %181 {offsets = [1, 0], sizes = [1, 128], strides = [1, 1]} : vector<2x128xf32> to vector<1x128xf32>
    %184 = arith.mulf %182, %182 : vector<1x128xf32>
    %185 = arith.subf %183, %184 : vector<1x128xf32>
    %cst_144 = arith.constant 0.000000e+00 : f32
    %186 = vector.broadcast %cst_144 : f32 to vector<1x128xf32>
    %187 = arith.maximumf %185, %186 : vector<1x128xf32>
    %cst_145 = arith.constant 9.99999974E-6 : f32
    %188 = vector.broadcast %cst_145 : f32 to vector<1x128xf32>
    %189 = arith.addf %187, %188 : vector<1x128xf32>
    %190 = math.rsqrt %189 : vector<1x128xf32>
    %c0_146 = arith.constant 0 : index
    %c0_147 = arith.constant 0 : index
    %191 = vector.load %arg10[%c0_146, %c0_147] : memref<1x128xf32, #tpu.memory_space<vmem>>, vector<1x128xf32>
    %192 = arith.mulf %190, %191 : vector<1x128xf32>
    %193 = vector.broadcast %182 : vector<1x128xf32> to vector<64x128xf32>
    %194 = arith.subf %173, %193 : vector<64x128xf32>
    %195 = vector.broadcast %192 : vector<1x128xf32> to vector<64x128xf32>
    %196 = arith.mulf %194, %195 : vector<64x128xf32>
    %c0_148 = arith.constant 0 : index
    %c0_149 = arith.constant 0 : index
    %197 = vector.load %arg11[%c0_148, %c0_149] : memref<1x128xf32, #tpu.memory_space<vmem>>, vector<1x128xf32>
    %198 = vector.broadcast %197 : vector<1x128xf32> to vector<64x128xf32>
    %199 = arith.addf %196, %198 : vector<64x128xf32>
    %cst_150 = arith.constant 5.000000e-01 : f32
    %200 = vector.broadcast %cst_150 : f32 to vector<64x128xf32>
    %201 = arith.mulf %200, %199 : vector<64x128xf32>
    %202 = math.tanh %201 : vector<64x128xf32>
    %cst_151 = arith.constant 5.000000e-01 : f32
    %203 = vector.broadcast %cst_151 : f32 to vector<64x128xf32>
    %204 = arith.mulf %203, %202 : vector<64x128xf32>
    %cst_152 = arith.constant 5.000000e-01 : f32
    %205 = vector.broadcast %cst_152 : f32 to vector<64x128xf32>
    %206 = arith.addf %204, %205 : vector<64x128xf32>
    %207 = arith.mulf %199, %206 : vector<64x128xf32>
    %c9_i32_153 = arith.constant 9 : i32
    %208 = tpu.dynamic_rotate %207 by %c9_i32_153 dim 0 : vector<64x128xf32>, i32 -> vector<64x128xf32>
    %c0_154 = arith.constant 0 : index
    %c0_155 = arith.constant 0 : index
    %c0_156 = arith.constant 0 : index
    %209 = vector.load %arg12[%c0_154, %c0_155, %c0_156] : memref<9x128x128xf32, #tpu.memory_space<vmem>>, vector<1x128x128xf32>
    %210 = vector.shape_cast %209 : vector<1x128x128xf32> to vector<128x128xf32>
    %cst_157 = arith.constant dense<0.000000e+00> : vector<64x128xf32>
    %211 = tpu.matmul %208, %210, %cst_157 {dimension_numbers = #tpu.dot_dimension_numbers<[1], [0], [0], [1], [0, 0, 1, 1], [], []>} : vector<64x128xf32>, vector<128x128xf32>, vector<64x128xf32> -> vector<64x128xf32>
    %c0_158 = arith.constant 0 : index
    %c0_159 = arith.constant 0 : index
    %c0_160 = arith.constant 0 : index
    %212 = vector.load %arg2[%c0_158, %c0_159, %c0_160] : memref<9x64x1xf32, #tpu.memory_space<vmem>>, vector<1x64x1xf32>
    %213 = vector.shape_cast %212 : vector<1x64x1xf32> to vector<64x1xf32>
    %214 = vector.broadcast %213 : vector<64x1xf32> to vector<64x128xf32>
    %215 = arith.mulf %211, %214 : vector<64x128xf32>
    %c8_i32_161 = arith.constant 8 : i32
    %216 = tpu.dynamic_rotate %207 by %c8_i32_161 dim 0 : vector<64x128xf32>, i32 -> vector<64x128xf32>
    %c1_162 = arith.constant 1 : index
    %c0_163 = arith.constant 0 : index
    %c0_164 = arith.constant 0 : index
    %217 = vector.load %arg12[%c1_162, %c0_163, %c0_164] : memref<9x128x128xf32, #tpu.memory_space<vmem>>, vector<1x128x128xf32>
    %218 = vector.shape_cast %217 : vector<1x128x128xf32> to vector<128x128xf32>
    %cst_165 = arith.constant dense<0.000000e+00> : vector<64x128xf32>
    %219 = tpu.matmul %216, %218, %cst_165 {dimension_numbers = #tpu.dot_dimension_numbers<[1], [0], [0], [1], [0, 0, 1, 1], [], []>} : vector<64x128xf32>, vector<128x128xf32>, vector<64x128xf32> -> vector<64x128xf32>
    %c1_166 = arith.constant 1 : index
    %c0_167 = arith.constant 0 : index
    %c0_168 = arith.constant 0 : index
    %220 = vector.load %arg2[%c1_166, %c0_167, %c0_168] : memref<9x64x1xf32, #tpu.memory_space<vmem>>, vector<1x64x1xf32>
    %221 = vector.shape_cast %220 : vector<1x64x1xf32> to vector<64x1xf32>
    %222 = vector.broadcast %221 : vector<64x1xf32> to vector<64x128xf32>
    %223 = arith.mulf %219, %222 : vector<64x128xf32>
    %224 = arith.addf %215, %223 : vector<64x128xf32>
    %c7_i32_169 = arith.constant 7 : i32
    %225 = tpu.dynamic_rotate %207 by %c7_i32_169 dim 0 : vector<64x128xf32>, i32 -> vector<64x128xf32>
    %c2_170 = arith.constant 2 : index
    %c0_171 = arith.constant 0 : index
    %c0_172 = arith.constant 0 : index
    %226 = vector.load %arg12[%c2_170, %c0_171, %c0_172] : memref<9x128x128xf32, #tpu.memory_space<vmem>>, vector<1x128x128xf32>
    %227 = vector.shape_cast %226 : vector<1x128x128xf32> to vector<128x128xf32>
    %cst_173 = arith.constant dense<0.000000e+00> : vector<64x128xf32>
    %228 = tpu.matmul %225, %227, %cst_173 {dimension_numbers = #tpu.dot_dimension_numbers<[1], [0], [0], [1], [0, 0, 1, 1], [], []>} : vector<64x128xf32>, vector<128x128xf32>, vector<64x128xf32> -> vector<64x128xf32>
    %c2_174 = arith.constant 2 : index
    %c0_175 = arith.constant 0 : index
    %c0_176 = arith.constant 0 : index
    %229 = vector.load %arg2[%c2_174, %c0_175, %c0_176] : memref<9x64x1xf32, #tpu.memory_space<vmem>>, vector<1x64x1xf32>
    %230 = vector.shape_cast %229 : vector<1x64x1xf32> to vector<64x1xf32>
    %231 = vector.broadcast %230 : vector<64x1xf32> to vector<64x128xf32>
    %232 = arith.mulf %228, %231 : vector<64x128xf32>
    %233 = arith.addf %224, %232 : vector<64x128xf32>
    %c1_i32_177 = arith.constant 1 : i32
    %234 = tpu.dynamic_rotate %207 by %c1_i32_177 dim 0 : vector<64x128xf32>, i32 -> vector<64x128xf32>
    %c3_178 = arith.constant 3 : index
    %c0_179 = arith.constant 0 : index
    %c0_180 = arith.constant 0 : index
    %235 = vector.load %arg12[%c3_178, %c0_179, %c0_180] : memref<9x128x128xf32, #tpu.memory_space<vmem>>, vector<1x128x128xf32>
    %236 = vector.shape_cast %235 : vector<1x128x128xf32> to vector<128x128xf32>
    %cst_181 = arith.constant dense<0.000000e+00> : vector<64x128xf32>
    %237 = tpu.matmul %234, %236, %cst_181 {dimension_numbers = #tpu.dot_dimension_numbers<[1], [0], [0], [1], [0, 0, 1, 1], [], []>} : vector<64x128xf32>, vector<128x128xf32>, vector<64x128xf32> -> vector<64x128xf32>
    %c3_182 = arith.constant 3 : index
    %c0_183 = arith.constant 0 : index
    %c0_184 = arith.constant 0 : index
    %238 = vector.load %arg2[%c3_182, %c0_183, %c0_184] : memref<9x64x1xf32, #tpu.memory_space<vmem>>, vector<1x64x1xf32>
    %239 = vector.shape_cast %238 : vector<1x64x1xf32> to vector<64x1xf32>
    %240 = vector.broadcast %239 : vector<64x1xf32> to vector<64x128xf32>
    %241 = arith.mulf %237, %240 : vector<64x128xf32>
    %242 = arith.addf %233, %241 : vector<64x128xf32>
    %c4_185 = arith.constant 4 : index
    %c0_186 = arith.constant 0 : index
    %c0_187 = arith.constant 0 : index
    %243 = vector.load %arg12[%c4_185, %c0_186, %c0_187] : memref<9x128x128xf32, #tpu.memory_space<vmem>>, vector<1x128x128xf32>
    %244 = vector.shape_cast %243 : vector<1x128x128xf32> to vector<128x128xf32>
    %cst_188 = arith.constant dense<0.000000e+00> : vector<64x128xf32>
    %245 = tpu.matmul %207, %244, %cst_188 {dimension_numbers = #tpu.dot_dimension_numbers<[1], [0], [0], [1], [0, 0, 1, 1], [], []>} : vector<64x128xf32>, vector<128x128xf32>, vector<64x128xf32> -> vector<64x128xf32>
    %246 = arith.addf %242, %245 : vector<64x128xf32>
    %c63_i32_189 = arith.constant 63 : i32
    %247 = tpu.dynamic_rotate %207 by %c63_i32_189 dim 0 : vector<64x128xf32>, i32 -> vector<64x128xf32>
    %c5_190 = arith.constant 5 : index
    %c0_191 = arith.constant 0 : index
    %c0_192 = arith.constant 0 : index
    %248 = vector.load %arg12[%c5_190, %c0_191, %c0_192] : memref<9x128x128xf32, #tpu.memory_space<vmem>>, vector<1x128x128xf32>
    %249 = vector.shape_cast %248 : vector<1x128x128xf32> to vector<128x128xf32>
    %cst_193 = arith.constant dense<0.000000e+00> : vector<64x128xf32>
    %250 = tpu.matmul %247, %249, %cst_193 {dimension_numbers = #tpu.dot_dimension_numbers<[1], [0], [0], [1], [0, 0, 1, 1], [], []>} : vector<64x128xf32>, vector<128x128xf32>, vector<64x128xf32> -> vector<64x128xf32>
    %c5_194 = arith.constant 5 : index
    %c0_195 = arith.constant 0 : index
    %c0_196 = arith.constant 0 : index
    %251 = vector.load %arg2[%c5_194, %c0_195, %c0_196] : memref<9x64x1xf32, #tpu.memory_space<vmem>>, vector<1x64x1xf32>
    %252 = vector.shape_cast %251 : vector<1x64x1xf32> to vector<64x1xf32>
    %253 = vector.broadcast %252 : vector<64x1xf32> to vector<64x128xf32>
    %254 = arith.mulf %250, %253 : vector<64x128xf32>
    %255 = arith.addf %246, %254 : vector<64x128xf32>
    %c57_i32_197 = arith.constant 57 : i32
    %256 = tpu.dynamic_rotate %207 by %c57_i32_197 dim 0 : vector<64x128xf32>, i32 -> vector<64x128xf32>
    %c6_198 = arith.constant 6 : index
    %c0_199 = arith.constant 0 : index
    %c0_200 = arith.constant 0 : index
    %257 = vector.load %arg12[%c6_198, %c0_199, %c0_200] : memref<9x128x128xf32, #tpu.memory_space<vmem>>, vector<1x128x128xf32>
    %258 = vector.shape_cast %257 : vector<1x128x128xf32> to vector<128x128xf32>
    %cst_201 = arith.constant dense<0.000000e+00> : vector<64x128xf32>
    %259 = tpu.matmul %256, %258, %cst_201 {dimension_numbers = #tpu.dot_dimension_numbers<[1], [0], [0], [1], [0, 0, 1, 1], [], []>} : vector<64x128xf32>, vector<128x128xf32>, vector<64x128xf32> -> vector<64x128xf32>
    %c6_202 = arith.constant 6 : index
    %c0_203 = arith.constant 0 : index
    %c0_204 = arith.constant 0 : index
    %260 = vector.load %arg2[%c6_202, %c0_203, %c0_204] : memref<9x64x1xf32, #tpu.memory_space<vmem>>, vector<1x64x1xf32>
    %261 = vector.shape_cast %260 : vector<1x64x1xf32> to vector<64x1xf32>
    %262 = vector.broadcast %261 : vector<64x1xf32> to vector<64x128xf32>
    %263 = arith.mulf %259, %262 : vector<64x128xf32>
    %264 = arith.addf %255, %263 : vector<64x128xf32>
    %c56_i32_205 = arith.constant 56 : i32
    %265 = tpu.dynamic_rotate %207 by %c56_i32_205 dim 0 : vector<64x128xf32>, i32 -> vector<64x128xf32>
    %c7_206 = arith.constant 7 : index
    %c0_207 = arith.constant 0 : index
    %c0_208 = arith.constant 0 : index
    %266 = vector.load %arg12[%c7_206, %c0_207, %c0_208] : memref<9x128x128xf32, #tpu.memory_space<vmem>>, vector<1x128x128xf32>
    %267 = vector.shape_cast %266 : vector<1x128x128xf32> to vector<128x128xf32>
    %cst_209 = arith.constant dense<0.000000e+00> : vector<64x128xf32>
    %268 = tpu.matmul %265, %267, %cst_209 {dimension_numbers = #tpu.dot_dimension_numbers<[1], [0], [0], [1], [0, 0, 1, 1], [], []>} : vector<64x128xf32>, vector<128x128xf32>, vector<64x128xf32> -> vector<64x128xf32>
    %c7_210 = arith.constant 7 : index
    %c0_211 = arith.constant 0 : index
    %c0_212 = arith.constant 0 : index
    %269 = vector.load %arg2[%c7_210, %c0_211, %c0_212] : memref<9x64x1xf32, #tpu.memory_space<vmem>>, vector<1x64x1xf32>
    %270 = vector.shape_cast %269 : vector<1x64x1xf32> to vector<64x1xf32>
    %271 = vector.broadcast %270 : vector<64x1xf32> to vector<64x128xf32>
    %272 = arith.mulf %268, %271 : vector<64x128xf32>
    %273 = arith.addf %264, %272 : vector<64x128xf32>
    %c55_i32_213 = arith.constant 55 : i32
    %274 = tpu.dynamic_rotate %207 by %c55_i32_213 dim 0 : vector<64x128xf32>, i32 -> vector<64x128xf32>
    %c8_214 = arith.constant 8 : index
    %c0_215 = arith.constant 0 : index
    %c0_216 = arith.constant 0 : index
    %275 = vector.load %arg12[%c8_214, %c0_215, %c0_216] : memref<9x128x128xf32, #tpu.memory_space<vmem>>, vector<1x128x128xf32>
    %276 = vector.shape_cast %275 : vector<1x128x128xf32> to vector<128x128xf32>
    %cst_217 = arith.constant dense<0.000000e+00> : vector<64x128xf32>
    %277 = tpu.matmul %274, %276, %cst_217 {dimension_numbers = #tpu.dot_dimension_numbers<[1], [0], [0], [1], [0, 0, 1, 1], [], []>} : vector<64x128xf32>, vector<128x128xf32>, vector<64x128xf32> -> vector<64x128xf32>
    %c8_218 = arith.constant 8 : index
    %c0_219 = arith.constant 0 : index
    %c0_220 = arith.constant 0 : index
    %278 = vector.load %arg2[%c8_218, %c0_219, %c0_220] : memref<9x64x1xf32, #tpu.memory_space<vmem>>, vector<1x64x1xf32>
    %279 = vector.shape_cast %278 : vector<1x64x1xf32> to vector<64x1xf32>
    %280 = vector.broadcast %279 : vector<64x1xf32> to vector<64x128xf32>
    %281 = arith.mulf %277, %280 : vector<64x128xf32>
    %282 = arith.addf %273, %281 : vector<64x128xf32>
    %cst_221 = arith.constant dense<0.000000e+00> : vector<128xf32>
    %283 = vector.multi_reduction <add>, %282, %cst_221 [0] : vector<64x128xf32> to vector<128xf32>
    %284 = vector.shape_cast %283 : vector<128xf32> to vector<1x128xf32>
    %285 = arith.mulf %282, %282 : vector<64x128xf32>
    %cst_222 = arith.constant dense<0.000000e+00> : vector<128xf32>
    %286 = vector.multi_reduction <add>, %285, %cst_222 [0] : vector<64x128xf32> to vector<128xf32>
    %287 = vector.shape_cast %286 : vector<128xf32> to vector<1x128xf32>
    %288 = tpu.concatenate %284, %287 in 0 : vector<1x128xf32>, vector<1x128xf32> -> vector<2x128xf32>
    %c0_223 = arith.constant 0 : index
    %c0_224 = arith.constant 0 : index
    %289 = vector.load %arg9[%c0_223, %c0_224] : memref<128x128xf32, #tpu.memory_space<vmem>>, vector<128x128xf32>
    %cst_225 = arith.constant dense<0.000000e+00> : vector<2x128xf32>
    %290 = tpu.matmul %288, %289, %cst_225 {dimension_numbers = #tpu.dot_dimension_numbers<[1], [0], [0], [1], [0, 0, 1, 1], [], []>} : vector<2x128xf32>, vector<128x128xf32>, vector<2x128xf32> -> vector<2x128xf32>
    %291 = vector.extract_strided_slice %290 {offsets = [0, 0], sizes = [1, 128], strides = [1, 1]} : vector<2x128xf32> to vector<1x128xf32>
    %292 = vector.extract_strided_slice %290 {offsets = [1, 0], sizes = [1, 128], strides = [1, 1]} : vector<2x128xf32> to vector<1x128xf32>
    %293 = arith.mulf %291, %291 : vector<1x128xf32>
    %294 = arith.subf %292, %293 : vector<1x128xf32>
    %cst_226 = arith.constant 0.000000e+00 : f32
    %295 = vector.broadcast %cst_226 : f32 to vector<1x128xf32>
    %296 = arith.maximumf %294, %295 : vector<1x128xf32>
    %cst_227 = arith.constant 9.99999974E-6 : f32
    %297 = vector.broadcast %cst_227 : f32 to vector<1x128xf32>
    %298 = arith.addf %296, %297 : vector<1x128xf32>
    %299 = math.rsqrt %298 : vector<1x128xf32>
    %c0_228 = arith.constant 0 : index
    %c0_229 = arith.constant 0 : index
    %300 = vector.load %arg13[%c0_228, %c0_229] : memref<1x128xf32, #tpu.memory_space<vmem>>, vector<1x128xf32>
    %301 = arith.mulf %299, %300 : vector<1x128xf32>
    %302 = vector.broadcast %291 : vector<1x128xf32> to vector<64x128xf32>
    %303 = arith.subf %282, %302 : vector<64x128xf32>
    %304 = vector.broadcast %301 : vector<1x128xf32> to vector<64x128xf32>
    %305 = arith.mulf %303, %304 : vector<64x128xf32>
    %c0_230 = arith.constant 0 : index
    %c0_231 = arith.constant 0 : index
    %306 = vector.load %arg14[%c0_230, %c0_231] : memref<1x128xf32, #tpu.memory_space<vmem>>, vector<1x128xf32>
    %307 = vector.broadcast %306 : vector<1x128xf32> to vector<64x128xf32>
    %308 = arith.addf %305, %307 : vector<64x128xf32>
    %cst_232 = arith.constant 5.000000e-01 : f32
    %309 = vector.broadcast %cst_232 : f32 to vector<64x128xf32>
    %310 = arith.mulf %309, %308 : vector<64x128xf32>
    %311 = math.tanh %310 : vector<64x128xf32>
    %cst_233 = arith.constant 5.000000e-01 : f32
    %312 = vector.broadcast %cst_233 : f32 to vector<64x128xf32>
    %313 = arith.mulf %312, %311 : vector<64x128xf32>
    %cst_234 = arith.constant 5.000000e-01 : f32
    %314 = vector.broadcast %cst_234 : f32 to vector<64x128xf32>
    %315 = arith.addf %313, %314 : vector<64x128xf32>
    %316 = arith.mulf %308, %315 : vector<64x128xf32>
    %c0_235 = arith.constant 0 : index
    %c0_236 = arith.constant 0 : index
    %c0_237 = arith.constant 0 : index
    %317 = vector.load %arg15[%c0_235, %c0_236, %c0_237] : memref<1x64x128xf32, #tpu.memory_space<vmem>>, vector<1x64x128xf32>
    %318 = vector.shape_cast %317 : vector<1x64x128xf32> to vector<64x128xf32>
    %319 = vector.shape_cast %316 : vector<64x128xf32> to vector<1x64x128xf32>
    tpu.vector_store %arg15[%c0_235, %c0_236, %c0_237], %319 {strides = array<i32>} : memref<1x64x128xf32, #tpu.memory_space<vmem>>, vector<1x64x128xf32>,
    return
  }
  func.func @transform_0(%arg0: i32) -> (i32, i32, i32, i32) {
    %c0_i32 = arith.constant 0 : i32
    %c0_i32_0 = arith.constant 0 : i32
    %c0_i32_1 = arith.constant 0 : i32
    %c0_i32_2 = arith.constant 0 : i32
    return %arg0, %c0_i32, %c0_i32_0, %c0_i32_1 : i32, i32, i32, i32
  }
  func.func @transform_1(%arg0: i32) -> (i32, i32, i32) {
    %c0_i32 = arith.constant 0 : i32
    %c0_i32_0 = arith.constant 0 : i32
    %c0_i32_1 = arith.constant 0 : i32
    %c0_i32_2 = arith.constant 0 : i32
    return %c0_i32, %c0_i32_0, %c0_i32_1 : i32, i32, i32
  }
  func.func @transform_2(%arg0: i32) -> (i32, i32, i32, i32) {
    %c0_i32 = arith.constant 0 : i32
    %c0_i32_0 = arith.constant 0 : i32
    %c0_i32_1 = arith.constant 0 : i32
    %c0_i32_2 = arith.constant 0 : i32
    %c0_i32_3 = arith.constant 0 : i32
    return %c0_i32, %c0_i32_0, %c0_i32_1, %c0_i32_2 : i32, i32, i32, i32
  }
  func.func @transform_3(%arg0: i32) -> (i32, i32) {
    %c0_i32 = arith.constant 0 : i32
    %c0_i32_0 = arith.constant 0 : i32
    %c0_i32_1 = arith.constant 0 : i32
    return %c0_i32, %c0_i32_0 : i32, i32
  }
  func.func @transform_4(%arg0: i32) -> (i32, i32) {
    %c0_i32 = arith.constant 0 : i32
    %c0_i32_0 = arith.constant 0 : i32
    %c0_i32_1 = arith.constant 0 : i32
    return %c0_i32, %c0_i32_0 : i32, i32
  }
  func.func @transform_5(%arg0: i32) -> (i32, i32) {
    %c0_i32 = arith.constant 0 : i32
    %c0_i32_0 = arith.constant 0 : i32
    %c0_i32_1 = arith.constant 0 : i32
    return %c0_i32, %c0_i32_0 : i32, i32
  }
  func.func @transform_6(%arg0: i32) -> (i32, i32) {
    %c0_i32 = arith.constant 0 : i32
    %c0_i32_0 = arith.constant 0 : i32
    %c0_i32_1 = arith.constant 0 : i32
    return %c0_i32, %c0_i32_0 : i32, i32
  }
  func.func @transform_7(%arg0: i32) -> (i32, i32, i32) {
    %c0_i32 = arith.constant 0 : i32
    %c0_i32_0 = arith.constant 0 : i32
    %c0_i32_1 = arith.constant 0 : i32
    %c0_i32_2 = arith.constant 0 : i32
    return %c0_i32, %c0_i32_0, %c0_i32_1 : i32, i32, i32
  }
  func.func @transform_8(%arg0: i32) -> (i32, i32) {
    %c0_i32 = arith.constant 0 : i32
    %c0_i32_0 = arith.constant 0 : i32
    %c0_i32_1 = arith.constant 0 : i32
    return %c0_i32, %c0_i32_0 : i32, i32
  }
  func.func @transform_9(%arg0: i32) -> (i32, i32) {
    %c0_i32 = arith.constant 0 : i32
    %c0_i32_0 = arith.constant 0 : i32
    %c0_i32_1 = arith.constant 0 : i32
    return %c0_i32, %c0_i32_0 : i32, i32
  }
  func.func @transform_10(%arg0: i32) -> (i32, i32) {
    %c0_i32 = arith.constant 0 : i32
    %c0_i32_0 = arith.constant 0 : i32
    %c0_i32_1 = arith.constant 0 : i32
    return %c0_i32, %c0_i32_0 : i32, i32
  }
  func.func @transform_11(%arg0: i32) -> (i32, i32, i32) {
    %c0_i32 = arith.constant 0 : i32
    %c0_i32_0 = arith.constant 0 : i32
    %c0_i32_1 = arith.constant 0 : i32
    %c0_i32_2 = arith.constant 0 : i32
    return %c0_i32, %c0_i32_0, %c0_i32_1 : i32, i32, i32
  }
  func.func @transform_12(%arg0: i32) -> (i32, i32) {
    %c0_i32 = arith.constant 0 : i32
    %c0_i32_0 = arith.constant 0 : i32
    %c0_i32_1 = arith.constant 0 : i32
    return %c0_i32, %c0_i32_0 : i32, i32
  }
  func.func @transform_13(%arg0: i32) -> (i32, i32) {
    %c0_i32 = arith.constant 0 : i32
    %c0_i32_0 = arith.constant 0 : i32
    %c0_i32_1 = arith.constant 0 : i32
    return %c0_i32, %c0_i32_0 : i32, i32
  }
  func.func @transform_14(%arg0: i32) -> (i32, i32, i32) {
    %c0_i32 = arith.constant 0 : i32
    %c0_i32_0 = arith.constant 0 : i32
    %c0_i32_1 = arith.constant 0 : i32
    return %arg0, %c0_i32, %c0_i32_0 : i32, i32, i32
  }
}

</mosaic_0001>

<bundles_post_ra>
// kernel: tpu_custom_call.1
= control target key start
LH: loop header
LB: loop body
LE: loop exit
PB: predicated region body
PF: predicated region fallthrough
CT: control target
= control target key end

     0   :  { %s9854_s0 = inlined_call_operand.vmem [shape: f32[8,9,9,128], index: 0, kind: input, shape index: {}]   ;;  %s9855_s1 = inlined_call_operand.vmem [shape: f32[9,64,1], index: 1, kind: input, shape index: {}]   ;;  %s9856_s2 = inlined_call_operand.vmem [shape: f32[9,1,1,128], index: 2, kind: input, shape index: {}]   ;;  %s9857_s3 = inlined_call_operand.hbm [shape: f32[128,128], index: 3, kind: input, shape index: {}]   ;;  %s9858_s4 = inlined_call_operand.hbm [shape: f32[128,128], index: 4, kind: input, shape index: {}]   ;;  %s9859_s5 = inlined_call_operand.vmem [shape: f32[1,128], index: 5, kind: input, shape index: {}]   ;;  %s9860_s6 = inlined_call_operand.vmem [shape: f32[1,128], index: 6, kind: input, shape index: {}]   ;;  %s9861_s7 = inlined_call_operand.vmem [shape: f32[9,128,128], index: 7, kind: input, shape index: {}]   ;;  %s9862_s8 = inlined_call_operand.hbm [shape: f32[128,128], index: 8, kind: input, shape index: {}]   ;;  %s9863_s9 = inlined_call_operand.vmem [shape: f32[1,128], index: 9, kind: input, shape index: {}]   ;;  %s9864_s10 = inlined_call_operand.vmem [shape: f32[1,128], index: 10, kind: input, shape index: {}]   ;;  %s9865_s11 = inlined_call_operand.vmem [shape: f32[9,128,128], index: 11, kind: input, shape index: {}]   ;;  %s9866_s12 = inlined_call_operand.vmem [shape: f32[1,128], index: 12, kind: input, shape index: {}]   ;;  %s9867_s13 = inlined_call_operand.vmem [shape: f32[1,128], index: 13, kind: input, shape index: {}]   ;;  %s9868_s14 = inlined_call_operand.hbm [shape: f32[2,64,128], index: 14, kind: output, shape index: {}]  }
   0x1   :  { %9937 = sst [smem:[#allocation70_spill]] %s9867_s13 }
   0x2   :  { %9938 = sst [smem:[#allocation71_spill]] %s9868_s14 }
   0x3   :  { %19 = vsyncpa [#allocation3], 0 }
   0x4   :  { %20 = vsyncpa [#allocation6], 0 }
   0x5   :  { %21 = vsyncpa [#allocation4], 0 }
   0x6   :  { %23 = vsyncpa [#allocation4 + $0x1], 0  ;;  %s7493_s29 = smov 0   ;;  %s7495_s30 = smov 0  }
   0x7   :  { %s7497_s15 = smov 0   ;;  %s7499_s16 = smov 0  }
   0x8 LB: > { %9939 = sst [smem:[#allocation12_spill]] %s7392_s29  ;;  %s7514_s17 = sadd.s32 4294967295, %s7404_s16   ;;  %s7404_s16 = sphi %s7499_s16, %s10069_s16   ;;  %s7400_s15 = sphi %s7497_s15, %s10072_s15   ;;  %s7396_s30 = sphi %s7495_s30, %s10071_s30   ;;  %s7392_s29 = sphi %s7493_s29, %s10070_s29  }
   0x9   : > { %9940 = sst [smem:[#allocation13_spill]] %s7396_s30  ;;  %s4577_s18 = sadd.s32 4294967294, %s7404_s16  }
   0xa   : > { %9941 = sst [smem:[#allocation14_spill]] %s7400_s15  ;;  %s7518_s19 = sadd.s32 1, %s7404_s16  }
   0xb   : > { %9942 = sst [smem:[#allocation15_spill]] %s7404_s16  ;;  %s335_s20 = sadd.s32 1, %s7400_s15 }
   0xc   : > { %9943 = sst [smem:[#allocation16_spill]] %s7518_s19  ;;  %s332_s21 = ssub.s32 %s7404_s16, %s7518_s19 }
   0xd   : > { %p345_p0 = scmp.ne.s32.totalorder %s7400_s15, %s7396_s30  ;;  %p333_p1 = scmp.eq.s32.totalorder %s332_s21, 0 }
   0xe   : > { %p346_p2 = scmp.eq.s32.totalorder %s7514_s17, 1  ;;  %p351_p3 = scmp.ne.s32.totalorder %s7396_s30, %s7392_s29 }
   0xf   : > { %p352_p4 = scmp.eq.s32.totalorder %s4577_s18, 1  ;;  %p4578_p7 = scmp.ge.s32.totalorder %s7404_s16, 1 }
  0x10   : > { %s7529_s22 = scalar_select %p333_p1, %s7400_s15, %s335_s20  }
  0x11   : > { %p7531_p5 = por %p346_p2, %p345_p0  ;;  %p7535_p6 = por %p352_p4, %p351_p3 }
  0x12   : > { %9944 = sst [smem:[#allocation17_spill]] %s7529_s22  ;;  %p359_p8 = scmp.lt.s32.totalorder %s7404_s16, 3 }
  0x13   : > { %s9945_s23 = scalar_select %p7531_p5, 1, 0 }
  0x14   : > { %s9947_s24 = scalar_select %p7535_p6, 1, 0 }
  0x15   : > { %9946 = sst [smem:[#allocation18_spill]] %s9945_s23  ;;  %p9875_p9 = scmp.eq.s32.totalorder %s7514_s17, 0 }
  0x16   : > { %9948 = sst [smem:[#allocation19_spill]] %s9947_s24  ;;  %p7542_p10 = pnand %p4578_p7, %p359_p8 }
  0x17   : > { %s7406_s26 = smov [#allocation5]   ;;  %s7407_s18 = smov [#allocation2]  }
  0x18   : > { %s9949_s25 = scalar_select %p7542_p10, 1, 0 }
  0x19   : > { %p7130_p11 = pneg %p7542_p10  ;;  %s390_s27 = sshll.u32 %s7406_s26, 4  ;;  %s7548_s27 = int_to_ptr.vmem [resolvable:$true] %s390_s27 }
  0x1a   : > { %s377_s20 = sshll.u32 %s7407_s18, 4  ;;  %s7408_s21 = smov [#allocation7]   ;;  %s7556_s20 = int_to_ptr.vmem [resolvable:$true] %s377_s20 }
  0x1b   : > { %p7552_p12 = pnand %p9875_p9, %p7130_p11  ;;  %s7558_s22 = sshll.u32 %s7408_s21, 4  ;;  %s413_s22 = int_to_ptr.vmem [resolvable:$true] %s7558_s22 }
  0x1c   : > { %s7250_s24 = scalar_lea.hbm %s9858_s4, 2048 }
  0x1d   : > { %p7251_p13 = scmp.ne.s32.totalorder %s9858_s4, %s7250_s24  ;;  %p7568_p0 = pneg %p7552_p12 }
  0x1e   : > { %p7257_p3 = scmp.lt.u32.totalorder %s7250_s24, %s9858_s4 }
  0x1f   : > { %p7253_p1 = pnand %p7568_p0, %p7251_p13 }
  0x21   : > { %p7254_p2 = pneg %p7253_p1 }
  0x23   : > { %p7259_p4 = pnand %p7257_p3, %p7254_p2 }
  0x25   : > { %7262 = shalt.err (!%p7259_p4)
}
  0x26   : > { %s7263_s29 = scalar_lea.vmem %s7548_s27, 2048  ;;  %p7271_p9 = scmp.lt.s32.totalorder %s7548_s27, %s7548_s27 }
  0x27   : > { %p7264_p7 = scmp.ne.s32.totalorder %s7548_s27, %s7263_s29  ;;  %p7272_p6 = scmp.lt.s32.totalorder %s7263_s29, %s7263_s29 }
  0x29   : > { %p7266_p8 = pnand %p7264_p7, %p7568_p0  ;;  %p7273_p13 = por %p7272_p6, %p7271_p9 }
  0x2b   : > { %p7267_p11 = pneg %p7266_p8 }
  0x2d   : > { %p7274_p1 = pnand %p7273_p13, %p7267_p11 }
  0x2f   : > { %7277 = shalt.err (!%p7274_p1)
}
  0x30   : > { %s7409_s15 = smov 128   ;;  %s7410_s19 = smov 8  }
  0x31   : > { %7136 = dma.hbm_to_vmem [thread:$0]  (!%p7552_p12), %s9858_s4, 2048, %s7548_s27, [#allocation6], %s7409_s15, %s7409_s15, %s7410_s19  }
  0x32   : > { %s7278_s29 = scalar_lea.hbm %s9857_s3, 2048 }
  0x33   : > { %p7279_p6 = scmp.ne.s32.totalorder %s9857_s3, %s7278_s29  ;;  %p7285_p3 = scmp.lt.u32.totalorder %s7278_s29, %s9857_s3 }
  0x35   : > { %p7281_p9 = pnand %p7279_p6, %p7568_p0 }
  0x37   : > { %p7282_p2 = pneg %p7281_p9 }
  0x39   : > { %p7287_p4 = pnand %p7285_p3, %p7282_p2 }
  0x3b   : > { %7290 = shalt.err (!%p7287_p4)
}
  0x3c   : > { %s7291_s27 = scalar_lea.vmem %s7556_s20, 2048  ;;  %p7299_p13 = scmp.lt.s32.totalorder %s7556_s20, %s7556_s20 }
  0x3d   : > { %p7292_p7 = scmp.ne.s32.totalorder %s7556_s20, %s7291_s27  ;;  %p7300_p1 = scmp.lt.s32.totalorder %s7291_s27, %s7291_s27 }
  0x3f   : > { %p7294_p8 = pnand %p7292_p7, %p7568_p0  ;;  %p7301_p6 = por %p7300_p1, %p7299_p13 }
  0x41   : > { %p7295_p11 = pneg %p7294_p8 }
  0x43   : > { %p7302_p9 = pnand %p7301_p6, %p7295_p11 }
  0x45   : > { %7305 = shalt.err (!%p7302_p9)
}
  0x46   : > { %7133 = dma.hbm_to_vmem [thread:$0]  (!%p7552_p12), %s9857_s3, 2048, %s7556_s20, [#allocation3], %s7409_s15, %s7409_s15, %s7410_s19  }
  0x47   : > { %s7306_s24 = scalar_lea.hbm %s9862_s8, 2048 }
  0x48   : > { %p7307_p2 = scmp.ne.s32.totalorder %s9862_s8, %s7306_s24  ;;  %p7313_p7 = scmp.lt.u32.totalorder %s7306_s24, %s9862_s8 }
  0x4a   : > { %p7309_p3 = pnand %p7307_p2, %p7568_p0 }
  0x4c   : > { %p7310_p4 = pneg %p7309_p3 }
  0x4e   : > { %p7315_p8 = pnand %p7313_p7, %p7310_p4 }
  0x50   : > { %7318 = shalt.err (!%p7315_p8)
}
  0x51   : > { %s7319_s27 = scalar_lea.vmem %s413_s22, 2048  ;;  %p7327_p6 = scmp.lt.s32.totalorder %s413_s22, %s413_s22 }
  0x52   : > { %p7320_p11 = scmp.ne.s32.totalorder %s413_s22, %s7319_s27  ;;  %p7328_p9 = scmp.lt.s32.totalorder %s7319_s27, %s7319_s27 }
  0x54   : > { %p7322_p13 = pnand %p7320_p11, %p7568_p0  ;;  %p7329_p5 = por %p7328_p9, %p7327_p6 }
  0x56   : > { %p7323_p1 = pneg %p7322_p13 }
  0x58   : > { %p7330_p10 = pnand %p7329_p5, %p7323_p1 }
  0x5a   : > { %7333 = shalt.err (!%p7330_p10)
}
  0x5b   : > { %7139 = dma.hbm_to_vmem [thread:$0]  (!%p7552_p12), %s9862_s8, 2048, %s413_s22, [#allocation6], %s7409_s15, %s7409_s15, %s7410_s19  }
  0x5c   : > { %p9952_p2 = scmp.ne.s32.totalorder %s9949_s25, 0 }
  0x5e   : > { %453 = sbr.rel (%p9952_p2) target bundleno = 1965 (0x7ad), region = 76 }
  0x65   : > { %p9953_p0 = scmp.eq.s32.totalorder %s7514_s17, 0 }
  0x67   : > { %7379 = dma.done.wait (%p9953_p0), [#allocation3], 2048   ;;  %p9954_p3 = pmov %p9953_p0 }
  0x68   : > { %p9955_p5 = pmov %p9953_p0 }
  0x69   : > { %7381 = vsyncadd (%p9954_p3), [#allocation3], 4294965248 }
  0x6a   : > { %7383 = dma.done.wait (%p9955_p5), [#allocation6], 4096   ;;  %p9956_p10 = pmov %p9953_p0 }
  0x6b   : > { %s4588_s16 = sshll.u32 %s7514_s17, 2  ;;  %v799_v0 = vld [vmem:[#allocation2] sm:$0xff]  ;;  %v800_v1 = vld [vmem:[#allocation2 + $0x8] sm:$0xff]  ;;  %v801_v2 = vld [vmem:[#allocation2 + $0x10] sm:$0xff]  ;;  %vm7412_vm0 = vmmov 0   ;;  %vm954_vm1 = vcmask 1040384  }
  0x6c   : > { %7385 = vsyncadd (%p9956_p10), [#allocation6], 4294963200  ;;  %p509_p4 = scmp.lt.s32.totalorder %s4588_s16, 7  ;;  %v6435_v3 = vpack.c.bf16 %v800_v1, %v799_v0  ;;  %v802_v4 = vld [vmem:[#allocation2 + $0x18] sm:$0xff]  ;;  %v803_v6 = vld [vmem:[#allocation2 + $0x20] sm:$0xff]  ;;  %s10060_s23 = sld [smem:[#allocation70_spill]] }
  0x6d   : > { %v6439_v5 = vpack.c.bf16 %v802_v4, %v801_v2  ;;  %v804_v7 = vld [vmem:[#allocation2 + $0x28] sm:$0xff]  ;;  %v805_v8 = vld [vmem:[#allocation2 + $0x30] sm:$0xff]  ;;  %v806_v9 = vld [vmem:[#allocation2 + $0x38] sm:$0xff]  ;;  %s10061_s24 = sld [smem:[#allocation13_spill]]  ;;  %s4986_s29 = sshll.u32 %s7514_s17, 10 }
  0x6e   : > { %s10074_s16 = smov (!%p509_p4, %s4588_s16), 7  ;;  %6436 = vmatprep.subr.bf16.mxu0 %v6435_v3  ;;  %v6443_v10 = vpack.c.bf16 %v804_v7, %v803_v6  ;;  %v807_v11 = vld [vmem:[#allocation2 + $0x40] sm:$0xff]  ;;  %v808_v12 = vld [vmem:[#allocation2 + $0x48] sm:$0xff]  ;;  %v809_v19 = vld [vmem:[#allocation2 + $0x50] sm:$0xff]  ;;  %v6447_v32 = vpack.c.bf16 %v806_v9, %v805_v8  ;;  %s10062_s20 = sld [smem:[#allocation18_spill]] }
  0x6f   : > { %s7115_s22 = smul.u32 144, %s10074_s16  ;;  %6438 = vmatpush3.bf16.msra.mxu0 %v6435_v3  ;;  %v7660_v14 = vld [vmem:[%s9856_s2] ss:$0 sm:$0xff]  ;;  %v7667_v17 = vld [vmem:[%s9856_s2 + $0x1] ss:$0 sm:$0xff]  ;;  %v810_v20 = vld [vmem:[#allocation2 + $0x58] sm:$0xff]  ;;  %v6451_v38 = vpack.c.bf16 %v808_v12, %v807_v11 }
  0x70   : > { %6440 = vmatprep.subr.bf16.mxu0 %v6439_v5  ;;  %v811_v21 = vld [vmem:[#allocation2 + $0x60] sm:$0xff]  ;;  %v812_v22 = vld [vmem:[#allocation2 + $0x68] sm:$0xff]  ;;  %v813_v23 = vld [vmem:[#allocation2 + $0x70] sm:$0xff]  ;;  %v7719_v50 = vpack.c.bf16 %v810_v20, %v809_v19  ;;  %s7415_s19 = smov [#allocation8]  }
  0x71   : > { %s7654_s15 = scalar_lea.vmem %s9854_s0, %s7115_s22  ;;  %v7674_v25 = vld [vmem:[%s9856_s2 + $0x2] ss:$0 sm:$0xff]  ;;  %v7680_v27 = vld [vmem:[%s9856_s2 + $0x3] ss:$0 sm:$0xff]  ;;  %v814_v28 = vld [vmem:[#allocation2 + $0x78] sm:$0xff]  ;;  %v7721_v51 = vpack.c.bf16 %v812_v22, %v811_v21  ;;  %s10063_s22 = sld [smem:[#allocation71_spill]] }
  0x72   : > { %v515_v13 = vld [vmem:[%s7654_s15] sm:$0xff]  ;;  %v4591_v16 = vld [vmem:[%s7654_s15 + $0x90] sm:$0xff]  ;;  %v7714_v46 = vld [vmem:[%s9856_s2 + $0x8] ss:$0 sm:$0xff]  ;;  %v7723_v52 = vpack.c.bf16 %v814_v28, %v813_v23  ;;  %s7338_s14 = sshll.u32 %s7415_s19, 4  ;;  %s7339_s14 = int_to_ptr.vmem [resolvable:$false] %s7338_s14 }
  0x73   : > { %v530_v15 = vmul.f32 %v7660_v14, %v515_v13  ;;  %v571_v18 = vld [vmem:[%s7654_s15 + $0x1] sm:$0xff]  ;;  %v555_v24 = vmul.f32 %v7667_v17, %v4591_v16  ;;  %6442 = vmatpush3.bf16.msra.mxu0 %v6439_v5  ;;  %v4613_v30 = vld [vmem:[%s7654_s15 + $0x1b0] sm:$0xff]  ;;  %s505_s26 = sand.u32 1, %s10061_s24  }
  0x74   : > { %v4603_v26 = vld [vmem:[%s7654_s15 + $0x120] sm:$0xff]  ;;  %v587_v29 = vmul.f32 %v7674_v25, %v571_v18  ;;  %6444 = vmatprep.subr.bf16.mxu0 %v6443_v10  ;;  %v4633_v37 = vld [vmem:[%s7654_s15 + $0x10] sm:$0xff]  ;;  %s4587_s18 = sshll.u32 %s505_s26, 6  ;;  %s9813_s17 = scalar_lea.sflag [#allocation4], %s505_s26 }
  0x75   : > { %v7687_v31 = vld [vmem:[%s9856_s2 + $0x4] ss:$0 sm:$0xff]  ;;  %v563_v33 = vadd.f32 %v555_v24, %v530_v15  ;;  %v620_v34 = vmul.f32 %v7680_v27, %v4603_v26  ;;  %v7694_v36 = vld [vmem:[%s9856_s2 + $0x5] ss:$0 sm:$0xff]  ;;  %v7700_v39 = vld [vmem:[%s9856_s2 + $0x6] ss:$0 sm:$0xff]  ;;  %v531_v42 = vmul.f32 %v4633_v37, %v7660_v14 }
  0x76   : > { %v4623_v35 = vld [vmem:[%s7654_s15 + $0x121] sm:$0xff]  ;;  %v4653_v41 = vld [vmem:[%s7654_s15 + $0x11] sm:$0xff]  ;;  %v653_v44 = vmul.f32 %v7687_v31, %v4613_v30  ;;  %v718_v58 = vmul.f32 %v7700_v39, %v4633_v37  ;;  %s507_s21 = scalar_lea.vmem [#allocation8], %s4587_s18  ;;  %p10064_p7 = scmp.ne.s32.totalorder %s10062_s20, 0 }
  0x77   : > { %v4643_v40 = vld [vmem:[%s7654_s15 + $0xa0] sm:$0xff]  ;;  %v595_v43 = vadd.f32 %v587_v29, %v563_v33  ;;  %v588_v48 = vmul.f32 %v4653_v41, %v7674_v25  ;;  %v4604_v49 = vld [vmem:[%s7654_s15 + $0x130] sm:$0xff]  ;;  %6446 = vmatpush3.bf16.msra.mxu0 %v6443_v10  ;;  %v685_v53 = vmul.f32 %v7694_v36, %v4623_v35  ;;  %v783_v1 = vmul.f32 %v7714_v46, %v4653_v41  ;;  %s4484_s27 = sshll.u32 %s507_s21, 4  ;;  %s9807_s25 = scalar_lea.hbm %s10063_s22, %s4986_s29  ;;  %s9809_s27 = int_to_ptr.vmem [resolvable:$true] %s4484_s27 }
  0x78   : > { %v7709_v45 = vld [vmem:[%s9856_s2 + $0x7] ss:$0 sm:$0xff]  ;;  %v556_v47 = vmul.f32 %v4643_v40, %v7667_v17  ;;  %v4644_v56 = vld [vmem:[%s7654_s15 + $0xb0] sm:$0xff]  ;;  %6448 = vmatprep.subr.bf16.mxu0 %v6447_v32  ;;  %v621_v60 = vmul.f32 %v7680_v27, %v4604_v49  ;;  %s7334_s28 = scalar_lea.vmem %s9809_s27, 1024  ;;  %p7341_p13 = scmp.lt.s32.totalorder %s9809_s27, %s7339_s14 }
  0x79   : > { %v4614_v54 = vld [vmem:[%s7654_s15 + $0x1c0] sm:$0xff]  ;;  %v628_v57 = vadd.f32 %v620_v34, %v595_v43  ;;  %v4624_v61 = vld [vmem:[%s7654_s15 + $0x131] sm:$0xff]  ;;  %v751_v0 = vmul.f32 %v7709_v45, %v4643_v40  ;;  %v557_v3 = vmul.f32 %v4644_v56, %v7667_v17  ;;  %v752_v21 = vmul.f32 %v7709_v45, %v4644_v56  ;;  %p7335_p12 = scmp.ne.s32.totalorder %s9809_s27, %s7334_s28 }
  0x7a   : > { %v4634_v55 = vld [vmem:[%s7654_s15 + $0x20] sm:$0xff]  ;;  %v564_v59 = vadd.f32 %v556_v47, %v531_v42  ;;  %v4615_v4 = vld [vmem:[%s7654_s15 + $0x1d0] sm:$0xff]  ;;  %v654_v7 = vmul.f32 %v7687_v31, %v4614_v54  ;;  %v686_v12 = vmul.f32 %v7694_v36, %v4624_v61 }
  0x7b   : > { %v4654_v62 = vld [vmem:[%s7654_s15 + $0x21] sm:$0xff]  ;;  %v532_v2 = vmul.f32 %v4634_v55, %v7660_v14  ;;  %v661_v5 = vadd.f32 %v653_v44, %v628_v57  ;;  %v4635_v9 = vld [vmem:[%s7654_s15 + $0x30] sm:$0xff]  ;;  %6450 = vmatpush3.bf16.msra.mxu0 %v6447_v32  ;;  %v719_v13 = vmul.f32 %v7700_v39, %v4634_v55  ;;  %v655_v22 = vmul.f32 %v7687_v31, %v4615_v4  ;;  %p7336_p8 = pnand %p7335_p12, %p10064_p7 }
  0x7c   : > { %v4605_v63 = vld [vmem:[%s7654_s15 + $0x140] sm:$0xff]  ;;  %v596_v6 = vadd.f32 %v588_v48, %v564_v59  ;;  %v589_v8 = vmul.f32 %v4654_v62, %v7674_v25  ;;  %v4655_v11 = vld [vmem:[%s7654_s15 + $0x31] sm:$0xff]  ;;  %6452 = vmatprep.subr.bf16.mxu0 %v6451_v38  ;;  %v533_v26 = vmul.f32 %v4635_v9, %v7660_v14  ;;  %v7756_v34 = vmul.f32 %v7714_v46, %v4654_v62 }
  0x7d   : > { %v4645_v10 = vld [vmem:[%s7654_s15 + $0xc0] sm:$0xff]  ;;  %v565_v15 = vadd.f32 %v557_v3, %v532_v2  ;;  %v622_v16 = vmul.f32 %v7680_v27, %v4605_v63  ;;  %v693_v19 = vadd.f32 %v685_v53, %v661_v5  ;;  %v4606_v23 = vld [vmem:[%s7654_s15 + $0x150] sm:$0xff]  ;;  %v590_v29 = vmul.f32 %v4655_v11, %v7674_v25  ;;  %p7337_p11 = pneg %p7336_p8 }
  0x7e   : > { %v4625_v18 = vld [vmem:[%s7654_s15 + $0x141] sm:$0xff]  ;;  %v629_v20 = vadd.f32 %v621_v60, %v596_v6  ;;  %v558_v28 = vmul.f32 %v4645_v10, %v7667_v17  ;;  %v4646_v40 = vld [vmem:[%s7654_s15 + $0xd0] sm:$0xff]  ;;  %v720_v42 = vmul.f32 %v7700_v39, %v4635_v9  ;;  %v623_v44 = vmul.f32 %v7680_v27, %v4606_v23 }
  0x7f   : > { %v597_v24 = vadd.f32 %v589_v8, %v565_v15  ;;  %v4616_v30 = vld [vmem:[%s7654_s15 + $0x1e0] sm:$0xff]  ;;  %v726_v32 = vadd.f32 %v718_v58, %v693_v19  ;;  %v687_v35 = vmul.f32 %v7694_v36, %v4625_v18  ;;  %6454 = vmatpush3.bf16.msra.mxu0 %v6451_v38  ;;  %v4626_v47 = vld [vmem:[%s7654_s15 + $0x151] sm:$0xff]  ;;  %v753_v54 = vmul.f32 %v7709_v45, %v4645_v10 }
  0x80   : > { %v662_v33 = vadd.f32 %v654_v7, %v629_v20  ;;  %v4636_v37 = vld [vmem:[%s7654_s15 + $0x40] sm:$0xff]  ;;  %v566_v43 = vadd.f32 %v558_v28, %v533_v26  ;;  %6456 = vmatprep.subr.bf16.mxu0 %v7719_v50  ;;  %v656_v55 = vmul.f32 %v7687_v31, %v4616_v30  ;;  %v559_v59 = vmul.f32 %v4646_v40, %v7667_v17  ;;  %v4617_v60 = vld [vmem:[%s7654_s15 + $0x1f0] sm:$0xff] }
  0x81   : > { %v630_v41 = vadd.f32 %v622_v16, %v597_v24  ;;  %v4656_v48 = vld [vmem:[%s7654_s15 + $0x41] sm:$0xff]  ;;  %v759_v49 = vadd.f32 %v751_v0, %v726_v32  ;;  %v534_v58 = vmul.f32 %v4636_v37, %v7660_v14  ;;  %v688_v63 = vmul.f32 %v7694_v36, %v4626_v47  ;;  %v4637_v7 = vld [vmem:[%s7654_s15 + $0x50] sm:$0xff] }
  0x82   : > { %v694_v53 = vadd.f32 %v686_v12, %v662_v33  ;;  %v4607_v56 = vld [vmem:[%s7654_s15 + $0x160] sm:$0xff]  ;;  %v598_v57 = vadd.f32 %v590_v29, %v566_v43  ;;  %v591_v0 = vmul.f32 %v4656_v48, %v7674_v25  ;;  %v721_v9 = vmul.f32 %v7700_v39, %v4636_v37  ;;  %v4608_v18 = vld [vmem:[%s7654_s15 + $0x170] sm:$0xff] }
  0x83   : > { %v663_v38 = vadd.f32 %v655_v22, %v630_v41  ;;  %v791_v61 = vadd.f32 %v783_v1, %v759_v49  ;;  %6458 = vmatpush3.bf16.msra.mxu0 %v7719_v50  ;;  %v567_v4 = vadd.f32 %v559_v59, %v534_v58  ;;  %v624_v5 = vmul.f32 %v7680_v27, %v4607_v56  ;;  %v4627_v6 = vld [vmem:[%s7654_s15 + $0x161] sm:$0xff]  ;;  %v4657_v50 = vld [vmem:[%s7654_s15 + $0x51] sm:$0xff] }
  0x84   : > { %v727_v62 = vadd.f32 %v719_v13, %v694_v53  ;;  %v631_v3 = vadd.f32 %v623_v44, %v598_v57  ;;  %v4647_v8 = vld [vmem:[%s7654_s15 + $0xe0] sm:$0xff]  ;;  %6460 = vmatprep.subr.bf16.mxu0 %v7721_v51  ;;  %v785_v1 = vmul.f32 %v7714_v46, %v4655_v11  ;;  %v657_v10 = vmul.f32 %v7687_v31, %v4617_v60  ;;  %v4648_v37 = vld [vmem:[%s7654_s15 + $0xf0] sm:$0xff] }
  0x85   : > { %v695_v2 = vadd.f32 %v687_v35, %v663_v38  ;;  %5526 = vmatprep.mubr.f32.mxu0 %v791_v61  ;;  %v599_v16 = vadd.f32 %v591_v0, %v567_v4  ;;  %v754_v19 = vmul.f32 %v7709_v45, %v4646_v40  ;;  %v689_v20 = vmul.f32 %v7694_v36, %v4627_v6  ;;  %v4618_v28 = vld [vmem:[%s7654_s15 + $0x200] sm:$0xff]  ;;  %v4628_v44 = vld [vmem:[%s7654_s15 + $0x171] sm:$0xff] }
  0x86   : > { %v760_v12 = vadd.f32 %v752_v21, %v727_v62  ;;  %v664_v15 = vadd.f32 %v656_v55, %v631_v3  ;;  %v535_v11 = vmul.f32 %v4637_v7, %v7660_v14  ;;  %v560_v22 = vmul.f32 %v4647_v8, %v7667_v17  ;;  %v4638_v29 = vld [vmem:[%s7654_s15 + $0x60] sm:$0xff]  ;;  %v4619_v57 = vld [vmem:[%s7654_s15 + $0x210] sm:$0xff] }
  0x87   : > { %v728_v13 = vadd.f32 %v720_v42, %v695_v2  ;;  %6462 = vmatpush3.bf16.msra.mxu0 %v7721_v51  ;;  %v632_v21 = vadd.f32 %v624_v5, %v599_v16  ;;  %v592_v26 = vmul.f32 %v4657_v50, %v7674_v25  ;;  %v786_v30 = vmul.f32 %v7714_v46, %v4656_v48  ;;  %v4658_v51 = vld [vmem:[%s7654_s15 + $0x61] sm:$0xff]  ;;  %v4639_v58 = vld [vmem:[%s7654_s15 + $0x70] sm:$0xff] }
  0x88   : > { %v696_v24 = vadd.f32 %v688_v63, %v664_v15  ;;  %6464 = vmatprep.subr.bf16.mxu0 %v7723_v52  ;;  %v722_v32 = vmul.f32 %v7700_v39, %v4637_v7  ;;  %v568_v33 = vadd.f32 %v560_v22, %v535_v11  ;;  %v625_v35 = vmul.f32 %v7680_v27, %v4608_v18  ;;  %v4649_v62 = vld [vmem:[%s7654_s15 + $0x100] sm:$0xff]  ;;  %v4659_v63 = vld [vmem:[%s7654_s15 + $0x71] sm:$0xff] }
  0x89   : > { %v761_v23 = vadd.f32 %v753_v54, %v728_v13  ;;  %v792_v40 = vadd.f32 %v7756_v34, %v760_v12  ;;  %v665_v42 = vadd.f32 %v657_v10, %v632_v21  ;;  %v755_v43 = vmul.f32 %v7709_v45, %v4647_v8  ;;  %v4609_v54 = vld [vmem:[%s7654_s15 + $0x180] sm:$0xff] }
  0x8a   : > { %v729_v41 = vadd.f32 %v721_v9, %v696_v24  ;;  %v600_v48 = vadd.f32 %v592_v26, %v568_v33  ;;  %v658_v49 = vmul.f32 %v7687_v31, %v4618_v28  ;;  %v536_v53 = vmul.f32 %v4638_v29, %v7660_v14  ;;  %v4629_v4 = vld [vmem:[%s7654_s15 + $0x181] sm:$0xff] }
  0x8b   : > { %v793_v47 = vadd.f32 %v785_v1, %v761_v23  ;;  %6466 = vmatpush3.bf16.msra.mxu0 %v7723_v52  ;;  %v697_v34 = vadd.f32 %v689_v20, %v665_v42  ;;  %v561_v56 = vmul.f32 %v4648_v37, %v7667_v17  ;;  %v593_v38 = vmul.f32 %v4658_v51, %v7674_v25  ;;  %v4610_v1 = vld [vmem:[%s7654_s15 + $0x190] sm:$0xff]  ;;  %v4620_v18 = vld [vmem:[%s7654_s15 + $0x220] sm:$0xff] }
  0x8c   : > { %v762_v55 = vadd.f32 %v754_v19, %v729_v41  ;;  %v787_v59 = vmul.f32 %v7714_v46, %v4657_v50  ;;  %v633_v60 = vadd.f32 %v625_v35, %v600_v48  ;;  %v690_v61 = vmul.f32 %v7694_v36, %v4628_v44 }
  0x8d   : > { %v730_v0 = vadd.f32 %v722_v32, %v697_v34  ;;  %v723_v52 = vmul.f32 %v7700_v39, %v4638_v29  ;;  %v569_v2 = vadd.f32 %v561_v56, %v536_v53  ;;  %v626_v3 = vmul.f32 %v7680_v27, %v4609_v54  ;;  %v4640_v29 = vld [vmem:[%s7654_s15 + $0x80] sm:$0xff]  ;;  %v957_v34 = vld [vmem:[#allocation5 + $0x8] sm:$0xff] }
  0x8e   : > { %5527 = vmatmul.mubr.f32.vlgmr.msra.gmra.mrb[0].mxu0 %v792_v40  ;;  %v794_v5 = vadd.f32 %v786_v30, %v762_v55  ;;  %v666_v6 = vadd.f32 %v658_v49, %v633_v60  ;;  %v659_v7 = vmul.f32 %v7687_v31, %v4619_v57  ;;  %v537_v8 = vmul.f32 %v4639_v58, %v7660_v14  ;;  %v956_v55 = vld [vmem:[#allocation5] sm:$0xff]  ;;  %v959_v57 = vld [vmem:[#allocation5 + $0x18] sm:$0xff]  ;;  %v962_v60 = vld [vmem:[#allocation5 + $0x30] sm:$0xff] }
  0x8f   : > { %5529 = vmatprep.mubr.f32.mxu0 %v793_v47  ;;  %v763_v9 = vadd.f32 %v755_v43, %v730_v0  ;;  %v601_v10 = vadd.f32 %v593_v38, %v569_v2  ;;  %v562_v50 = vmul.f32 %v4649_v62, %v7667_v17  ;;  %v594_v12 = vmul.f32 %v4659_v63, %v7674_v25  ;;  %v4630_v17 = vld [vmem:[%s7654_s15 + $0x191] sm:$0xff]  ;;  %v4660_v43 = vld [vmem:[%s7654_s15 + $0x81] sm:$0xff] }
  0x90   : > { %v698_v13 = vadd.f32 %v690_v61, %v666_v6  ;;  %v756_v15 = vmul.f32 %v7709_v45, %v4648_v37  ;;  %v691_v16 = vmul.f32 %v7694_v36, %v4629_v4  ;;  %v627_v14 = vmul.f32 %v7680_v27, %v4610_v1  ;;  %v4650_v37 = vld [vmem:[%s7654_s15 + $0x110] sm:$0xff]  ;;  %v963_v61 = vld [vmem:[#allocation5 + $0x38] sm:$0xff]  ;;  %v965_v0 = vld [vmem:[#allocation5 + $0x48] sm:$0xff]  ;;  %s7340_s15 = scalar_lea.vmem %s7339_s14, 2048 }
  0x91   : > { %v795_v19 = vadd.f32 %v787_v59, %v763_v9  ;;  %v634_v20 = vadd.f32 %v626_v3, %v601_v10  ;;  %v570_v11 = vadd.f32 %v562_v50, %v537_v8  ;;  %v788_v23 = vmul.f32 %v7714_v46, %v4658_v51  ;;  %v958_v38 = vld [vmem:[#allocation5 + $0x10] sm:$0xff]  ;;  %v967_v3 = vld [vmem:[#allocation5 + $0x58] sm:$0xff]  ;;  %v969_v6 = vld [vmem:[#allocation5 + $0x68] sm:$0xff]  ;;  %p7342_p1 = scmp.lt.s32.totalorder %s7340_s15, %s7334_s28 }
  0x92   : > { %5530 = vmatmul.mubr.f32.gmra.mrb[2].mxu0 %v794_v5  ;;  %v731_v22 = vadd.f32 %v723_v52, %v698_v13  ;;  %v724_v24 = vmul.f32 %v7700_v39, %v4639_v58  ;;  %v660_v26 = vmul.f32 %v7687_v31, %v4620_v18  ;;  %v757_v32 = vmul.f32 %v7709_v45, %v4649_v62  ;;  %v961_v58 = vld [vmem:[#allocation5 + $0x28] sm:$0xff]  ;;  %v966_v2 = vld [vmem:[#allocation5 + $0x50] sm:$0xff]  ;;  %v968_v5 = vld [vmem:[#allocation5 + $0x60] sm:$0xff] }
  0x93   : > { %5532 = vmatprep.mubr.f32.mxu0 %v795_v19  ;;  %v667_v25 = vadd.f32 %v659_v7, %v634_v20  ;;  %v602_v21 = vadd.f32 %v594_v12, %v570_v11  ;;  %v692_v33 = vmul.f32 %v7694_v36, %v4630_v17  ;;  %v789_v40 = vmul.f32 %v7714_v46, %v4659_v63  ;;  %v964_v63 = vld [vmem:[#allocation5 + $0x40] sm:$0xff]  ;;  %v970_v8 = vld [vmem:[#allocation5 + $0x70] sm:$0xff]  ;;  %v971_v1 = vld [vmem:[#allocation5 + $0x78] sm:$0xff]  ;;  %p7343_p6 = por %p7342_p1, %p7341_p13 }
  0x94   : > { %v764_v28 = vadd.f32 %v756_v15, %v731_v22  ;;  %v725_v42 = vmul.f32 %v7700_v39, %v4640_v29  ;;  %v758_v47 = vmul.f32 %v7709_v45, %v4650_v37  ;;  %v790_v53 = vmul.f32 %v7714_v46, %v4660_v43  ;;  %v960_v46 = vld [vmem:[#allocation5 + $0x20] sm:$0xff] }
  0x95   : > { %v699_v30 = vadd.f32 %v691_v16, %v667_v25  ;;  %v635_v27 = vadd.f32 %v627_v14, %v602_v21  ;;  %v9896_v56 = vmov 0.0|0.0   ;;  %v6468_v39 = vpack.c.bf16 %v957_v34, %v956_v55  ;;  %p7344_p9 = pnand %p7343_p6, %p7337_p11 }
  0x96   : > { %v796_v35 = vadd.f32 %v788_v23, %v764_v28  ;;  %6467 = vmatprep.subr.bf16.mxu1 %v9896_v56  ;;  %v6471_v45 = vpack.c.bf16 %v959_v57, %v958_v38  ;;  %v6474_v59 = vpack.c.bf16 %v961_v58, %v960_v46  ;;  %v6477_v62 = vpack.c.bf16 %v963_v61, %v962_v60  ;;  %v4666_v46 = vld [vmem:[%s9861_s7 + $0x88] sm:$0xff] }
  0x97   : > { %v732_v51 = vadd.f32 %v724_v24, %v699_v30  ;;  %v668_v41 = vadd.f32 %v660_v26, %v635_v27  ;;  %6469 = vmatpush3.bf16.msra.mxu1 %v6468_v39  ;;  %v6480_v52 = vpack.c.bf16 %v965_v0, %v964_v63  ;;  %v6483_v4 = vpack.c.bf16 %v967_v3, %v966_v2  ;;  %v1157_v60 = vld [vmem:[%s9861_s7 + $0x8] sm:$0xff]  ;;  %v4668_v63 = vld [vmem:[%s9861_s7 + $0x98] sm:$0xff] }
  0x98   : > { %5533 = vmatmul.mubr.f32.gmra.mrb[4].mxu0 %v796_v35  ;;  %6470 = vmatprep.subr.bf16.mxu1 %v9896_v56  ;;  %v6486_v7 = vpack.c.bf16 %v969_v6, %v968_v5  ;;  %v9883_v9 = vmov 0.0   ;;  %v6489_v10 = vpack.c.bf16 %v971_v1, %v970_v8  ;;  %v1159_v2 = vld [vmem:[%s9861_s7 + $0x18] sm:$0xff]  ;;  %v4670_v5 = vld [vmem:[%s9861_s7 + $0xa8] sm:$0xff]  ;;  %v1277_v1 = vld [vmem:[%s9855_s1] sm:$0xff] }
  0x99   : > { %v765_v44 = vadd.f32 %v757_v32, %v732_v51  ;;  %v700_v31 = vadd.f32 %v692_v33, %v668_v41  ;;  %5570 = vmatprep.mubr.msk.f32.mxu1 %vm7412_vm0, %v9883_v9  ;;  %v1161_v8 = vld [vmem:[%s9861_s7 + $0x28] sm:$0xff] }
  0x9b   : > { %v797_v48 = vadd.f32 %v789_v40, %v765_v44  ;;  %v733_v49 = vadd.f32 %v725_v42, %v700_v31  ;;  %6472 = vmatpush3.bf16.msra.mxu1 %v6471_v45  ;;  %v4665_v45 = vld [vmem:[%s9861_s7 + $0x80] sm:$0xff] }
  0x9c   : > { %6473 = vmatprep.subr.bf16.mxu1 %v9896_v56  ;;  %v6523_v58 = vpack.c.bf16 %v4666_v46, %v4665_v45  ;;  %v1170_v45 = vld [vmem:[%s9861_s7 + $0x70] sm:$0xff]  ;;  %v1171_v46 = vld [vmem:[%s9861_s7 + $0x78] sm:$0xff] }
  0x9d   : > { %5535 = vmatprep.mubr.f32.mxu0 %v797_v48  ;;  %v766_v36 = vadd.f32 %v758_v47, %v733_v49 }
  0x9f   : > { %v798_v54 = vadd.f32 %v790_v53, %v766_v36  ;;  %6475 = vmatpush3.bf16.msra.mxu1 %v6474_v59  ;;  %v1156_v59 = vld [vmem:[%s9861_s7] sm:$0xff] }
  0xa0   : > { %6476 = vmatprep.subr.bf16.mxu1 %v9896_v56  ;;  %v6491_v61 = vpack.c.bf16 %v1157_v60, %v1156_v59  ;;  %v4684_v59 = vld [vmem:[%s9855_s1 + $0x58] sm:$0xff]  ;;  %v6519_v60 = vpack.c.bf16 %v1171_v46, %v1170_v45 }
  0xa1   : > { %5536 = vmatmul.mubr.f32.gmra.mrb[6].mxu0 %v798_v54 }
  0xa2   : > { %6492 = vmatprep.subr.bf16.mxu0 %v6491_v61 }
  0xa3   : > { %6478 = vmatpush3.bf16.msra.mxu1 %v6477_v62  ;;  %v4667_v62 = vld [vmem:[%s9861_s7 + $0x90] sm:$0xff]  ;;  %6494 = vmatpush3.bf16.msra.mxu0 %v6491_v61 }
  0xa4   : > { %6479 = vmatprep.subr.bf16.mxu1 %v9896_v56  ;;  %v6527_v0 = vpack.c.bf16 %v4668_v63, %v4667_v62  ;;  %v4707_v61 = vld [vmem:[%s9855_s1 + $0x90] sm:$0xff]  ;;  %v4713_v62 = vld [vmem:[%s9861_s7 + $0x180] sm:$0xff]  ;;  %v4714_v63 = vld [vmem:[%s9861_s7 + $0x188] sm:$0xff] }
  0xa7   : > { %6481 = vmatpush3.bf16.msra.mxu1 %v6480_v52  ;;  %v1158_v52 = vld [vmem:[%s9861_s7 + $0x10] sm:$0xff] }
  0xa8   : > { %6482 = vmatprep.subr.bf16.mxu1 %v9896_v56  ;;  %v6495_v3 = vpack.c.bf16 %v1159_v2, %v1158_v52  ;;  %v4729_v52 = vld [vmem:[%s9855_s1 + $0xc0] sm:$0xff] }
  0xa9   : > { %v4689_v2 = vld [vmem:[%s9861_s7 + $0x100] sm:$0xff] }
  0xaa   : > { %6496 = vmatprep.subr.bf16.mxu0 %v6495_v3 }
  0xab   : > { %6484 = vmatpush3.bf16.msra.mxu1 %v6483_v4  ;;  %v4669_v4 = vld [vmem:[%s9861_s7 + $0xa0] sm:$0xff]  ;;  %6498 = vmatpush3.bf16.msra.mxu0 %v6495_v3  ;;  %v4690_v3 = vld [vmem:[%s9861_s7 + $0x108] sm:$0xff] }
  0xac   : > { %6485 = vmatprep.subr.bf16.mxu1 %v9896_v56  ;;  %v6531_v6 = vpack.c.bf16 %v4670_v5, %v4669_v4  ;;  %v8037_v4 = vpack.c.bf16 %v4690_v3, %v4689_v2  ;;  %v4730_v5 = vld [vmem:[%s9855_s1 + $0xc8] sm:$0xff] }
  0xaf   : > { %6487 = vmatpush3.bf16.msra.mxu1 %v6486_v7  ;;  %v1160_v7 = vld [vmem:[%s9861_s7 + $0x20] sm:$0xff] }
  0xb0   : > { %6488 = vmatprep.subr.bf16.mxu1 %v9896_v56 }
  0xb3   : > { %6490 = vmatpush3.bf16.msra.mxu1 %v6489_v10  ;;  %v6499_v10 = vpack.c.bf16 %v1161_v8, %v1160_v7  ;;  %v4685_v7 = vld [vmem:[%s9855_s1 + $0x60] sm:$0xff]  ;;  %v4708_v8 = vld [vmem:[%s9855_s1 + $0x98] sm:$0xff] }
  0xb4   : > { %6524 = vmatprep.subr.bf16.mxu1 %v6523_v58 }
  0xb5   : > { %6500 = vmatprep.subr.bf16.mxu0 %v6499_v10 }
  0xb6   : > { %6502 = vmatpush3.bf16.msra.mxu0 %v6499_v10  ;;  %v1282_v10 = vld [vmem:[%s9855_s1 + $0x28] sm:$0xff] }
 0x161   : > { %v7849_v50 = vpop.f32.mrb[0].mxu0 }
 0x162   : > { %v934_v12 = vmul.f32 %v7849_v50, %v7849_v50  ;;  %v7853_v13 = vpop.f32.mrb[1].mxu0 }
 0x163   : > { %v920_v15 = vadd.f32 %v7849_v50, %v7853_v13  ;;  %v933_v16 = vmul.f32 %v7853_v13, %v7853_v13 }
 0x165   : > { %v941_v18 = vadd.f32 %v934_v12, %v933_v16  ;;  %v7859_v19 = vpop.f32.mrb[2].mxu0  ;;  %v4671_v12 = vld [vmem:[%s9861_s7 + $0xb0] sm:$0xff]  ;;  %v7414_v16 = vmov 0  }
 0x166   : > { %v7861_v20 = vpop.f32.mrb[3].mxu0  ;;  %v936_v22 = vmul.f32 %v7859_v19, %v7859_v19  ;;  %7194 = vset.pattern.permute.xlu0 %v7414_v16  ;;  %7195 = vset.pattern.permute.xlu1 %v7414_v16  ;;  %v4732_v16 = vld [vmem:[%s9855_s1 + $0xd8] sm:$0xff] }
 0x167   : > { %v921_v11 = vadd.f32 %v920_v15, %v7861_v20  ;;  %v935_v14 = vmul.f32 %v7861_v20, %v7861_v20  ;;  %v4672_v15 = vld [vmem:[%s9861_s7 + $0xb8] sm:$0xff]  ;;  %1287 = vperm.xlu0 %7194, %v1277_v1   ;;  %v4731_v1 = vld [vmem:[%s9855_s1 + $0xd0] sm:$0xff] }
 0x169   : > { %v942_v23 = vadd.f32 %v941_v18, %v935_v14  ;;  %v922_v17 = vadd.f32 %v7859_v19, %v921_v11  ;;  %v6535_v18 = vpack.c.bf16 %v4672_v15, %v4671_v12  ;;  %v4681_v11 = vld [vmem:[%s9855_s1 + $0x40] sm:$0xff]  ;;  %v1162_v14 = vld [vmem:[%s9861_s7 + $0x30] sm:$0xff]  ;;  %v4686_v12 = vld [vmem:[%s9855_s1 + $0x68] sm:$0xff] }
 0x16a   : > { %1466 = vperm.xlu1 %7195, %v4681_v11   ;;  %v4709_v15 = vld [vmem:[%s9855_s1 + $0xa0] sm:$0xff]  ;;  %v4770_v11 = vld [vmem:[%s9855_s1 + $0x148] sm:$0xff] }
 0x16b   : > { %v7869_v25 = vpop.f32.mrb[4].mxu0  ;;  %v943_v24 = vadd.f32 %v942_v23, %v936_v22  ;;  %v1163_v22 = vld [vmem:[%s9861_s7 + $0x38] sm:$0xff] }
 0x16c   : > { %v7871_v21 = vpop.f32.mrb[5].mxu0  ;;  %v938_v29 = vmul.f32 %v7869_v25, %v7869_v25  ;;  %v6503_v23 = vpack.c.bf16 %v1163_v22, %v1162_v14  ;;  %v1283_v14 = vld [vmem:[%s9855_s1 + $0x30] sm:$0xff] }
 0x16d   : > { %v923_v26 = vadd.f32 %v922_v17, %v7871_v21  ;;  %v937_v28 = vmul.f32 %v7871_v21, %v7871_v21  ;;  %v4673_v17 = vld [vmem:[%s9861_s7 + $0xc0] sm:$0xff]  ;;  %v4687_v22 = vld [vmem:[%s9855_s1 + $0x70] sm:$0xff] }
 0x16e   : > { %6504 = vmatprep.subr.bf16.mxu0 %v6503_v23 }
 0x16f   : > { %v944_v30 = vadd.f32 %v943_v24, %v937_v28  ;;  %v924_v32 = vadd.f32 %v7869_v25, %v923_v26  ;;  %v4674_v24 = vld [vmem:[%s9861_s7 + $0xc8] sm:$0xff]  ;;  %6506 = vmatpush3.bf16.msra.mxu0 %v6503_v23 }
 0x170   : > { %v1278_v26 = vld [vmem:[%s9855_s1 + $0x8] sm:$0xff]  ;;  %v6539_v28 = vpack.c.bf16 %v4674_v24, %v4673_v17  ;;  %v4733_v17 = vld [vmem:[%s9855_s1 + $0xe0] sm:$0xff]  ;;  %v4771_v24 = vld [vmem:[%s9855_s1 + $0x150] sm:$0xff] }
 0x171   : > { %v945_v27 = vadd.f32 %v944_v30, %v938_v29  ;;  %v1164_v29 = vld [vmem:[%s9861_s7 + $0x40] sm:$0xff]  ;;  %v1165_v30 = vld [vmem:[%s9861_s7 + $0x48] sm:$0xff]  ;;  %1292 = vperm.xlu0 %7194, %v1278_v26  }
 0x172   : > { %v4710_v23 = vld [vmem:[%s9855_s1 + $0xa8] sm:$0xff]  ;;  %v4793_v26 = vld [vmem:[%s9855_s1 + $0x180] sm:$0xff] }
 0x174   : > { %v7879_v33 = vpop.f32.mrb[6].mxu0 }
 0x175   : > { %v7881_v35 = vpop.f32.mrb[7].mxu0  ;;  %v940_v40 = vmul.f32 %v7879_v33, %v7879_v33 }
 0x176   : > { %v925_v37 = vadd.f32 %v924_v32, %v7881_v35  ;;  %v939_v51 = vmul.f32 %v7881_v35, %v7881_v35  ;;  %v4675_v32 = vld [vmem:[%s9861_s7 + $0xd0] sm:$0xff] }
 0x178   : > { %v926_v41 = vadd.f32 %v7879_v33, %v925_v37  ;;  %v946_v42 = vadd.f32 %v945_v27, %v939_v51  ;;  %v4676_v27 = vld [vmem:[%s9861_s7 + $0xd8] sm:$0xff]  ;;  %v4682_v37 = vld [vmem:[%s9855_s1 + $0x48] sm:$0xff]  ;;  %v6507_v51 = vpack.c.bf16 %v1165_v30, %v1164_v29 }
 0x179   : > { %1471 = vperm.xlu1 %7195, %v4682_v37   ;;  %v1284_v29 = vld [vmem:[%s9855_s1 + $0x38] sm:$0xff] }
 0x17a   : > { %v927_v43 = vrot.slane %v926_v41, 4  ;;  %v947_v44 = vadd.f32 %v946_v42, %v940_v40  ;;  %v6543_v40 = vpack.c.bf16 %v4676_v27, %v4675_v32  ;;  %v1167_v42 = vld [vmem:[%s9861_s7 + $0x58] sm:$0xff]  ;;  %6508 = vmatprep.subr.bf16.mxu0 %v6507_v51  ;;  %v4711_v32 = vld [vmem:[%s9855_s1 + $0xb0] sm:$0xff]  ;;  %v4734_v27 = vld [vmem:[%s9855_s1 + $0xe8] sm:$0xff] }
 0x17b   : > { %6510 = vmatpush3.bf16.msra.mxu0 %v6507_v51  ;;  %v4688_v30 = vld [vmem:[%s9855_s1 + $0x78] sm:$0xff]  ;;  %v4795_v51 = vld [vmem:[%s9855_s1 + $0x190] sm:$0xff] }
 0x17c   : > { %v928_v31 = vadd.f32 %v927_v43, %v926_v41  ;;  %v948_v47 = vrot.slane %v947_v44, 4  ;;  %v1166_v41 = vld [vmem:[%s9861_s7 + $0x50] sm:$0xff]  ;;  %v4772_v37 = vld [vmem:[%s9855_s1 + $0x158] sm:$0xff] }
 0x17d   : > { %v1279_v43 = vld [vmem:[%s9855_s1 + $0x10] sm:$0xff] }
 0x17e   : > { %v929_v48 = vrot.slane %v928_v31, 2  ;;  %v949_v49 = vadd.f32 %v948_v47, %v947_v44  ;;  %v4677_v44 = vld [vmem:[%s9861_s7 + $0xe0] sm:$0xff]  ;;  %v4683_v47 = vld [vmem:[%s9855_s1 + $0x50] sm:$0xff]  ;;  %1297 = vperm.xlu0 %7194, %v1279_v43  }
 0x17f   : > { %1476 = vperm.xlu1 %7195, %v4683_v47   ;;  %v4735_v43 = vld [vmem:[%s9855_s1 + $0xf0] sm:$0xff] }
 0x180   : > { %v930_v53 = vadd.f32 %v929_v48, %v928_v31  ;;  %v950_v36 = vrot.slane %v949_v49, 2  ;;  %v4678_v31 = vld [vmem:[%s9861_s7 + $0xe8] sm:$0xff]  ;;  %v6511_v48 = vpack.c.bf16 %v1167_v42, %v1166_v41  ;;  %v4712_v42 = vld [vmem:[%s9855_s1 + $0xb8] sm:$0xff]  ;;  %v4819_v47 = vld [vmem:[%s9855_s1 + $0x1d0] sm:$0xff] }
 0x181   : > { %v4818_v41 = vld [vmem:[%s9855_s1 + $0x1c8] sm:$0xff] }
 0x182   : > { %v931_v54 = vrot.slane %v930_v53, 1  ;;  %v951_v55 = vadd.f32 %v950_v36, %v949_v49  ;;  %v6547_v49 = vpack.c.bf16 %v4678_v31, %v4677_v44  ;;  %v1169_v36 = vld [vmem:[%s9861_s7 + $0x68] sm:$0xff]  ;;  %6512 = vmatprep.subr.bf16.mxu0 %v6511_v48  ;;  %v4773_v44 = vld [vmem:[%s9855_s1 + $0x160] sm:$0xff]  ;;  %v4796_v31 = vld [vmem:[%s9855_s1 + $0x198] sm:$0xff] }
 0x183   : > { %6514 = vmatpush3.bf16.msra.mxu0 %v6511_v48  ;;  %v1058_v48 = vlaneseq }
 0x184   : > { %v952_v34 = vrot.slane %v951_v55, 1  ;;  %v932_v39 = vadd.f32 %v931_v54, %v930_v53  ;;  %v1168_v53 = vld [vmem:[%s9861_s7 + $0x60] sm:$0xff] }
 0x185   : > { %v4705_v54 = vld [vmem:[%s9855_s1 + $0x80] sm:$0xff] }
 0x186   : > { %v953_v38 = vadd.f32 %v952_v34, %v951_v55  ;;  %v4679_v55 = vld [vmem:[%s9861_s7 + $0xf0] sm:$0xff]  ;;  %v4680_v34 = vld [vmem:[%s9861_s7 + $0xf8] sm:$0xff]  ;;  %1670 = vperm.xlu0 %7194, %v4705_v54  }
 0x187   : > { %v4736_v54 = vld [vmem:[%s9855_s1 + $0xf8] sm:$0xff] }
 0x188   : > { %v955_v57 = vsel %vm954_vm1, %v932_v39, %v953_v38  ;;  %v4706_v39 = vld [vmem:[%s9855_s1 + $0x88] sm:$0xff]  ;;  %v6515_v38 = vpack.c.bf16 %v1169_v36, %v1168_v53  ;;  %v8139_v36 = vshrl.u32 %v1058_v48, 7 }
 0x189   : > { %5571 = vmatmul.mubr.f32.vlgmr.msra.gmra.mrb[0].mxu1 %v955_v57  ;;  %v6551_v57 = vpack.c.bf16 %v4680_v34, %v4679_v55  ;;  %1675 = vperm.xlu1 %7195, %v4706_v39   ;;  %v4842_v53 = vld [vmem:[%s9855_s1 + $0x208] sm:$0xff]  ;;  %v4797_v39 = vld [vmem:[%s9855_s1 + $0x1a0] sm:$0xff] }
 0x18a   : > { %6526 = vmatpush3.bf16.msra.mxu1 %v6523_v58  ;;  %v1280_v58 = vld [vmem:[%s9855_s1 + $0x18] sm:$0xff]  ;;  %6516 = vmatprep.subr.bf16.mxu0 %v6515_v38  ;;  %v4774_v55 = vld [vmem:[%s9855_s1 + $0x168] sm:$0xff]  ;;  %v8148_v34 = vsub.s32 0, %v8139_v36  ;;  %vm1147_vm2 = vcmp.lt.s32.totalorder %v8139_v36, 1  ;;  %vm1528_vm3 = vcmp.lt.s32.totalorder %v8139_v36, 7 }
 0x18b   : > { %6528 = vmatprep.subr.bf16.mxu1 %v6527_v0  ;;  %1302 = vperm.xlu0 %7194, %v1280_v58  }
 0x18c   : > { %6518 = vmatpush3.bf16.msra.mxu0 %v6515_v38  ;;  %9957 = vst [vmem:[#allocation20_spill] sm:$0xff] %v8148_v34 }
 0x18d   : > { %1481 = vperm.xlu1 %7195, %v4684_v59   ;;  %6520 = vmatprep.subr.bf16.mxu0 %v6519_v60 }
 0x18e   : > { %6530 = vmatpush3.bf16.msra.mxu1 %v6527_v0  ;;  %v8025_v0 = vpack.c.bf16 %v4714_v63, %v4713_v62  ;;  %v4843_v63 = vld [vmem:[%s9855_s1 + $0x210] sm:$0xff] }
 0x18f   : > { %6532 = vmatprep.subr.bf16.mxu1 %v6531_v6  ;;  %1680 = vperm.xlu0 %7194, %v4707_v61  }
 0x190   : > { %6522 = vmatpush3.bf16.msra.mxu0 %v6519_v60 }
 0x191   : > { %1857 = vperm.xlu1 %7195, %v4729_v52   ;;  %6556 = vmatprep.subr.bf16.mxu0 %v8037_v4 }
 0x192   : > { %6534 = vmatpush3.bf16.msra.mxu1 %v6531_v6  ;;  %v1281_v6 = vld [vmem:[%s9855_s1 + $0x20] sm:$0xff] }
 0x193   : > { %6536 = vmatprep.subr.bf16.mxu1 %v6535_v18  ;;  %1862 = vperm.xlu0 %7194, %v4730_v5  }
 0x195   : > { %1307 = vperm.xlu1 %7195, %v1281_v6  }
 0x196   : > { %6538 = vmatpush3.bf16.msra.mxu1 %v6535_v18  ;;  %v4769_v18 = vld [vmem:[%s9855_s1 + $0x140] sm:$0xff] }
 0x197   : > { %6540 = vmatprep.subr.bf16.mxu1 %v6539_v28  ;;  %1486 = vperm.xlu0 %7194, %v4685_v7   ;;  %v4799_v7 = vld [vmem:[%s9855_s1 + $0x1b0] sm:$0xff] }
 0x199   : > { %1685 = vperm.xlu1 %7195, %v4708_v8   ;;  %v4822_v8 = vld [vmem:[%s9855_s1 + $0x1e8] sm:$0xff] }
 0x19a   : > { %6542 = vmatpush3.bf16.msra.mxu1 %v6539_v28  ;;  %v4794_v28 = vld [vmem:[%s9855_s1 + $0x188] sm:$0xff] }
 0x19b   : > { %6544 = vmatprep.subr.bf16.mxu1 %v6543_v40  ;;  %1867 = vperm.xlu0 %7194, %v4731_v1   ;;  %v4663_v1 = vld [vmem:[%s9859_s5] ss:$0 sm:$0xff] }
 0x19d   : > { %1312 = vperm.xlu1 %7195, %v1282_v10   ;;  %v4845_v10 = vld [vmem:[%s9855_s1 + $0x220] sm:$0xff] }
 0x19e   : > { %6546 = vmatpush3.bf16.msra.mxu1 %v6543_v40  ;;  %v4817_v40 = vld [vmem:[%s9855_s1 + $0x1c0] sm:$0xff] }
 0x19f   : > { %6548 = vmatprep.subr.bf16.mxu1 %v6547_v49  ;;  %1491 = vperm.xlu0 %7194, %v4686_v12   ;;  %v8196_v12 = vsub.s32 1, %v8139_v36  ;;  %v4928_v36 = vld [vmem:[%s9865_s11 + $0x2e8] sm:$0xff] }
 0x1a1   : > { %1690 = vperm.xlu1 %7195, %v4709_v15   ;;  %9958 = vst [vmem:[#allocation21_spill] sm:$0xff] %v8196_v12  ;;  %v4800_v15 = vld [vmem:[%s9855_s1 + $0x1b8] sm:$0xff] }
 0x1a2   : > { %6550 = vmatpush3.bf16.msra.mxu1 %v6547_v49  ;;  %v4841_v49 = vld [vmem:[%s9855_s1 + $0x200] sm:$0xff] }
 0x1a3   : > { %6552 = vmatprep.subr.bf16.mxu1 %v6551_v57  ;;  %1872 = vperm.xlu0 %7194, %v4732_v16  }
 0x1a5   : > { %2174 = vperm.xlu1 %7195, %v4769_v18  }
 0x1a6   : > { %6554 = vmatpush3.bf16.msra.mxu1 %v6551_v57  ;;  %v4820_v57 = vld [vmem:[%s9855_s1 + $0x1d8] sm:$0xff] }
 0x1a7   : > { %6588 = vmatprep.subr.bf16.mxu1 %v8025_v0  ;;  %2179 = vperm.xlu0 %7194, %v4770_v11   ;;  %v4823_v11 = vld [vmem:[%s9855_s1 + $0x1f0] sm:$0xff] }
 0x1a9   : > { %1317 = vperm.xlu1 %7195, %v1283_v14  }
 0x1ab   : > { %1496 = vperm.xlu0 %7194, %v4687_v22   ;;  %v4664_v22 = vld [vmem:[%s9860_s6] ss:$0 sm:$0xff] }
 0x1ad   : > { %1695 = vperm.xlu1 %7195, %v4710_v23   ;;  %v4846_v23 = vld [vmem:[%s9855_s1 + $0x228] sm:$0xff] }
 0x1af   : > { %1877 = vperm.xlu0 %7194, %v4733_v17  }
 0x1b1   : > { %2184 = vperm.xlu1 %7195, %v4771_v24  }
 0x1b3   : > { %2361 = vperm.xlu0 %7194, %v4793_v26  }
 0x1b5   : > { %2366 = vperm.xlu1 %7195, %v4794_v28  }
 0x1b7   : > { %1322 = vperm.xlu0 %7194, %v1284_v29  }
 0x1b9   : > { %1501 = vperm.xlu1 %7195, %v4688_v30  }
 0x1bb   : > { %1700 = vperm.xlu0 %7194, %v4711_v32  }
 0x1bd   : > { %1882 = vperm.xlu1 %7195, %v4734_v27  }
 0x1bf   : > { %2189 = vperm.xlu0 %7194, %v4772_v37   ;;  %v4824_v37 = vld [vmem:[%s9855_s1 + $0x1f8] sm:$0xff] }
 0x1c1   : > { %2371 = vperm.xlu1 %7195, %v4795_v51  }
 0x1c3   : > { %2548 = vperm.xlu0 %7194, %v4817_v40  }
 0x1c5   : > { %2553 = vperm.xlu1 %7195, %v4818_v41  }
 0x1c7   : > { %1705 = vperm.xlu0 %7194, %v4712_v42  }
 0x1c9   : > { %1887 = vperm.xlu1 %7195, %v4735_v43  }
 0x1cb   : > { %2194 = vperm.xlu0 %7194, %v4773_v44  }
 0x1cd   : > { %2376 = vperm.xlu1 %7195, %v4796_v31   ;;  %v4847_v31 = vld [vmem:[%s9855_s1 + $0x230] sm:$0xff] }
 0x1cf   : > { %2558 = vperm.xlu0 %7194, %v4819_v47  }
 0x1d1   : > { %2735 = vperm.xlu1 %7195, %v4841_v49  }
 0x1d3   : > { %2740 = vperm.xlu0 %7194, %v4842_v53  }
 0x1d5   : > { %1892 = vperm.xlu1 %7195, %v4736_v54  }
 0x1d7   : > { %2199 = vperm.xlu0 %7194, %v4774_v55  }
 0x1d9   : > { %2381 = vperm.xlu1 %7195, %v4797_v39   ;;  %v4848_v39 = vld [vmem:[%s9855_s1 + $0x238] sm:$0xff] }
 0x1db   : > { %2563 = vperm.xlu0 %7194, %v4820_v57  }
 0x1dd   : > { %2745 = vperm.xlu1 %7195, %v4843_v63  }
 0x25c   : > { %v1038_v38 = vpop.f32.mrb[0].mxu1 }
 0x25d   : > { %v1042_v45 = vmul.f32 %v1038_v38, %v1038_v38  ;;  %v1061_v46 = vrot.slane %v1038_v38, %v8148_v34  ;;  %v5572_v58 = vpop.f32.mrb[1].mxu1 }
 0x25f   : > { %v1044_v59 = vrot.slane %v1042_v45, 7  ;;  %v1069_v60 = vsub.f32 %v7879_v33, %v1061_v46  ;;  %v1062_v61 = vsub.f32 %v7853_v13, %v1061_v46  ;;  %v1063_v62 = vsub.f32 %v7849_v50, %v1061_v46  ;;  %v4775_v33 = vld [vmem:[%s9855_s1 + $0x170] sm:$0xff] }
 0x260   : > { %v1068_v52 = vsub.f32 %v7881_v35, %v1061_v46  ;;  %v1064_v2 = vsub.f32 %v7861_v20, %v1061_v46  ;;  %v1065_v3 = vsub.f32 %v7859_v19, %v1061_v46  ;;  %v1066_v5 = vsub.f32 %v7871_v21, %v1061_v46  ;;  %2204 = vperm.xlu0 %7194, %v4775_v33   ;;  %v4798_v35 = vld [vmem:[%s9855_s1 + $0x1a8] sm:$0xff]  ;;  %v4821_v19 = vld [vmem:[%s9855_s1 + $0x1e0] sm:$0xff]  ;;  %v4844_v21 = vld [vmem:[%s9855_s1 + $0x218] sm:$0xff] }
 0x261   : > { %v1046_v13 = vsub.f32 %v1038_v38, %v1044_v59  ;;  %v1067_v50 = vsub.f32 %v7869_v25, %v1061_v46  ;;  %2386 = vperm.xlu1 %7195, %v4798_v35   ;;  %v4776_v25 = vld [vmem:[%s9855_s1 + $0x178] sm:$0xff] }
 0x263   : > { %v1047_v6 = vmax.f32 %v1046_v13, 0.0 }
 0x264   : > { %2568 = vperm.xlu0 %7194, %v4821_v19  }
 0x265   : > { %v1048_v20 = vadd.f32 1e-05, %v1047_v6  ;;  %2750 = vperm.xlu1 %7195, %v4844_v21  }
 0x267   : > { %7196 = vrsqrt.f32 %v1048_v20 }
 0x268   : > { %2209 = vperm.xlu0 %7194, %v4776_v25  }
 0x269   : > { %2391 = vperm.xlu1 %7195, %v4799_v7  }
 0x26c   : > { %2573 = vperm.xlu0 %7194, %v4822_v8  }
 0x26d   : > { %2755 = vperm.xlu1 %7195, %v4845_v10  }
 0x270   : > { %2396 = vperm.xlu0 %7194, %v4800_v15  }
 0x271   : > { %v7197_v16 = vpop.eup %7196  ;;  %2578 = vperm.xlu1 %7195, %v4823_v11  }
 0x272   : > { %v1057_v18 = vmul.f32 %v7197_v16, %v4663_v1 }
 0x274   : > { %v1073_v14 = vrot.slane %v1057_v18, %v8196_v12  ;;  %2760 = vperm.xlu0 %7194, %v4846_v23  }
 0x275   : > { %2583 = vperm.xlu1 %7195, %v4824_v37  }
 0x276   : > { %v1081_v17 = vmul.f32 %v1073_v14, %v1069_v60  ;;  %v1074_v24 = vmul.f32 %v1073_v14, %v1062_v61  ;;  %v1075_v26 = vmul.f32 %v1073_v14, %v1063_v62  ;;  %v1080_v28 = vmul.f32 %v1073_v14, %v1068_v52 }
 0x277   : > { %v1076_v29 = vmul.f32 %v1073_v14, %v1064_v2  ;;  %v1077_v30 = vmul.f32 %v1073_v14, %v1065_v3  ;;  %v1078_v32 = vmul.f32 %v1073_v14, %v1066_v5  ;;  %v1079_v27 = vmul.f32 %v1073_v14, %v1067_v50  ;;  %v4715_v3 = vld [vmem:[%s9861_s7 + $0x190] sm:$0xff]  ;;  %v4716_v5 = vld [vmem:[%s9861_s7 + $0x198] sm:$0xff] }
 0x278   : > { %v1096_v51 = vadd.f32 %v4664_v22, %v1081_v17  ;;  %v1089_v40 = vadd.f32 %v4664_v22, %v1074_v24  ;;  %v1090_v41 = vadd.f32 %v4664_v22, %v1075_v26  ;;  %v1095_v42 = vadd.f32 %v4664_v22, %v1080_v28  ;;  %2765 = vperm.xlu0 %7194, %v4847_v31   ;;  %v4691_v17 = vld [vmem:[%s9861_s7 + $0x110] sm:$0xff]  ;;  %v4692_v28 = vld [vmem:[%s9861_s7 + $0x118] sm:$0xff] }
 0x279   : > { %v1091_v43 = vadd.f32 %v4664_v22, %v1076_v29  ;;  %v8214_v44 = vadd.f32 %v4664_v22, %v1077_v30  ;;  %v8219_v53 = vadd.f32 %v4664_v22, %v1078_v32  ;;  %v8221_v55 = vadd.f32 %v4664_v22, %v1079_v27  ;;  %2770 = vperm.xlu1 %7195, %v4848_v39   ;;  %v4717_v29 = vld [vmem:[%s9861_s7 + $0x1a0] sm:$0xff]  ;;  %v4718_v30 = vld [vmem:[%s9861_s7 + $0x1a8] sm:$0xff]  ;;  %v4719_v39 = vld [vmem:[%s9861_s7 + $0x1b0] sm:$0xff] }
 0x27a   : > { %v1104_v47 = vmul.f32 0.5, %v1096_v51  ;;  %v1097_v48 = vmul.f32 0.5, %v1089_v40  ;;  %v1098_v49 = vmul.f32 0.5, %v1090_v41  ;;  %v1103_v54 = vmul.f32 0.5, %v1095_v42 }
 0x27b   : > { %v1099_v38 = vmul.f32 0.5, %v1091_v43  ;;  %v1100_v57 = vmul.f32 0.5, %v8214_v44  ;;  %v1101_v45 = vmul.f32 0.5, %v8219_v53  ;;  %v1102_v46 = vmul.f32 0.5, %v8221_v55 }
 0x27c   : > { %7198 = vtanh.f32 %v1104_v47  ;;  %v6591_v8 = vpack.c.bf16 %v4716_v5, %v4715_v3  ;;  %v4693_v47 = vld [vmem:[%s9861_s7 + $0x120] sm:$0xff]  ;;  %v4698_v5 = vld [vmem:[%s9861_s7 + $0x148] sm:$0xff] }
 0x27d   : > { %7200 = vtanh.f32 %v1097_v48  ;;  %v4694_v48 = vld [vmem:[%s9861_s7 + $0x128] sm:$0xff] }
 0x27e   : > { %7202 = vtanh.f32 %v1098_v49 }
 0x27f   : > { %7204 = vtanh.f32 %v1103_v54 }
 0x280   : > { %7206 = vtanh.f32 %v1099_v38  ;;  %v4720_v38 = vld [vmem:[%s9861_s7 + $0x1b8] sm:$0xff] }
 0x281   : > { %7208 = vtanh.f32 %v1100_v57  ;;  %v6563_v57 = vpack.c.bf16 %v4694_v48, %v4693_v47  ;;  %v4756_v47 = vld [vmem:[%s9861_s7 + $0x298] sm:$0xff]  ;;  %v4737_v48 = vld [vmem:[%s9861_s7 + $0x200] sm:$0xff] }
 0x282   : > { %7210 = vtanh.f32 %v1101_v45 }
 0x283   : > { %7212 = vtanh.f32 %v1102_v46  ;;  %v6599_v46 = vpack.c.bf16 %v4720_v38, %v4719_v39 }
 0x286   : > { %v7199_v58 = vpop.eup %7198 }
 0x287   : > { %v7201_v59 = vpop.eup %7200  ;;  %v1120_v60 = vmul.f32 0.5, %v7199_v58  ;;  %v4695_v58 = vld [vmem:[%s9861_s7 + $0x130] sm:$0xff] }
 0x288   : > { %v7203_v61 = vpop.eup %7202  ;;  %v1113_v62 = vmul.f32 0.5, %v7201_v59 }
 0x289   : > { %v7205_v63 = vpop.eup %7204  ;;  %v1128_v52 = vadd.f32 0.5, %v1120_v60  ;;  %v1114_v2 = vmul.f32 0.5, %v7203_v61  ;;  %v4721_v61 = vld [vmem:[%s9861_s7 + $0x1c0] sm:$0xff] }
 0x28a   : > { %v7207_v33 = vpop.eup %7206  ;;  %v1121_v13 = vadd.f32 0.5, %v1113_v62  ;;  %v1119_v50 = vmul.f32 0.5, %v7205_v63  ;;  %v4722_v62 = vld [vmem:[%s9861_s7 + $0x1c8] sm:$0xff] }
 0x28b   : > { %v7209_v6 = vpop.eup %7208  ;;  %v8236_v35 = vmul.f32 %v1128_v52, %v1096_v51  ;;  %v1122_v19 = vadd.f32 0.5, %v1114_v2  ;;  %v1115_v20 = vmul.f32 0.5, %v7207_v33  ;;  %v4697_v52 = vld [vmem:[%s9861_s7 + $0x140] sm:$0xff]  ;;  %v6603_v3 = vpack.c.bf16 %v4722_v62, %v4721_v61  ;;  %v4723_v33 = vld [vmem:[%s9861_s7 + $0x1d0] sm:$0xff] }
 0x28c   : > { %v7211_v21 = vpop.eup %7210  ;;  %v8238_v25 = vmul.f32 %v1121_v13, %v1089_v40  ;;  %v1127_v7 = vadd.f32 0.5, %v1119_v50  ;;  %v1116_v1 = vmul.f32 0.5, %v7209_v6  ;;  %v4724_v13 = vld [vmem:[%s9861_s7 + $0x1d8] sm:$0xff] }
 0x28d   : > { %v7213_v10 = vpop.eup %7212  ;;  %5649 = vmatprep.mubr.f32.mxu1 %v8236_v35  ;;  %v8241_v15 = vmul.f32 %v1122_v19, %v1090_v41  ;;  %v1144_v16 = vrot.slane %v8236_v35, 7  ;;  %v1123_v18 = vadd.f32 0.5, %v1115_v20  ;;  %v1117_v11 = vmul.f32 0.5, %v7211_v21 }
 0x28e   : > { %5650 = vmatmul.mubr.f32.vlgmr.msra.gmra.mrb[2].mxu1 %v8238_v25  ;;  %v8245_v14 = vmul.f32 %v1127_v7, %v1095_v42  ;;  %v1137_v22 = vrot.slane %v8238_v25, 7  ;;  %v1124_v23 = vadd.f32 0.5, %v1116_v1  ;;  %v1118_v24 = vmul.f32 0.5, %v7213_v10  ;;  %v4725_v7 = vld [vmem:[%s9861_s7 + $0x1e0] sm:$0xff]  ;;  %v4699_v10 = vld [vmem:[%s9861_s7 + $0x150] sm:$0xff] }
 0x28f   : > { %6590 = vmatpush3.bf16.msra.mxu1 %v8025_v0  ;;  %5652 = vmatprep.mubr.f32.mxu1 %v8241_v15  ;;  %v8253_v26 = vmul.f32 %v1123_v18, %v1091_v43  ;;  %v1125_v32 = vadd.f32 0.5, %v1117_v11  ;;  %v1138_v0 = vrot.slane %v8241_v15, 7  ;;  %v6559_v42 = vpack.c.bf16 %v4692_v28, %v4691_v17  ;;  %v4728_v17 = vld [vmem:[%s9861_s7 + $0x1f8] sm:$0xff]  ;;  %v4702_v28 = vld [vmem:[%s9861_s7 + $0x168] sm:$0xff] }
 0x290   : > { %v1143_v27 = vrot.slane %v8245_v14, 7  ;;  %6592 = vmatprep.subr.bf16.mxu1 %v6591_v8  ;;  %v8267_v37 = vmul.f32 %v1124_v23, %v8214_v44  ;;  %v1126_v51 = vadd.f32 0.5, %v1118_v24  ;;  %v8271_v40 = vsel %vm1147_vm2, %v1144_v16, %v1137_v22  ;;  %v4727_v23 = vld [vmem:[%s9861_s7 + $0x1f0] sm:$0xff]  ;;  %v4701_v24 = vld [vmem:[%s9861_s7 + $0x160] sm:$0xff] }
 0x291   : > { %v6595_v43 = vpack.c.bf16 %v4718_v30, %v4717_v29  ;;  %v1139_v44 = vrot.slane %v8253_v26, 7  ;;  %v8283_v31 = vmul.f32 %v1125_v32, %v8219_v53  ;;  %v8294_v49 = vsel %vm1147_vm2, %v1137_v22, %v1138_v0  ;;  %v4753_v32 = vld [vmem:[%s9861_s7 + $0x280] sm:$0xff] }
 0x292   : > { %v8277_v41 = vsel %vm1147_vm2, %v1143_v27, %v1144_v16  ;;  %5653 = vmatmul.mubr.f32.gmra.mrb[4].mxu1 %v8253_v26  ;;  %v1140_v54 = vrot.slane %v8267_v37, 7  ;;  %v8299_v53 = vmul.f32 %v1126_v51, %v8221_v55  ;;  %v1520_v6 = vrot.slane %v8238_v25, 1  ;;  %v4700_v16 = vld [vmem:[%s9861_s7 + $0x158] sm:$0xff] }
 0x293   : > { %5605 = vmatprep.mubr.f32.mxu0 %v8277_v41  ;;  %6594 = vmatpush3.bf16.msra.mxu1 %v6591_v8  ;;  %v8311_v45 = vsel %vm1147_vm2, %v1138_v0, %v1139_v44  ;;  %v1141_v55 = vrot.slane %v8283_v31, 7  ;;  %v1527_v19 = vrot.slane %v8236_v35, 1  ;;  %v6571_v20 = vpack.c.bf16 %v4698_v5, %v4697_v52  ;;  %v4726_v8 = vld [vmem:[%s9861_s7 + $0x1e8] sm:$0xff]  ;;  %v4703_v0 = vld [vmem:[%s9861_s7 + $0x170] sm:$0xff]  ;;  %v4704_v51 = vld [vmem:[%s9861_s7 + $0x178] sm:$0xff] }
 0x294   : > { %5606 = vmatmul.mubr.f32.vlgmr.msra.gmra.mrb[8].mxu0 %v8271_v40  ;;  %5655 = vmatprep.mubr.f32.mxu1 %v8267_v37  ;;  %v8324_v59 = vsel %vm1147_vm2, %v1139_v44, %v1140_v54  ;;  %v1142_v60 = vrot.slane %v8299_v53, 7  ;;  %v6607_v21 = vpack.c.bf16 %v4724_v13, %v4723_v33  ;;  %v6611_v11 = vpack.c.bf16 %v4726_v8, %v4725_v7  ;;  %v4755_v44 = vld [vmem:[%s9861_s7 + $0x290] sm:$0xff]  ;;  %v4742_v5 = vld [vmem:[%s9861_s7 + $0x228] sm:$0xff] }
 0x295   : > { %6558 = vmatpush3.bf16.msra.mxu0 %v8037_v4  ;;  %5608 = vmatprep.mubr.f32.mxu0 %v8294_v49  ;;  %v4696_v4 = vld [vmem:[%s9861_s7 + $0x138] sm:$0xff]  ;;  %v8340_v2 = vsel %vm1147_vm2, %v1140_v54, %v1141_v55  ;;  %v8387_v18 = vsel %vm1528_vm3, %v1527_v19, %v1520_v6  ;;  %v6575_v22 = vpack.c.bf16 %v4700_v16, %v4699_v10  ;;  %v4738_v54 = vld [vmem:[%s9861_s7 + $0x208] sm:$0xff]  ;;  %v1524_v13 = vrot.slane %v8283_v31, 1  ;;  %v4743_v16 = vld [vmem:[%s9861_s7 + $0x230] sm:$0xff] }
 0x296   : > { %6560 = vmatprep.subr.bf16.mxu0 %v6559_v42  ;;  %6596 = vmatprep.subr.bf16.mxu1 %v6595_v43  ;;  %v6567_v63 = vpack.c.bf16 %v4696_v4, %v4695_v58  ;;  %v8355_v50 = vsel %vm1147_vm2, %v1141_v55, %v1142_v60  ;;  %v8372_v1 = vsel %vm1147_vm2, %v1142_v60, %v1143_v27  ;;  %v4754_v27 = vld [vmem:[%s9861_s7 + $0x288] sm:$0xff]  ;;  %v4739_v55 = vld [vmem:[%s9861_s7 + $0x210] sm:$0xff]  ;;  %v1522_v58 = vrot.slane %v8253_v26, 1  ;;  %v4757_v4 = vld [vmem:[%s9861_s7 + $0x2a0] sm:$0xff] }
 0x297   : > { %5656 = vmatmul.mubr.f32.gmra.mrb[6].mxu1 %v8283_v31  ;;  %v6615_v29 = vpack.c.bf16 %v4728_v17, %v4727_v23  ;;  %v6579_v30 = vpack.c.bf16 %v4702_v28, %v4701_v24  ;;  %v6655_v39 = vpack.c.bf16 %v4756_v47, %v4755_v44  ;;  %v6619_v38 = vpack.c.bf16 %v4738_v54, %v4737_v48  ;;  %v4758_v60 = vld [vmem:[%s9861_s7 + $0x2a8] sm:$0xff]  ;;  %v4761_v17 = vld [vmem:[%s9861_s7 + $0x2c0] sm:$0xff]  ;;  %v4747_v48 = vld [vmem:[%s9861_s7 + $0x250] sm:$0xff] }
 0x298   : > { %5609 = vmatmul.mubr.f32.gmra.mrb[10].mxu0 %v8311_v45  ;;  %6598 = vmatpush3.bf16.msra.mxu1 %v6595_v43  ;;  %v6583_v43 = vpack.c.bf16 %v4704_v51, %v4703_v0  ;;  %v6659_v52 = vpack.c.bf16 %v4758_v60, %v4757_v4  ;;  %v1525_v8 = vrot.slane %v8299_v53, 1  ;;  %v1526_v23 = vrot.slane %v8245_v14, 1  ;;  %v4762_v24 = vld [vmem:[%s9861_s7 + $0x2c8] sm:$0xff]  ;;  %v4763_v51 = vld [vmem:[%s9861_s7 + $0x2d0] sm:$0xff]  ;;  %v4748_v54 = vld [vmem:[%s9861_s7 + $0x258] sm:$0xff] }
 0x299   : > { %6562 = vmatpush3.bf16.msra.mxu0 %v6559_v42  ;;  %5611 = vmatprep.mubr.f32.mxu0 %v8324_v59  ;;  %v6651_v42 = vpack.c.bf16 %v4754_v27, %v4753_v32  ;;  %v4745_v32 = vld [vmem:[%s9861_s7 + $0x240] sm:$0xff]  ;;  %v4746_v27 = vld [vmem:[%s9861_s7 + $0x248] sm:$0xff]  ;;  %v4768_v4 = vld [vmem:[%s9861_s7 + $0x2f8] sm:$0xff] }
 0x29a   : > { %5658 = vmatprep.mubr.f32.mxu1 %v8299_v53  ;;  %6564 = vmatprep.subr.bf16.mxu0 %v6563_v57  ;;  %v8510_v0 = vsel %vm1528_vm3, %v1525_v8, %v1526_v23  ;;  %v8524_v44 = vsel %vm1528_vm3, %v1526_v23, %v1527_v19  ;;  %v4766_v19 = vld [vmem:[%s9861_s7 + $0x2e8] sm:$0xff]  ;;  %v4779_v23 = vld [vmem:[%s9861_s7 + $0x310] sm:$0xff] }
 0x29b   : > { %6600 = vmatprep.subr.bf16.mxu1 %v6599_v46  ;;  %5659 = vmatmul.mubr.f32.gmra.mrb[8].mxu1 %v8245_v14 }
 0x29c   : > { %5612 = vmatmul.mubr.f32.gmra.mrb[12].mxu0 %v8340_v2  ;;  %6602 = vmatpush3.bf16.msra.mxu1 %v6599_v46  ;;  %v4740_v46 = vld [vmem:[%s9861_s7 + $0x218] sm:$0xff] }
 0x29d   : > { %6566 = vmatpush3.bf16.msra.mxu0 %v6563_v57  ;;  %5614 = vmatprep.mubr.f32.mxu0 %v8355_v50  ;;  %v1521_v57 = vrot.slane %v8241_v15, 1  ;;  %v6623_v61 = vpack.c.bf16 %v4740_v46, %v4739_v55  ;;  %v4749_v55 = vld [vmem:[%s9861_s7 + $0x260] sm:$0xff]  ;;  %v4750_v46 = vld [vmem:[%s9861_s7 + $0x268] sm:$0xff] }
 0x29e   : > { %5737 = vmatprep.mubr.f32.mxu1 %v8271_v40  ;;  %6568 = vmatprep.subr.bf16.mxu0 %v6567_v63  ;;  %v6643_v60 = vpack.c.bf16 %v4750_v46, %v4749_v55  ;;  %v4785_v46 = vld [vmem:[%s9861_s7 + $0x340] sm:$0xff] }
 0x29f   : > { %6604 = vmatprep.subr.bf16.mxu1 %v6603_v3  ;;  %v8446_v62 = vsel %vm1528_vm3, %v1520_v6, %v1521_v57  ;;  %v8459_v33 = vsel %vm1528_vm3, %v1521_v57, %v1522_v58  ;;  %v4759_v6 = vld [vmem:[%s9861_s7 + $0x2b0] sm:$0xff] }
 0x2a0   : > { %5615 = vmatmul.mubr.f32.gmra.mrb[14].mxu0 %v8372_v1  ;;  %6606 = vmatpush3.bf16.msra.mxu1 %v6603_v3  ;;  %v4741_v3 = vld [vmem:[%s9861_s7 + $0x220] sm:$0xff] }
 0x2a1   : > { %6570 = vmatpush3.bf16.msra.mxu0 %v6567_v63  ;;  %5693 = vmatprep.mubr.f32.mxu0 %v8387_v18  ;;  %v1523_v63 = vrot.slane %v8267_v37, 1 }
 0x2a2   : > { %6572 = vmatprep.subr.bf16.mxu0 %v6571_v20  ;;  %6608 = vmatprep.subr.bf16.mxu1 %v6607_v21 }
 0x2a3   : > { %v8472_v7 = vsel %vm1528_vm3, %v1522_v58, %v1523_v63  ;;  %v4767_v58 = vld [vmem:[%s9861_s7 + $0x2f0] sm:$0xff] }
 0x2a4   : > { %6610 = vmatpush3.bf16.msra.mxu1 %v6607_v21  ;;  %v6627_v21 = vpack.c.bf16 %v4742_v5, %v4741_v3  ;;  %v4801_v3 = vld [vmem:[%s9861_s7 + $0x380] sm:$0xff]  ;;  %v4802_v5 = vld [vmem:[%s9861_s7 + $0x388] sm:$0xff] }
 0x2a5   : > { %6574 = vmatpush3.bf16.msra.mxu0 %v6571_v20  ;;  %6612 = vmatprep.subr.bf16.mxu1 %v6611_v11  ;;  %v4760_v20 = vld [vmem:[%s9861_s7 + $0x2b8] sm:$0xff] }
 0x2a6   : > { %6576 = vmatprep.subr.bf16.mxu0 %v6575_v22  ;;  %v6663_v10 = vpack.c.bf16 %v4760_v20, %v4759_v6  ;;  %v6715_v6 = vpack.c.bf16 %v4802_v5, %v4801_v3  ;;  %v4777_v20 = vld [vmem:[%s9861_s7 + $0x300] sm:$0xff]  ;;  %v4788_v3 = vld [vmem:[%s9861_s7 + $0x358] sm:$0xff]  ;;  %v4814_v5 = vld [vmem:[%s9861_s7 + $0x3e8] sm:$0xff] }
 0x2a8   : > { %6614 = vmatpush3.bf16.msra.mxu1 %v6611_v11  ;;  %v4744_v11 = vld [vmem:[%s9861_s7 + $0x238] sm:$0xff] }
 0x2a9   : > { %6578 = vmatpush3.bf16.msra.mxu0 %v6575_v22  ;;  %6616 = vmatprep.subr.bf16.mxu1 %v6615_v29  ;;  %v8485_v22 = vsel %vm1528_vm3, %v1523_v63, %v1524_v13  ;;  %v6631_v28 = vpack.c.bf16 %v4744_v11, %v4743_v16  ;;  %v4751_v63 = vld [vmem:[%s9861_s7 + $0x270] sm:$0xff] }
 0x2aa   : > { %6580 = vmatprep.subr.bf16.mxu0 %v6579_v30 }
 0x2ac   : > { %6618 = vmatpush3.bf16.msra.mxu1 %v6615_v29  ;;  %v8498_v29 = vsel %vm1528_vm3, %v1524_v13, %v1525_v8  ;;  %v4803_v8 = vld [vmem:[%s9861_s7 + $0x390] sm:$0xff] }
 0x2ad   : > { %6582 = vmatpush3.bf16.msra.mxu0 %v6579_v30  ;;  %6652 = vmatprep.subr.bf16.mxu1 %v6651_v42  ;;  %v6667_v30 = vpack.c.bf16 %v4762_v24, %v4761_v17  ;;  %v4780_v17 = vld [vmem:[%s9861_s7 + $0x318] sm:$0xff]  ;;  %v4805_v24 = vld [vmem:[%s9861_s7 + $0x3a0] sm:$0xff] }
 0x2ae   : > { %6584 = vmatprep.subr.bf16.mxu0 %v6583_v43 }
 0x2af   : > { %5738 = vmatmul.mubr.f32.vlgmr.msra.gmra.mrb[10].mxu1 %v8294_v49 }
 0x2b0   : > { %5740 = vmatprep.mubr.f32.mxu1 %v8311_v45  ;;  %6654 = vmatpush3.bf16.msra.mxu1 %v6651_v42  ;;  %v4764_v42 = vld [vmem:[%s9861_s7 + $0x2d8] sm:$0xff] }
 0x2b1   : > { %6586 = vmatpush3.bf16.msra.mxu0 %v6583_v43  ;;  %6656 = vmatprep.subr.bf16.mxu1 %v6655_v39  ;;  %v6635_v43 = vpack.c.bf16 %v4746_v27, %v4745_v32  ;;  %v6671_v47 = vpack.c.bf16 %v4764_v42, %v4763_v51  ;;  %v4781_v27 = vld [vmem:[%s9861_s7 + $0x320] sm:$0xff]  ;;  %v4782_v51 = vld [vmem:[%s9861_s7 + $0x328] sm:$0xff]  ;;  %v4807_v42 = vld [vmem:[%s9861_s7 + $0x3b0] sm:$0xff] }
 0x2b2   : > { %6620 = vmatprep.subr.bf16.mxu0 %v6619_v38 }
 0x2b3   : > { %5741 = vmatmul.mubr.f32.gmra.mrb[12].mxu1 %v8324_v59 }
 0x2b4   : > { %5694 = vmatmul.mubr.f32.vlgmr.msra.gmra.mrb[16].mxu0 %v8446_v62  ;;  %5743 = vmatprep.mubr.f32.mxu1 %v8340_v2 }
 0x2b5   : > { %5696 = vmatprep.mubr.f32.mxu0 %v8459_v33  ;;  %6622 = vmatpush3.bf16.msra.mxu0 %v6619_v38  ;;  %v6639_v38 = vpack.c.bf16 %v4748_v54, %v4747_v48  ;;  %v4783_v54 = vld [vmem:[%s9861_s7 + $0x330] sm:$0xff] }
 0x2b6   : > { %6658 = vmatpush3.bf16.msra.mxu1 %v6655_v39  ;;  %6624 = vmatprep.subr.bf16.mxu0 %v6623_v61  ;;  %v4765_v39 = vld [vmem:[%s9861_s7 + $0x2e0] sm:$0xff] }
 0x2b7   : > { %5744 = vmatmul.mubr.f32.gmra.mrb[14].mxu1 %v8355_v50  ;;  %6660 = vmatprep.subr.bf16.mxu1 %v6659_v52  ;;  %v6675_v57 = vpack.c.bf16 %v4766_v19, %v4765_v39  ;;  %v4784_v39 = vld [vmem:[%s9861_s7 + $0x338] sm:$0xff]  ;;  %v4809_v19 = vld [vmem:[%s9861_s7 + $0x3c0] sm:$0xff] }
 0x2b8   : > { %5697 = vmatmul.mubr.f32.gmra.mrb[18].mxu0 %v8472_v7  ;;  %5746 = vmatprep.mubr.f32.mxu1 %v8372_v1 }
 0x2b9   : > { %5699 = vmatprep.mubr.f32.mxu0 %v8485_v22  ;;  %6626 = vmatpush3.bf16.msra.mxu0 %v6623_v61  ;;  %v6679_v61 = vpack.c.bf16 %v4768_v4, %v4767_v58  ;;  %v4786_v58 = vld [vmem:[%s9861_s7 + $0x348] sm:$0xff]  ;;  %v4811_v4 = vld [vmem:[%s9861_s7 + $0x3d0] sm:$0xff] }
 0x2ba   : > { %6662 = vmatpush3.bf16.msra.mxu1 %v6659_v52  ;;  %6628 = vmatprep.subr.bf16.mxu0 %v6627_v21  ;;  %v4752_v52 = vld [vmem:[%s9861_s7 + $0x278] sm:$0xff] }
 0x2bb   : > { %5747 = vmatmul.mubr.f32.gmra.mrb[16].mxu1 %v8277_v41  ;;  %6664 = vmatprep.subr.bf16.mxu1 %v6663_v10  ;;  %v6647_v13 = vpack.c.bf16 %v4752_v52, %v4751_v63  ;;  %v4787_v52 = vld [vmem:[%s9861_s7 + $0x350] sm:$0xff] }
 0x2bc   : > { %5700 = vmatmul.mubr.f32.gmra.mrb[20].mxu0 %v8498_v29  ;;  %5825 = vmatprep.mubr.f32.mxu1 %v8446_v62 }
 0x2bd   : > { %5702 = vmatprep.mubr.f32.mxu0 %v8510_v0  ;;  %6630 = vmatpush3.bf16.msra.mxu0 %v6627_v21  ;;  %v4778_v21 = vld [vmem:[%s9861_s7 + $0x308] sm:$0xff] }
 0x2be   : > { %6666 = vmatpush3.bf16.msra.mxu1 %v6663_v10  ;;  %6632 = vmatprep.subr.bf16.mxu0 %v6631_v28  ;;  %v4804_v10 = vld [vmem:[%s9861_s7 + $0x398] sm:$0xff]  ;;  %v6683_v16 = vpack.c.bf16 %v4778_v21, %v4777_v20  ;;  %v4789_v20 = vld [vmem:[%s9861_s7 + $0x360] sm:$0xff]  ;;  %v4815_v21 = vld [vmem:[%s9861_s7 + $0x3f0] sm:$0xff] }
 0x2bf   : > { %6668 = vmatprep.subr.bf16.mxu1 %v6667_v30  ;;  %v6719_v11 = vpack.c.bf16 %v4804_v10, %v4803_v8  ;;  %v4816_v8 = vld [vmem:[%s9861_s7 + $0x3f8] sm:$0xff] }
 0x2c0   : > { %5703 = vmatmul.mubr.f32.gmra.mrb[22].mxu0 %v8524_v44 }
 0x2c1   : > { %6634 = vmatpush3.bf16.msra.mxu0 %v6631_v28  ;;  %5781 = vmatprep.mubr.f32.mxu0 %v8238_v25  ;;  %v4806_v28 = vld [vmem:[%s9861_s7 + $0x3a8] sm:$0xff] }
 0x2c2   : > { %6670 = vmatpush3.bf16.msra.mxu1 %v6667_v30  ;;  %6636 = vmatprep.subr.bf16.mxu0 %v6635_v43  ;;  %v6687_v30 = vpack.c.bf16 %v4780_v17, %v4779_v23  ;;  %v6723_v32 = vpack.c.bf16 %v4806_v28, %v4805_v24  ;;  %v4792_v23 = vld [vmem:[%s9861_s7 + $0x378] sm:$0xff]  ;;  %v4825_v24 = vld [vmem:[%s9861_s7 + $0x400] sm:$0xff]  ;;  %v4826_v28 = vld [vmem:[%s9861_s7 + $0x408] sm:$0xff] }
 0x2c3   : > { %6672 = vmatprep.subr.bf16.mxu1 %v6671_v47 }
 0x2c5   : > { %6638 = vmatpush3.bf16.msra.mxu0 %v6635_v43  ;;  %v4808_v43 = vld [vmem:[%s9861_s7 + $0x3b8] sm:$0xff] }
 0x2c6   : > { %6674 = vmatpush3.bf16.msra.mxu1 %v6671_v47  ;;  %6640 = vmatprep.subr.bf16.mxu0 %v6639_v38  ;;  %v6691_v47 = vpack.c.bf16 %v4782_v51, %v4781_v27  ;;  %v6727_v48 = vpack.c.bf16 %v4808_v43, %v4807_v42  ;;  %v4828_v27 = vld [vmem:[%s9861_s7 + $0x418] sm:$0xff]  ;;  %v4829_v42 = vld [vmem:[%s9861_s7 + $0x420] sm:$0xff]  ;;  %v4830_v43 = vld [vmem:[%s9861_s7 + $0x428] sm:$0xff] }
 0x2c7   : > { %6676 = vmatprep.subr.bf16.mxu1 %v6675_v57 }
 0x2c9   : > { %6642 = vmatpush3.bf16.msra.mxu0 %v6639_v38  ;;  %v4810_v38 = vld [vmem:[%s9861_s7 + $0x3c8] sm:$0xff] }
 0x2ca   : > { %6678 = vmatpush3.bf16.msra.mxu1 %v6675_v57  ;;  %6644 = vmatprep.subr.bf16.mxu0 %v6643_v60  ;;  %v6695_v57 = vpack.c.bf16 %v4784_v39, %v4783_v54  ;;  %v6731_v55 = vpack.c.bf16 %v4810_v38, %v4809_v19  ;;  %v8738_v54 = vpop.permute.xlu1 %1466 }
 0x2cb   : > { %6680 = vmatprep.subr.bf16.mxu1 %v6679_v61  ;;  %9960 = vst [vmem:[#allocation23_spill] sm:$0xff] %v8738_v54 }
 0x2cd   : > { %6646 = vmatpush3.bf16.msra.mxu0 %v6643_v60  ;;  %v4812_v60 = vld [vmem:[%s9861_s7 + $0x3d8] sm:$0xff] }
 0x2ce   : > { %6682 = vmatpush3.bf16.msra.mxu1 %v6679_v61  ;;  %6648 = vmatprep.subr.bf16.mxu0 %v6647_v13  ;;  %v6699_v61 = vpack.c.bf16 %v4786_v58, %v4785_v46  ;;  %v6735_v63 = vpack.c.bf16 %v4812_v60, %v4811_v4  ;;  %v8742_v19 = vpop.permute.xlu1 %1471 }
 0x2cf   : > { %6716 = vmatprep.subr.bf16.mxu1 %v6715_v6 }
 0x2d1   : > { %6650 = vmatpush3.bf16.msra.mxu0 %v6647_v13  ;;  %5826 = vmatmul.mubr.f32.vlgmr.msra.gmra.mrb[18].mxu1 %v8459_v33  ;;  %v6703_v13 = vpack.c.bf16 %v4788_v3, %v4787_v52 }
 0x2d2   : > { %5828 = vmatprep.mubr.f32.mxu1 %v8472_v7  ;;  %6718 = vmatpush3.bf16.msra.mxu1 %v6715_v6 }
 0x2d3   : > { %6684 = vmatprep.subr.bf16.mxu0 %v6683_v16  ;;  %6720 = vmatprep.subr.bf16.mxu1 %v6719_v11 }
 0x2d4   : > { %5782 = vmatmul.mubr.f32.vlgmr.msra.gmra.mrb[24].mxu0 %v8241_v15 }
 0x2d5   : > { %5784 = vmatprep.mubr.f32.mxu0 %v8253_v26  ;;  %5829 = vmatmul.mubr.f32.gmra.mrb[20].mxu1 %v8485_v22 }
 0x2d6   : > { %6686 = vmatpush3.bf16.msra.mxu0 %v6683_v16  ;;  %5831 = vmatprep.mubr.f32.mxu1 %v8498_v29  ;;  %v6743_v16 = vpack.c.bf16 %v4816_v8, %v4815_v21 }
 0x2d7   : > { %6722 = vmatpush3.bf16.msra.mxu1 %v6719_v11  ;;  %6688 = vmatprep.subr.bf16.mxu0 %v6687_v30  ;;  %v4791_v11 = vld [vmem:[%s9861_s7 + $0x370] sm:$0xff] }
 0x2d8   : > { %5785 = vmatmul.mubr.f32.gmra.mrb[26].mxu0 %v8267_v37  ;;  %6724 = vmatprep.subr.bf16.mxu1 %v6723_v32  ;;  %v6711_v17 = vpack.c.bf16 %v4792_v23, %v4791_v11 }
 0x2d9   : > { %5787 = vmatprep.mubr.f32.mxu0 %v8283_v31  ;;  %5832 = vmatmul.mubr.f32.gmra.mrb[22].mxu1 %v8510_v0 }
 0x2da   : > { %6690 = vmatpush3.bf16.msra.mxu0 %v6687_v30  ;;  %5834 = vmatprep.mubr.f32.mxu1 %v8524_v44  ;;  %v6747_v30 = vpack.c.bf16 %v4826_v28, %v4825_v24 }
 0x2db   : > { %6726 = vmatpush3.bf16.msra.mxu1 %v6723_v32  ;;  %6692 = vmatprep.subr.bf16.mxu0 %v6691_v47  ;;  %v4827_v32 = vld [vmem:[%s9861_s7 + $0x410] sm:$0xff] }
 0x2dc   : > { %5788 = vmatmul.mubr.f32.gmra.mrb[28].mxu0 %v8299_v53  ;;  %6728 = vmatprep.subr.bf16.mxu1 %v6727_v48  ;;  %v6751_v51 = vpack.c.bf16 %v4828_v27, %v4827_v32 }
 0x2dd   : > { %5790 = vmatprep.mubr.f32.mxu0 %v8245_v14  ;;  %5835 = vmatmul.mubr.f32.gmra.mrb[24].mxu1 %v8387_v18 }
 0x2de   : > { %6694 = vmatpush3.bf16.msra.mxu0 %v6691_v47  ;;  %5913 = vmatprep.mubr.f32.mxu1 %v8241_v15  ;;  %v4813_v15 = vld [vmem:[%s9861_s7 + $0x3e0] sm:$0xff] }
 0x2df   : > { %6730 = vmatpush3.bf16.msra.mxu1 %v6727_v48  ;;  %6696 = vmatprep.subr.bf16.mxu0 %v6695_v57  ;;  %v6739_v6 = vpack.c.bf16 %v4814_v5, %v4813_v15  ;;  %v8736_v48 = vpop.permute.xlu0 %1287 }
 0x2e0   : > { %5791 = vmatmul.mubr.f32.gmra.mrb[30].mxu0 %v8236_v35  ;;  %6732 = vmatprep.subr.bf16.mxu1 %v6731_v55  ;;  %9959 = vst [vmem:[#allocation22_spill] sm:$0xff] %v8736_v48 }
 0x2e1   : > { %5869 = vmatprep.mubr.f32.mxu0 %v8294_v49  ;;  %v4790_v49 = vld [vmem:[%s9861_s7 + $0x368] sm:$0xff] }
 0x2e2   : > { %6698 = vmatpush3.bf16.msra.mxu0 %v6695_v57  ;;  %v6707_v10 = vpack.c.bf16 %v4790_v49, %v4789_v20  ;;  %v8750_v57 = vpop.permute.xlu1 %1476 }
 0x2e3   : > { %6734 = vmatpush3.bf16.msra.mxu1 %v6731_v55  ;;  %6700 = vmatprep.subr.bf16.mxu0 %v6699_v61  ;;  %v8740_v39 = vpop.permute.xlu0 %1292  ;;  %9963 = vst [vmem:[#allocation26_spill] sm:$0xff] %v8750_v57 }
 0x2e4   : > { %6736 = vmatprep.subr.bf16.mxu1 %v6735_v63  ;;  %9961 = vst [vmem:[#allocation24_spill] sm:$0xff] %v8740_v39 }
 0x2e6   : > { %6702 = vmatpush3.bf16.msra.mxu0 %v6699_v61  ;;  %v8756_v46 = vpop.permute.xlu1 %1675 }
 0x2e7   : > { %6738 = vmatpush3.bf16.msra.mxu1 %v6735_v63  ;;  %6704 = vmatprep.subr.bf16.mxu0 %v6703_v13  ;;  %v8746_v38 = vpop.permute.xlu0 %1297 }
 0x2e8   : > { %6740 = vmatprep.subr.bf16.mxu1 %v6739_v6  ;;  %9962 = vst [vmem:[#allocation25_spill] sm:$0xff] %v8746_v38 }
 0x2ea   : > { %6706 = vmatpush3.bf16.msra.mxu0 %v6703_v13 }
 0x2eb   : > { %6742 = vmatpush3.bf16.msra.mxu1 %v6739_v6  ;;  %6708 = vmatprep.subr.bf16.mxu0 %v6707_v10  ;;  %v8754_v55 = vpop.permute.xlu0 %1670 }
 0x2ec   : > { %6744 = vmatprep.subr.bf16.mxu1 %v6743_v16  ;;  %9964 = vst [vmem:[#allocation27_spill] sm:$0xff] %v8754_v55 }
 0x2ee   : > { %6710 = vmatpush3.bf16.msra.mxu0 %v6707_v10 }
 0x2ef   : > { %6746 = vmatpush3.bf16.msra.mxu1 %v6743_v16  ;;  %6712 = vmatprep.subr.bf16.mxu0 %v6711_v17 }
 0x2f0   : > { %6779 = vmatprep.subr.bf16.mxu1 %v9896_v56 }
 0x2f2   : > { %6714 = vmatpush3.bf16.msra.mxu0 %v6711_v17  ;;  %5914 = vmatmul.mubr.f32.vlgmr.msra.gmra.mrb[26].mxu1 %v8253_v26  ;;  %v6755_v26 = vpack.c.bf16 %v4830_v43, %v4829_v42 }
 0x2f3   : > { %5916 = vmatprep.mubr.f32.mxu1 %v8267_v37  ;;  %6748 = vmatprep.subr.bf16.mxu0 %v6747_v30  ;;  %v4831_v37 = vld [vmem:[%s9861_s7 + $0x430] sm:$0xff] }
 0x2f5   : > { %5870 = vmatmul.mubr.f32.vlgmr.msra.gmra.mrb[32].mxu0 %v8311_v45  ;;  %v4832_v45 = vld [vmem:[%s9861_s7 + $0x438] sm:$0xff] }
 0x2f6   : > { %5872 = vmatprep.mubr.f32.mxu0 %v8324_v59  ;;  %5917 = vmatmul.mubr.f32.gmra.mrb[28].mxu1 %v8283_v31  ;;  %v6759_v31 = vpack.c.bf16 %v4832_v45, %v4831_v37  ;;  %v4834_v59 = vld [vmem:[%s9861_s7 + $0x448] sm:$0xff] }
 0x2f7   : > { %6750 = vmatpush3.bf16.msra.mxu0 %v6747_v30  ;;  %5919 = vmatprep.mubr.f32.mxu1 %v8299_v53  ;;  %v4833_v53 = vld [vmem:[%s9861_s7 + $0x440] sm:$0xff] }
 0x2f8   : > { %6752 = vmatprep.subr.bf16.mxu0 %v6751_v51 }
 0x2f9   : > { %5873 = vmatmul.mubr.f32.gmra.mrb[34].mxu0 %v8340_v2  ;;  %v4836_v2 = vld [vmem:[%s9861_s7 + $0x458] sm:$0xff] }
 0x2fa   : > { %5875 = vmatprep.mubr.f32.mxu0 %v8355_v50  ;;  %5920 = vmatmul.mubr.f32.gmra.mrb[30].mxu1 %v8245_v14  ;;  %v4835_v14 = vld [vmem:[%s9861_s7 + $0x450] sm:$0xff] }
 0x2fb   : > { %6754 = vmatpush3.bf16.msra.mxu0 %v6751_v51  ;;  %5922 = vmatprep.mubr.f32.mxu1 %v8236_v35  ;;  %v6763_v35 = vpack.c.bf16 %v4834_v59, %v4833_v53 }
 0x2fc   : > { %6756 = vmatprep.subr.bf16.mxu0 %v6755_v26 }
 0x2fd   : > { %5876 = vmatmul.mubr.f32.gmra.mrb[36].mxu0 %v8372_v1  ;;  %v4839_v1 = vld [vmem:[%s9861_s7 + $0x470] sm:$0xff] }
 0x2fe   : > { %5878 = vmatprep.mubr.f32.mxu0 %v8277_v41  ;;  %5923 = vmatmul.mubr.f32.gmra.mrb[32].mxu1 %v8238_v25  ;;  %v6767_v25 = vpack.c.bf16 %v4836_v2, %v4835_v14  ;;  %v4837_v41 = vld [vmem:[%s9861_s7 + $0x460] sm:$0xff] }
 0x2ff   : > { %6758 = vmatpush3.bf16.msra.mxu0 %v6755_v26  ;;  %6001 = vmatprep.mubr.msk.f32.mxu1 %vm7412_vm0, %v9883_v9  ;;  %v2836_v9 = vld [vmem:[#allocation7 + $0x60] sm:$0xff] }
 0x300   : > { %6760 = vmatprep.subr.bf16.mxu0 %v6759_v31 }
 0x301   : > { %5879 = vmatmul.mubr.f32.gmra.mrb[38].mxu0 %v8271_v40  ;;  %v4838_v40 = vld [vmem:[%s9861_s7 + $0x468] sm:$0xff] }
 0x302   : > { %5957 = vmatprep.mubr.f32.mxu0 %v8459_v33  ;;  %v6771_v50 = vpack.c.bf16 %v4838_v40, %v4837_v41  ;;  %v4840_v33 = vld [vmem:[%s9861_s7 + $0x478] sm:$0xff] }
 0x303   : > { %6762 = vmatpush3.bf16.msra.mxu0 %v6759_v31  ;;  %v6775_v47 = vpack.c.bf16 %v4840_v33, %v4839_v1 }
 0x304   : > { %6764 = vmatprep.subr.bf16.mxu0 %v6763_v35 }
 0x307   : > { %6766 = vmatpush3.bf16.msra.mxu0 %v6763_v35 }
 0x308   : > { %6768 = vmatprep.subr.bf16.mxu0 %v6767_v25 }
 0x30b   : > { %6770 = vmatpush3.bf16.msra.mxu0 %v6767_v25 }
 0x30c   : > { %6772 = vmatprep.subr.bf16.mxu0 %v6771_v50 }
 0x30f   : > { %6774 = vmatpush3.bf16.msra.mxu0 %v6771_v50 }
 0x310   : > { %6776 = vmatprep.subr.bf16.mxu0 %v6775_v47 }
 0x313   : > { %6778 = vmatpush3.bf16.msra.mxu0 %v6775_v47  ;;  %v2824_v47 = vld [vmem:[#allocation7] sm:$0xff] }
 0x316   : > { %5958 = vmatmul.mubr.f32.vlgmr.msra.gmra.mrb[40].mxu0 %v8472_v7  ;;  %v8759_v7 = vpop.permute.xlu0 %1302 }
 0x317   : > { %5960 = vmatprep.mubr.f32.mxu0 %v8485_v22  ;;  %9965 = vst [vmem:[#allocation28_spill] sm:$0xff] %v8759_v7  ;;  %v8761_v22 = vpop.permute.xlu1 %1481 }
 0x318   : > { %9966 = vst [vmem:[#allocation29_spill] sm:$0xff] %v8761_v22 }
 0x31a   : > { %5961 = vmatmul.mubr.f32.gmra.mrb[42].mxu0 %v8498_v29  ;;  %v8763_v58 = vpop.permute.xlu0 %1680 }
 0x31b   : > { %5963 = vmatprep.mubr.f32.mxu0 %v8510_v0  ;;  %9967 = vst [vmem:[#allocation30_spill] sm:$0xff] %v8763_v58  ;;  %v8765_v29 = vpop.permute.xlu1 %1857 }
 0x31e   : > { %5964 = vmatmul.mubr.f32.gmra.mrb[44].mxu0 %v8524_v44  ;;  %v8767_v0 = vpop.permute.xlu0 %1862 }
 0x31f   : > { %5966 = vmatprep.mubr.f32.mxu0 %v8387_v18  ;;  %9968 = vst [vmem:[#allocation31_spill] sm:$0xff] %v8767_v0  ;;  %v8769_v4 = vpop.permute.xlu1 %1307 }
 0x320   : > { %9969 = vst [vmem:[#allocation32_spill] sm:$0xff] %v8769_v4 }
 0x322   : > { %5967 = vmatmul.mubr.f32.gmra.mrb[46].mxu0 %v8446_v62  ;;  %v8771_v44 = vpop.permute.xlu0 %1486 }
 0x323   : > { %9970 = vst [vmem:[#allocation33_spill] sm:$0xff] %v8771_v44  ;;  %v8773_v18 = vpop.permute.xlu1 %1685 }
 0x324   : > { %9971 = vst [vmem:[#allocation34_spill] sm:$0xff] %v8773_v18 }
 0x326   : > { %v8775_v60 = vpop.permute.xlu0 %1867 }
 0x327   : > { %9972 = vst [vmem:[#allocation35_spill] sm:$0xff] %v8775_v60  ;;  %v8777_v61 = vpop.permute.xlu1 %1312 }
 0x328   : > { %9973 = vst [vmem:[#allocation36_spill] sm:$0xff] %v8777_v61 }
 0x32a   : > { %v8779_v62 = vpop.permute.xlu0 %1491 }
 0x32b   : > { %9974 = vst [vmem:[#allocation37_spill] sm:$0xff] %v8779_v62  ;;  %v8781_v63 = vpop.permute.xlu1 %1690 }
 0x32e   : > { %v8783_v52 = vpop.permute.xlu0 %1872 }
 0x32f   : > { %9975 = vst [vmem:[#allocation38_spill] sm:$0xff] %v8783_v52  ;;  %v8785_v3 = vpop.permute.xlu1 %2174 }
 0x330   : > { %9976 = vst [vmem:[#allocation39_spill] sm:$0xff] %v8785_v3 }
 0x332   : > { %v8787_v15 = vpop.permute.xlu0 %2179 }
 0x333   : > { %9977 = vst [vmem:[#allocation40_spill] sm:$0xff] %v8787_v15  ;;  %v8789_v5 = vpop.permute.xlu1 %1317 }
 0x334   : > { %9978 = vst [vmem:[#allocation41_spill] sm:$0xff] %v8789_v5 }
 0x336   : > { %v8791_v13 = vpop.permute.xlu0 %1496 }
 0x337   : > { %9979 = vst [vmem:[#allocation42_spill] sm:$0xff] %v8791_v13  ;;  %v8793_v6 = vpop.permute.xlu1 %1695 }
 0x33a   : > { %v8795_v20 = vpop.permute.xlu0 %1877 }
 0x33b   : > { %v8797_v49 = vpop.permute.xlu1 %2184 }
 0x33c   : > { %9980 = vst [vmem:[#allocation43_spill] sm:$0xff] %v8797_v49 }
 0x33e   : > { %v8799_v8 = vpop.permute.xlu0 %2361 }
 0x33f   : > { %9981 = vst [vmem:[#allocation44_spill] sm:$0xff] %v8799_v8  ;;  %v8801_v16 = vpop.permute.xlu1 %2366 }
 0x340   : > { %9982 = vst [vmem:[#allocation45_spill] sm:$0xff] %v8801_v16 }
 0x342   : > { %v8803_v24 = vpop.permute.xlu0 %1322 }
 0x343   : > { %9983 = vst [vmem:[#allocation46_spill] sm:$0xff] %v8803_v24  ;;  %v8809_v42 = vpop.permute.xlu1 %1501 }
 0x344   : > { %9984 = vst [vmem:[#allocation47_spill] sm:$0xff] %v8809_v42 }
 0x346   : > { %v8819_v25 = vpop.permute.xlu0 %1700 }
 0x347   : > { %9985 = vst [vmem:[#allocation48_spill] sm:$0xff] %v8819_v25 }
 0x361   : > { %v5651_v21 = vpop.f32.mrb[2].mxu1 }
 0x362   : > { %v1416_v10 = vpop.f32.mrb[3].mxu1  ;;  %v1505_v28 = vmul.f32 %v5651_v21, %v8742_v19  ;;  %v2825_v21 = vld [vmem:[#allocation7 + $0x8] sm:$0xff] }
 0x363   : > { %v1504_v27 = vmul.f32 %v8738_v54, %v1416_v10  ;;  %v8825_v10 = vpop.permute.xlu1 %1882 }
 0x365   : > { %v5654_v11 = vpop.f32.mrb[4].mxu1 }
 0x366   : > { %v1426_v23 = vpop.f32.mrb[5].mxu1  ;;  %v1507_v53 = vmul.f32 %v5654_v11, %v8761_v22 }
 0x367   : > { %v5607_v17 = vpop.f32.mrb[8].mxu0  ;;  %v1506_v14 = vmul.f32 %v8750_v57, %v1426_v23 }
 0x368   : > { %v1326_v30 = vmul.f32 %v5607_v17, %v8740_v39  ;;  %v1238_v32 = vpop.f32.mrb[9].mxu0  ;;  %v9990_v39 = vmov 0.0|0.0  }
 0x369   : > { %v1325_v51 = vmul.f32 %v8736_v48, %v1238_v32 }
 0x36a   : > { %v8811_v43 = vadd.f32 %v1505_v28, %v1326_v30  ;;  %v5657_v26 = vpop.f32.mrb[6].mxu1  ;;  %v8829_v28 = vpack.c.bf16 %v2825_v21, %v2824_v47  ;;  %v8847_v21 = vpop.permute.xlu1 %2371 }
 0x36b   : > { %v8813_v37 = vadd.f32 %v1504_v27, %v1325_v51  ;;  %v5610_v45 = vpop.f32.mrb[10].mxu0  ;;  %v1436_v31 = vpop.f32.mrb[7].mxu1  ;;  %v1509_v11 = vmul.f32 %v5657_v26, %v8779_v62  ;;  %v2827_v26 = vld [vmem:[#allocation7 + $0x18] sm:$0xff] }
 0x36c   : > { %v1328_v59 = vmul.f32 %v5610_v45, %v8759_v7  ;;  %v1248_v35 = vpop.f32.mrb[11].mxu0  ;;  %v1508_v30 = vmul.f32 %v8771_v44, %v1436_v31  ;;  %6781 = vmatpush3.bf16.msra.mxu1 %v8829_v28  ;;  %v2838_v44 = vld [vmem:[#allocation7 + $0x70] sm:$0xff] }
 0x36d   : > { %v1327_v2 = vmul.f32 %v8746_v38, %v1248_v35  ;;  %6782 = vmatprep.subr.bf16.mxu1 %v9896_v56 }
 0x36e   : > { %v8821_v41 = vadd.f32 %v1507_v53, %v1328_v59  ;;  %v5660_v40 = vpop.f32.mrb[8].mxu1  ;;  %v2826_v53 = vld [vmem:[#allocation7 + $0x10] sm:$0xff]  ;;  %v8839_v59 = vpop.permute.xlu0 %2189 }
 0x36f   : > { %v8823_v50 = vadd.f32 %v1506_v14, %v1327_v2  ;;  %v5613_v1 = vpop.f32.mrb[12].mxu0  ;;  %v1446_v33 = vpop.f32.mrb[9].mxu1  ;;  %9986 = vst [vmem:[#allocation49_spill] sm:$0xff] %v8839_v59  ;;  %v1511_v35 = vmul.f32 %v5660_v40, %v8809_v42  ;;  %v8843_v2 = vpack.c.bf16 %v2827_v26, %v2826_v53  ;;  %v2828_v40 = vld [vmem:[#allocation7 + $0x20] sm:$0xff] }
 0x370   : > { %v1330_v17 = vmul.f32 %v5613_v1, %v8777_v61  ;;  %v1258_v23 = vpop.f32.mrb[13].mxu0  ;;  %v1510_v1 = vmul.f32 %v8791_v13, %v1446_v33  ;;  %v2830_v33 = vld [vmem:[#allocation7 + $0x30] sm:$0xff]  ;;  %v8861_v53 = vpop.permute.xlu1 %2553  ;;  %v2837_v13 = vld [vmem:[#allocation7 + $0x68] sm:$0xff]  ;;  %v2839_v61 = vld [vmem:[#allocation7 + $0x78] sm:$0xff] }
 0x371   : > { %v1329_v32 = vmul.f32 %v8769_v4, %v1258_v23  ;;  %6784 = vmatpush3.bf16.msra.mxu1 %v8843_v2  ;;  %v2829_v23 = vld [vmem:[#allocation7 + $0x28] sm:$0xff] }
 0x372   : > { %v8833_v27 = vadd.f32 %v1509_v11, %v1330_v17  ;;  %6785 = vmatprep.subr.bf16.mxu1 %v9896_v56 }
 0x373   : > { %v8836_v51 = vadd.f32 %v1508_v30, %v1329_v32  ;;  %v5616_v45 = vpop.f32.mrb[14].mxu0  ;;  %v8855_v30 = vpack.c.bf16 %v2829_v23, %v2828_v40  ;;  %v8857_v32 = vpop.permute.xlu0 %2548 }
 0x374   : > { %v1332_v14 = vmul.f32 %v5616_v45, %v8803_v24  ;;  %v1268_v31 = vpop.f32.mrb[15].mxu0  ;;  %v2831_v45 = vld [vmem:[#allocation7 + $0x38] sm:$0xff] }
 0x375   : > { %v1331_v47 = vmul.f32 %v8789_v5, %v1268_v31  ;;  %6787 = vmatpush3.bf16.msra.mxu1 %v8855_v30  ;;  %v8863_v26 = vpack.c.bf16 %v2831_v45, %v2830_v33  ;;  %v2834_v33 = vld [vmem:[#allocation7 + $0x50] sm:$0xff]  ;;  %v2835_v45 = vld [vmem:[#allocation7 + $0x58] sm:$0xff] }
 0x376   : > { %v8849_v11 = vadd.f32 %v1511_v35, %v1332_v14  ;;  %6788 = vmatprep.subr.bf16.mxu1 %v9896_v56  ;;  %v2832_v35 = vld [vmem:[#allocation7 + $0x40] sm:$0xff]  ;;  %v2833_v14 = vld [vmem:[#allocation7 + $0x48] sm:$0xff]  ;;  %v8875_v5 = vpack.c.bf16 %v2835_v45, %v2834_v33 }
 0x377   : > { %v8852_v17 = vadd.f32 %v1510_v1, %v1331_v47  ;;  %v8867_v31 = vpop.permute.xlu0 %1705  ;;  %v8869_v1 = vpack.c.bf16 %v2833_v14, %v2832_v35  ;;  %v8871_v47 = vpop.permute.xlu1 %1887  ;;  %v8880_v35 = vpack.c.bf16 %v2837_v13, %v2836_v9  ;;  %v8890_v9 = vpack.c.bf16 %v2839_v61, %v2838_v44 }
 0x378   : > { %9987 = vst [vmem:[#allocation50_spill] sm:$0xff] %v8871_v47 }
 0x379   : > { %6790 = vmatpush3.bf16.msra.mxu1 %v8863_v26 }
 0x37a   : > { %6791 = vmatprep.subr.bf16.mxu1 %v9896_v56 }
 0x37b   : > { %v8877_v24 = vpop.permute.xlu0 %2194  ;;  %v8883_v62 = vpop.permute.xlu1 %2376 }
 0x37c   : > { %9988 = vst [vmem:[#allocation51_spill] sm:$0xff] %v8877_v24  ;;  %9989 = vst [vmem:[#allocation52_spill] sm:$0xff] %v8883_v62 }
 0x37d   : > { %6793 = vmatpush3.bf16.msra.mxu1 %v8869_v1 }
 0x37e   : > { %6794 = vmatprep.subr.bf16.mxu1 %v9896_v56 }
 0x381   : > { %6796 = vmatpush3.bf16.msra.mxu1 %v8875_v5 }
 0x382   : > { %v5739_v40 = vpop.f32.mrb[10].mxu1  ;;  %6797 = vmatprep.subr.bf16.mxu1 %v9896_v56 }
 0x383   : > { %v1807_v23 = vpop.f32.mrb[11].mxu1  ;;  %v1896_v57 = vmul.f32 %v5739_v40, %v8767_v0  ;;  %v8896_v40 = vpop.permute.xlu0 %2558 }
 0x384   : > { %v1895_v13 = vmul.f32 %v8765_v29, %v1807_v23  ;;  %v8899_v0 = vpop.permute.xlu1 %2735 }
 0x385   : > { %6799 = vmatpush3.bf16.msra.mxu1 %v8880_v35  ;;  %9991 = vst [vmem:[#allocation53_spill] sm:$0xff] %v8899_v0 }
 0x386   : > { %v5742_v42 = vpop.f32.mrb[12].mxu1  ;;  %6800 = vmatprep.subr.bf16.mxu1 %v9990_v39 }
 0x387   : > { %v5695_v14 = vpop.f32.mrb[16].mxu0  ;;  %v1817_v4 = vpop.f32.mrb[13].mxu1  ;;  %v1898_v44 = vmul.f32 %v5742_v42, %v8783_v52 }
 0x388   : > { %v1709_v38 = vmul.f32 %v5695_v14, %v8756_v46  ;;  %v1620_v33 = vpop.f32.mrb[17].mxu0  ;;  %v1897_v23 = vmul.f32 %v8775_v60, %v1817_v4 }
 0x389   : > { %v1708_v45 = vmul.f32 %v8754_v55, %v1620_v33  ;;  %6802 = vmatpush3.bf16.msra.mxu1 %v8890_v9 }
 0x38a   : > { %v1717_v7 = vadd.f32 %v1709_v38, %v8811_v43  ;;  %v5745_v22 = vpop.f32.mrb[14].mxu1 }
 0x38b   : > { %v1716_v56 = vadd.f32 %v1708_v45, %v8813_v37  ;;  %v5698_v48 = vpop.f32.mrb[18].mxu0  ;;  %v1827_v54 = vpop.f32.mrb[15].mxu1  ;;  %v1900_v42 = vmul.f32 %v5745_v22, %v8825_v10 }
 0x38c   : > { %v1711_v14 = vmul.f32 %v5698_v48, %v8773_v18  ;;  %v1630_v33 = vpop.f32.mrb[19].mxu0  ;;  %v1904_v55 = vadd.f32 %v1896_v57, %v1717_v7 }
 0x38d   : > { %v1710_v38 = vmul.f32 %v8763_v58, %v1630_v33  ;;  %v1903_v43 = vadd.f32 %v1895_v13, %v1716_v56  ;;  %v8913_v58 = vpop.permute.xlu0 %2740 }
 0x38e   : > { %v1719_v61 = vadd.f32 %v1711_v14, %v8821_v41  ;;  %v5748_v37 = vpop.f32.mrb[16].mxu1  ;;  %v1899_v14 = vmul.f32 %v8795_v20, %v1827_v54  ;;  %9992 = vst [vmem:[#allocation54_spill] sm:$0xff] %v8913_v58 }
 0x38f   : > { %v1718_v48 = vadd.f32 %v1710_v38, %v8823_v50  ;;  %v5701_v45 = vpop.f32.mrb[20].mxu0  ;;  %v1837_v57 = vpop.f32.mrb[17].mxu1 }
 0x390   : > { %v1713_v7 = vmul.f32 %v5701_v45, %v8793_v6  ;;  %v1640_v18 = vpop.f32.mrb[21].mxu0  ;;  %v1906_v33 = vadd.f32 %v1898_v44, %v1719_v61  ;;  %v8915_v45 = vpop.permute.xlu1 %1892  ;;  %v1901_v54 = vmul.f32 %v8871_v47, %v1837_v57 }
 0x391   : > { %v1712_v56 = vmul.f32 %v8781_v63, %v1640_v18  ;;  %v1905_v13 = vadd.f32 %v1897_v23, %v1718_v48  ;;  %9993 = vst [vmem:[#allocation55_spill] sm:$0xff] %v8915_v45  ;;  %v1902_v22 = vmul.f32 %v5748_v37, %v8915_v45  ;;  %v8922_v48 = vpop.permute.xlu0 %2199 }
 0x392   : > { %v1721_v41 = vadd.f32 %v1713_v7, %v8833_v27  ;;  %9994 = vst [vmem:[#allocation56_spill] sm:$0xff] %v8922_v48 }
 0x393   : > { %v1720_v52 = vadd.f32 %v1712_v56, %v8836_v51  ;;  %v5704_v4 = vpop.f32.mrb[22].mxu0 }
 0x394   : > { %v1715_v50 = vmul.f32 %v5704_v4, %v8867_v31  ;;  %v1650_v38 = vpop.f32.mrb[23].mxu0  ;;  %v1908_v60 = vadd.f32 %v1900_v42, %v1721_v41 }
 0x395   : > { %v1714_v18 = vmul.f32 %v8819_v25, %v1650_v38  ;;  %v1907_v44 = vadd.f32 %v1899_v14, %v1720_v52  ;;  %v8924_v7 = vpop.permute.xlu0 %2563 }
 0x396   : > { %v1723_v27 = vadd.f32 %v1715_v50, %v8849_v11 }
 0x397   : > { %v1722_v51 = vadd.f32 %v1714_v18, %v8852_v17  ;;  %v8930_v18 = vpop.permute.xlu1 %2381 }
 0x398   : > { %v1910_v61 = vadd.f32 %v1902_v22, %v1723_v27 }
 0x399   : > { %v1909_v23 = vadd.f32 %v1901_v54, %v1722_v51  ;;  %v8926_v41 = vpop.permute.xlu0 %2204 }
 0x39a   : > { %9995 = vst [vmem:[#allocation57_spill] sm:$0xff] %v8926_v41 }
 0x39d   : > { %v8933_v25 = vpop.permute.xlu0 %2568 }
 0x3a4   : > { %v5827_v56 = vpop.f32.mrb[18].mxu1 }
 0x3a5   : > { %v2124_v42 = vpop.f32.mrb[19].mxu1  ;;  %v2213_v52 = vmul.f32 %v5827_v56, %v8787_v15 }
 0x3a6   : > { %v2212_v57 = vmul.f32 %v8785_v3, %v2124_v42  ;;  %v8940_v3 = vpop.permute.xlu0 %2209 }
 0x3a7   : > { %v5783_v4 = vpop.f32.mrb[24].mxu0  ;;  %9997 = vst [vmem:[#allocation59_spill] sm:$0xff] %v8940_v3 }
 0x3a8   : > { %v2034_v37 = vadd.f32 %v5783_v4, %v1904_v55  ;;  %v1994_v14 = vpop.f32.mrb[25].mxu0  ;;  %v5830_v11 = vpop.f32.mrb[20].mxu1 }
 0x3a9   : > { %v2033_v50 = vadd.f32 %v1994_v14, %v1903_v43  ;;  %v2134_v17 = vpop.f32.mrb[21].mxu1  ;;  %v2215_v54 = vmul.f32 %v5830_v11, %v8839_v59 }
 0x3aa   : > { %v2221_v38 = vadd.f32 %v2213_v52, %v2034_v37  ;;  %v2214_v55 = vmul.f32 %v8797_v49, %v2134_v17 }
 0x3ab   : > { %v2220_v22 = vadd.f32 %v2212_v57, %v2033_v50  ;;  %v5786_v27 = vpop.f32.mrb[26].mxu0 }
 0x3ac   : > { %v2036_v51 = vadd.f32 %v5786_v27, %v1906_v33  ;;  %v2004_v47 = vpop.f32.mrb[27].mxu0  ;;  %v5833_v45 = vpop.f32.mrb[22].mxu1 }
 0x3ad   : > { %v2035_v56 = vadd.f32 %v2004_v47, %v1905_v13  ;;  %v2144_v4 = vpop.f32.mrb[23].mxu1  ;;  %v2217_v52 = vmul.f32 %v5833_v45, %v8922_v48  ;;  %v8938_v27 = vpop.permute.xlu1 %2745 }
 0x3ae   : > { %v2223_v15 = vadd.f32 %v2215_v54, %v2036_v51  ;;  %v2216_v50 = vmul.f32 %v8877_v24, %v2144_v4  ;;  %9996 = vst [vmem:[#allocation58_spill] sm:$0xff] %v8938_v27 }
 0x3af   : > { %v2222_v42 = vadd.f32 %v2214_v55, %v2035_v56  ;;  %v5789_v43 = vpop.f32.mrb[28].mxu0 }
 0x3b0   : > { %v2038_v37 = vadd.f32 %v5789_v43, %v1908_v60  ;;  %v2014_v14 = vpop.f32.mrb[29].mxu0  ;;  %v5836_v57 = vpop.f32.mrb[24].mxu1 }
 0x3b1   : > { %v2037_v11 = vadd.f32 %v2014_v14, %v1907_v44  ;;  %v2154_v33 = vpop.f32.mrb[25].mxu1  ;;  %v2219_v13 = vmul.f32 %v5836_v57, %v8940_v3  ;;  %v8944_v43 = vpop.permute.xlu1 %2386 }
 0x3b2   : > { %v2225_v59 = vadd.f32 %v2217_v52, %v2038_v37  ;;  %v2218_v45 = vmul.f32 %v8926_v41, %v2154_v33  ;;  %9998 = vst [vmem:[#allocation60_spill] sm:$0xff] %v8944_v43 }
 0x3b3   : > { %v2224_v17 = vadd.f32 %v2216_v50, %v2037_v11  ;;  %v5792_v47 = vpop.f32.mrb[30].mxu0 }
 0x3b4   : > { %v2040_v54 = vadd.f32 %v5792_v47, %v1910_v61  ;;  %v2024_v51 = vpop.f32.mrb[31].mxu0 }
 0x3b5   : > { %v2039_v60 = vadd.f32 %v2024_v51, %v1909_v23  ;;  %v8946_v44 = vpop.permute.xlu1 %2750 }
 0x3b6   : > { %v2227_v55 = vadd.f32 %v2219_v13, %v2040_v54  ;;  %9999 = vst [vmem:[#allocation61_spill] sm:$0xff] %v8946_v44 }
 0x3b7   : > { %v2226_v56 = vadd.f32 %v2218_v45, %v2039_v60 }
 0x3b9   : > { %v8948_v4 = vpop.permute.xlu1 %2391 }
 0x3ba   : > { %10000 = vst [vmem:[#allocation62_spill] sm:$0xff] %v8948_v4 }
 0x3bd   : > { %v8951_v61 = vpop.permute.xlu1 %2755 }
 0x3be   : > { %10001 = vst [vmem:[#allocation63_spill] sm:$0xff] %v8951_v61 }
 0x3c5   : > { %v5915_v52 = vpop.f32.mrb[26].mxu1 }
 0x3c6   : > { %v2498_v37 = vpop.f32.mrb[27].mxu1  ;;  %v2587_v47 = vmul.f32 %v5915_v52, %v8861_v53  ;;  %v8961_v52 = vpop.permute.xlu1 %2578 }
 0x3c7   : > { %v2586_v54 = vmul.f32 %v8857_v32, %v2498_v37  ;;  %10002 = vst [vmem:[#allocation64_spill] sm:$0xff] %v8961_v52 }
 0x3c8   : > { %v5871_v14 = vpop.f32.mrb[32].mxu0 }
 0x3c9   : > { %v2400_v50 = vmul.f32 %v5871_v14, %v8801_v16  ;;  %v2311_v11 = vpop.f32.mrb[33].mxu0  ;;  %v5918_v57 = vpop.f32.mrb[28].mxu1 }
 0x3ca   : > { %v2399_v33 = vmul.f32 %v8799_v8, %v2311_v11  ;;  %v2508_v23 = vpop.f32.mrb[29].mxu1  ;;  %v8957_v14 = vpop.permute.xlu0 %2573  ;;  %v2589_v11 = vmul.f32 %v5918_v57, %v8924_v7 }
 0x3cb   : > { %v2408_v13 = vadd.f32 %v2400_v50, %v2221_v38  ;;  %v2588_v38 = vmul.f32 %v8896_v40, %v2508_v23 }
 0x3cc   : > { %v2407_v51 = vadd.f32 %v2399_v33, %v2220_v22  ;;  %v5874_v45 = vpop.f32.mrb[34].mxu0 }
 0x3cd   : > { %v2402_v60 = vmul.f32 %v5874_v45, %v8883_v62  ;;  %v2321_v41 = vpop.f32.mrb[35].mxu0  ;;  %v5921_v3 = vpop.f32.mrb[30].mxu1  ;;  %v2595_v24 = vadd.f32 %v2587_v47, %v2408_v13 }
 0x3ce   : > { %v2401_v16 = vmul.f32 %v8847_v21, %v2321_v41  ;;  %v2518_v48 = vpop.f32.mrb[31].mxu1  ;;  %v2594_v49 = vadd.f32 %v2586_v54, %v2407_v51  ;;  %v2591_v54 = vmul.f32 %v5921_v3, %v8957_v14  ;;  %v8967_v57 = vpop.permute.xlu0 %2396 }
 0x3cf   : > { %v2410_v8 = vadd.f32 %v2402_v60, %v2223_v15  ;;  %10003 = vst [vmem:[#allocation65_spill] sm:$0xff] %v8967_v57  ;;  %v2590_v15 = vmul.f32 %v8933_v25, %v2518_v48 }
 0x3d0   : > { %v2409_v22 = vadd.f32 %v2401_v16, %v2222_v42  ;;  %v5877_v37 = vpop.f32.mrb[36].mxu0 }
 0x3d1   : > { %v2404_v50 = vmul.f32 %v5877_v37, %v8944_v43  ;;  %v2331_v33 = vpop.f32.mrb[37].mxu0  ;;  %v5924_v45 = vpop.f32.mrb[32].mxu1  ;;  %v2597_v47 = vadd.f32 %v2589_v11, %v2410_v8 }
 0x3d2   : > { %v2403_v13 = vmul.f32 %v8930_v18, %v2331_v33  ;;  %v2528_v62 = vpop.f32.mrb[33].mxu1  ;;  %v2596_v41 = vadd.f32 %v2588_v38, %v2409_v22  ;;  %v8971_v43 = vpop.permute.xlu1 %2583 }
 0x3d3   : > { %v2412_v51 = vadd.f32 %v2404_v50, %v2225_v59  ;;  %10004 = vst [vmem:[#allocation66_spill] sm:$0xff] %v8971_v43  ;;  %v2593_v38 = vmul.f32 %v5924_v45, %v8971_v43  ;;  %v2592_v3 = vmul.f32 %v8961_v52, %v2528_v62  ;;  %v4905_v52 = vld [vmem:[%s9865_s11 + $0x230] sm:$0xff]  ;;  %v4907_v43 = vld [vmem:[%s9865_s11 + $0x240] sm:$0xff] }
 0x3d4   : > { %v2411_v60 = vadd.f32 %v2403_v13, %v2224_v17  ;;  %v5880_v23 = vpop.f32.mrb[38].mxu0 }
 0x3d5   : > { %v2406_v16 = vmul.f32 %v5880_v23, %v8967_v57  ;;  %v2341_v42 = vpop.f32.mrb[39].mxu0  ;;  %v2599_v37 = vadd.f32 %v2591_v54, %v2412_v51  ;;  %v4910_v57 = vld [vmem:[%s9865_s11 + $0x258] sm:$0xff] }
 0x3d6   : > { %v2405_v8 = vmul.f32 %v8948_v4, %v2341_v42  ;;  %v2598_v11 = vadd.f32 %v2590_v15, %v2411_v60  ;;  %v8988_v60 = vpop.permute.xlu0 %2760  ;;  %v4908_v4 = vld [vmem:[%s9865_s11 + $0x248] sm:$0xff] }
 0x3d7   : > { %v2414_v22 = vadd.f32 %v2406_v16, %v2227_v55  ;;  %10005 = vst [vmem:[#allocation67_spill] sm:$0xff] %v8988_v60 }
 0x3d8   : > { %v2413_v59 = vadd.f32 %v2405_v8, %v2226_v56 }
 0x3d9   : > { %v2601_v50 = vadd.f32 %v2593_v38, %v2414_v22 }
 0x3da   : > { %v2600_v33 = vadd.f32 %v2592_v3, %v2413_v59 }
 0x3e9   : > { %v5959_v48 = vpop.f32.mrb[40].mxu0 }
 0x3ea   : > { %v2774_v17 = vmul.f32 %v5959_v48, %v8913_v58  ;;  %v2685_v13 = vpop.f32.mrb[41].mxu0 }
 0x3eb   : > { %v2773_v23 = vmul.f32 %v8899_v0, %v2685_v13 }
 0x3ec   : > { %v8978_v54 = vadd.f32 %v2774_v17, %v2595_v24 }
 0x3ed   : > { %v8980_v51 = vadd.f32 %v2773_v23, %v2594_v49  ;;  %v5962_v42 = vpop.f32.mrb[42].mxu0 }
 0x3ee   : > { %v2776_v15 = vmul.f32 %v5962_v42, %v8946_v44  ;;  %v2695_v45 = vpop.f32.mrb[43].mxu0  ;;  %v2803_v62 = vmul.f32 %v8978_v54, %v8978_v54 }
 0x3ef   : > { %v2802_v55 = vmul.f32 %v8980_v51, %v8980_v51  ;;  %v2775_v56 = vmul.f32 %v8938_v27, %v2695_v45  ;;  %v2789_v49 = vadd.f32 %v8978_v54, %v8980_v51 }
 0x3f0   : > { %v8990_v16 = vadd.f32 %v2776_v15, %v2597_v47  ;;  %v9003_v47 = vpop.permute.xlu1 %2770 }
 0x3f1   : > { %v8994_v24 = vadd.f32 %v2775_v56, %v2596_v41  ;;  %v5965_v8 = vpop.f32.mrb[44].mxu0  ;;  %v2810_v3 = vadd.f32 %v2803_v62, %v2802_v55  ;;  %10006 = vst [vmem:[#allocation68_spill] sm:$0xff] %v9003_v47  ;;  %v9010_v62 = vpop.permute.xlu0 %2765 }
 0x3f2   : > { %v2778_v38 = vmul.f32 %v5965_v8, %v8988_v60  ;;  %v2705_v22 = vpop.f32.mrb[45].mxu0  ;;  %v2805_v41 = vmul.f32 %v8990_v16, %v8990_v16  ;;  %10007 = vst [vmem:[#allocation69_spill] sm:$0xff] %v9010_v62 }
 0x3f3   : > { %v2790_v59 = vadd.f32 %v2789_v49, %v8994_v24  ;;  %v2804_v48 = vmul.f32 %v8994_v24, %v8994_v24  ;;  %v2777_v17 = vmul.f32 %v8951_v61, %v2705_v22 }
 0x3f4   : > { %v9001_v13 = vadd.f32 %v2778_v38, %v2599_v37 }
 0x3f5   : > { %v2811_v23 = vadd.f32 %v2810_v3, %v2804_v48  ;;  %v9007_v42 = vadd.f32 %v2777_v17, %v2598_v11  ;;  %v2791_v15 = vadd.f32 %v2790_v59, %v8990_v16  ;;  %v5968_v45 = vpop.f32.mrb[46].mxu0 }
 0x3f6   : > { %v2780_v55 = vmul.f32 %v5968_v45, %v9003_v47  ;;  %v2715_v56 = vpop.f32.mrb[47].mxu0  ;;  %v2807_v11 = vmul.f32 %v9001_v13, %v9001_v13 }
 0x3f7   : > { %v2792_v49 = vadd.f32 %v2791_v15, %v9007_v42  ;;  %v2806_v37 = vmul.f32 %v9007_v42, %v9007_v42  ;;  %v2812_v8 = vadd.f32 %v2811_v23, %v2805_v41  ;;  %v2779_v38 = vmul.f32 %v9010_v62, %v2715_v56 }
 0x3f8   : > { %v9017_v22 = vadd.f32 %v2780_v55, %v2601_v50 }
 0x3f9   : > { %v2813_v3 = vadd.f32 %v2812_v8, %v2806_v37  ;;  %v9021_v59 = vadd.f32 %v2779_v38, %v2600_v33  ;;  %v2793_v48 = vadd.f32 %v2792_v49, %v9001_v13 }
 0x3fa   : > { %v2809_v41 = vmul.f32 %v9017_v22, %v9017_v22 }
 0x3fb   : > { %v2794_v17 = vadd.f32 %v2793_v48, %v9021_v59  ;;  %v2808_v15 = vmul.f32 %v9021_v59, %v9021_v59  ;;  %v2814_v45 = vadd.f32 %v2813_v3, %v2807_v11  ;;  %v4851_v3 = vld [vmem:[%s9865_s11 + $0x80] sm:$0xff] }
 0x3fd   : > { %v2795_v50 = vadd.f32 %v2794_v17, %v9017_v22  ;;  %v2815_v23 = vadd.f32 %v2814_v45, %v2808_v15  ;;  %v4852_v17 = vld [vmem:[%s9865_s11 + $0x88] sm:$0xff] }
 0x3fe   : > { %v6835_v15 = vpack.c.bf16 %v4852_v17, %v4851_v3  ;;  %v3028_v17 = vld [vmem:[%s9865_s11 + $0x38] sm:$0xff] }
 0x3ff   : > { %v2796_v55 = vrot.slane %v2795_v50, 4  ;;  %v2816_v56 = vadd.f32 %v2815_v23, %v2809_v41  ;;  %v3023_v41 = vld [vmem:[%s9865_s11 + $0x10] sm:$0xff]  ;;  %v4855_v23 = vld [vmem:[%s9865_s11 + $0xa0] sm:$0xff] }
 0x400   : > { %6836 = vmatprep.subr.bf16.mxu1 %v6835_v15 }
 0x401   : > { %v2797_v62 = vadd.f32 %v2796_v55, %v2795_v50  ;;  %v2817_v37 = vrot.slane %v2816_v56, 4  ;;  %v3024_v50 = vld [vmem:[%s9865_s11 + $0x18] sm:$0xff] }
 0x402   : > { %v6807_v55 = vpack.c.bf16 %v3024_v50, %v3023_v41  ;;  %v4862_v41 = vld [vmem:[%s9865_s11 + $0xd8] sm:$0xff] }
 0x403   : > { %v2798_v33 = vrot.slane %v2797_v62, 2  ;;  %v2818_v8 = vadd.f32 %v2817_v37, %v2816_v56  ;;  %v4856_v56 = vld [vmem:[%s9865_s11 + $0xa8] sm:$0xff]  ;;  %v3025_v37 = vld [vmem:[%s9865_s11 + $0x20] sm:$0xff] }
 0x405   : > { %v2799_v38 = vadd.f32 %v2798_v33, %v2797_v62  ;;  %v2819_v49 = vrot.slane %v2818_v8, 2  ;;  %v3021_v62 = vld [vmem:[%s9865_s11] sm:$0xff]  ;;  %v3026_v33 = vld [vmem:[%s9865_s11 + $0x28] sm:$0xff] }
 0x407   : > { %v2800_v47 = vrot.slane %v2799_v38, 1  ;;  %v2820_v48 = vadd.f32 %v2819_v49, %v2818_v8  ;;  %v6843_v8 = vpack.c.bf16 %v4856_v56, %v4855_v23  ;;  %v4857_v49 = vld [vmem:[%s9865_s11 + $0xb0] sm:$0xff]  ;;  %v3032_v56 = vld [vmem:[%s9865_s11 + $0x58] sm:$0xff] }
 0x409   : > { %v2821_v61 = vrot.slane %v2820_v48, 1  ;;  %v2801_v60 = vadd.f32 %v2800_v47, %v2799_v38  ;;  %v4854_v47 = vld [vmem:[%s9865_s11 + $0x98] sm:$0xff]  ;;  %v6811_v38 = vpack.c.bf16 %v3026_v33, %v3025_v37  ;;  %v4863_v37 = vld [vmem:[%s9865_s11 + $0xe0] sm:$0xff]  ;;  %v4864_v33 = vld [vmem:[%s9865_s11 + $0xe8] sm:$0xff] }
 0x40b   : > { %v2822_v27 = vadd.f32 %v2821_v61, %v2820_v48  ;;  %v3022_v61 = vld [vmem:[%s9865_s11 + $0x8] sm:$0xff]  ;;  %v4858_v48 = vld [vmem:[%s9865_s11 + $0xb8] sm:$0xff] }
 0x40c   : > { %v6847_v3 = vpack.c.bf16 %v4858_v48, %v4857_v49  ;;  %v3033_v49 = vld [vmem:[%s9865_s11 + $0x60] sm:$0xff]  ;;  %v3034_v48 = vld [vmem:[%s9865_s11 + $0x68] sm:$0xff] }
 0x40d   : > { %v2823_v11 = vsel %vm954_vm1, %v2801_v60, %v2822_v27  ;;  %v6803_v27 = vpack.c.bf16 %v3022_v61, %v3021_v62  ;;  %v4853_v60 = vld [vmem:[%s9865_s11 + $0x90] sm:$0xff]  ;;  %v4860_v62 = vld [vmem:[%s9865_s11 + $0xc8] sm:$0xff] }
 0x40e   : > { %6002 = vmatmul.mubr.f32.vlgmr.msra.gmra.mrb[34].mxu1 %v2823_v11  ;;  %v6839_v45 = vpack.c.bf16 %v4854_v47, %v4853_v60  ;;  %v3027_v11 = vld [vmem:[%s9865_s11 + $0x30] sm:$0xff]  ;;  %v3029_v60 = vld [vmem:[%s9865_s11 + $0x40] sm:$0xff]  ;;  %v3030_v47 = vld [vmem:[%s9865_s11 + $0x48] sm:$0xff] }
 0x40f   : > { %6838 = vmatpush3.bf16.msra.mxu1 %v6835_v15  ;;  %6804 = vmatprep.subr.bf16.mxu0 %v6803_v27  ;;  %v4859_v15 = vld [vmem:[%s9865_s11 + $0xc0] sm:$0xff]  ;;  %v6815_v61 = vpack.c.bf16 %v3028_v17, %v3027_v11  ;;  %v6819_v50 = vpack.c.bf16 %v3030_v47, %v3029_v60  ;;  %v4865_v11 = vld [vmem:[%s9865_s11 + $0xf0] sm:$0xff]  ;;  %v6827_v17 = vpack.c.bf16 %v3034_v48, %v3033_v49  ;;  %v4884_v47 = vld [vmem:[%s9865_s11 + $0x188] sm:$0xff] }
 0x410   : > { %6806 = vmatpush3.bf16.msra.mxu0 %v6803_v27  ;;  %6840 = vmatprep.subr.bf16.mxu1 %v6839_v45  ;;  %v6851_v27 = vpack.c.bf16 %v4860_v62, %v4859_v15  ;;  %v3035_v62 = vld [vmem:[%s9865_s11 + $0x70] sm:$0xff]  ;;  %v4883_v60 = vld [vmem:[%s9865_s11 + $0x180] sm:$0xff] }
 0x411   : > { %6808 = vmatprep.subr.bf16.mxu0 %v6807_v55  ;;  %v4849_v48 = vld [vmem:[%s9863_s9] ss:$0 sm:$0xff] }
 0x413   : > { %6842 = vmatpush3.bf16.msra.mxu1 %v6839_v45  ;;  %v4861_v45 = vld [vmem:[%s9865_s11 + $0xd0] sm:$0xff] }
 0x414   : > { %6810 = vmatpush3.bf16.msra.mxu0 %v6807_v55  ;;  %6844 = vmatprep.subr.bf16.mxu1 %v6843_v8  ;;  %v6855_v23 = vpack.c.bf16 %v4862_v41, %v4861_v45  ;;  %v3031_v55 = vld [vmem:[%s9865_s11 + $0x50] sm:$0xff]  ;;  %v9133_v45 = vpack.c.bf16 %v4884_v47, %v4883_v60  ;;  %v4867_v41 = vld [vmem:[%s9865_s11 + $0x100] sm:$0xff] }
 0x415   : > { %6812 = vmatprep.subr.bf16.mxu0 %v6811_v38  ;;  %v4850_v47 = vld [vmem:[%s9864_s10] ss:$0 sm:$0xff] }
 0x417   : > { %6846 = vmatpush3.bf16.msra.mxu1 %v6843_v8  ;;  %v6823_v8 = vpack.c.bf16 %v3032_v56, %v3031_v55 }
 0x418   : > { %6848 = vmatprep.subr.bf16.mxu1 %v6847_v3  ;;  %6814 = vmatpush3.bf16.msra.mxu0 %v6811_v38  ;;  %v6859_v38 = vpack.c.bf16 %v4864_v33, %v4863_v37 }
 0x419   : > { %6816 = vmatprep.subr.bf16.mxu0 %v6815_v61 }
 0x41b   : > { %6850 = vmatpush3.bf16.msra.mxu1 %v6847_v3  ;;  %v4866_v3 = vld [vmem:[%s9865_s11 + $0xf8] sm:$0xff] }
 0x41c   : > { %6852 = vmatprep.subr.bf16.mxu1 %v6851_v27  ;;  %6818 = vmatpush3.bf16.msra.mxu0 %v6815_v61  ;;  %v6863_v15 = vpack.c.bf16 %v4866_v3, %v4865_v11  ;;  %v3036_v61 = vld [vmem:[%s9865_s11 + $0x78] sm:$0xff] }
 0x41d   : > { %6820 = vmatprep.subr.bf16.mxu0 %v6819_v50 }
 0x41f   : > { %6854 = vmatpush3.bf16.msra.mxu1 %v6851_v27  ;;  %v6831_v27 = vpack.c.bf16 %v3036_v61, %v3035_v62 }
 0x420   : > { %6856 = vmatprep.subr.bf16.mxu1 %v6855_v23  ;;  %6822 = vmatpush3.bf16.msra.mxu0 %v6819_v50  ;;  %v4868_v50 = vld [vmem:[%s9865_s11 + $0x108] sm:$0xff] }
 0x421   : > { %6824 = vmatprep.subr.bf16.mxu0 %v6823_v8 }
 0x423   : > { %6858 = vmatpush3.bf16.msra.mxu1 %v6855_v23  ;;  %v9142_v23 = vpack.c.bf16 %v4868_v50, %v4867_v41 }
 0x424   : > { %6860 = vmatprep.subr.bf16.mxu1 %v6859_v38  ;;  %6826 = vmatpush3.bf16.msra.mxu0 %v6823_v8 }
 0x425   : > { %6828 = vmatprep.subr.bf16.mxu0 %v6827_v17 }
 0x427   : > { %6862 = vmatpush3.bf16.msra.mxu1 %v6859_v38 }
 0x428   : > { %6864 = vmatprep.subr.bf16.mxu1 %v6863_v15  ;;  %6830 = vmatpush3.bf16.msra.mxu0 %v6827_v17 }
 0x429   : > { %6832 = vmatprep.subr.bf16.mxu0 %v6831_v27 }
 0x42b   : > { %6866 = vmatpush3.bf16.msra.mxu1 %v6863_v15 }
 0x42c   : > { %6834 = vmatpush3.bf16.msra.mxu0 %v6831_v27  ;;  %6900 = vmatprep.subr.bf16.mxu1 %v9133_v45 }
 0x42d   : > { %6868 = vmatprep.subr.bf16.mxu0 %v9142_v23 }
 0x4e1   : > { %v2906_v55 = vpop.f32.mrb[34].mxu1 }
 0x4e2   : > { %v2910_v56 = vmul.f32 %v2906_v55, %v2906_v55  ;;  %v6003_v37 = vpop.f32.mrb[35].mxu1  ;;  %v2929_v11 = vrot.slane %v2906_v55, %v8148_v34 }
 0x4e4   : > { %v2912_v33 = vrot.slane %v2910_v56, 7  ;;  %v2937_v15 = vsub.f32 %v9017_v22, %v2929_v11  ;;  %v2930_v61 = vsub.f32 %v8980_v51, %v2929_v11  ;;  %v2931_v27 = vsub.f32 %v8978_v54, %v2929_v11 }
 0x4e5   : > { %v2936_v60 = vsub.f32 %v9021_v59, %v2929_v11  ;;  %v2932_v41 = vsub.f32 %v8994_v24, %v2929_v11  ;;  %v2933_v50 = vsub.f32 %v8990_v16, %v2929_v11  ;;  %v2935_v22 = vsub.f32 %v9001_v13, %v2929_v11 }
 0x4e6   : > { %v2914_v8 = vsub.f32 %v2906_v55, %v2912_v33  ;;  %v2934_v55 = vsub.f32 %v9007_v42, %v2929_v11 }
 0x4e8   : > { %v2915_v38 = vmax.f32 %v2914_v8, 0.0 }
 0x4ea   : > { %v2916_v49 = vadd.f32 1e-05, %v2915_v38 }
 0x4ec   : > { %7214 = vrsqrt.f32 %v2916_v49 }
 0x4f6   : > { %v7215_v3 = vpop.eup %7214 }
 0x4f7   : > { %v2925_v17 = vmul.f32 %v7215_v3, %v4849_v48 }
 0x4f9   : > { %v2941_v62 = vrot.slane %v2925_v17, %v8196_v12 }
 0x4fb   : > { %v2949_v56 = vmul.f32 %v2941_v62, %v2937_v15  ;;  %v2942_v37 = vmul.f32 %v2941_v62, %v2930_v61  ;;  %v2943_v33 = vmul.f32 %v2941_v62, %v2931_v27  ;;  %v2948_v51 = vmul.f32 %v2941_v62, %v2936_v60 }
 0x4fc   : > { %v2944_v8 = vmul.f32 %v2941_v62, %v2932_v41  ;;  %v2945_v54 = vmul.f32 %v2941_v62, %v2933_v50  ;;  %v2946_v38 = vmul.f32 %v2941_v62, %v2934_v55  ;;  %v2947_v59 = vmul.f32 %v2941_v62, %v2935_v22 }
 0x4fd   : > { %v2964_v49 = vadd.f32 %v4850_v47, %v2949_v56  ;;  %v2957_v48 = vadd.f32 %v4850_v47, %v2942_v37  ;;  %v2958_v3 = vadd.f32 %v4850_v47, %v2943_v33  ;;  %v2963_v17 = vadd.f32 %v4850_v47, %v2948_v51  ;;  %v4885_v37 = vld [vmem:[%s9865_s11 + $0x190] sm:$0xff]  ;;  %v4886_v33 = vld [vmem:[%s9865_s11 + $0x198] sm:$0xff] }
 0x4fe   : > { %v2959_v12 = vadd.f32 %v4850_v47, %v2944_v8  ;;  %v9161_v24 = vadd.f32 %v4850_v47, %v2945_v54  ;;  %v9163_v44 = vadd.f32 %v4850_v47, %v2946_v38  ;;  %v9165_v11 = vadd.f32 %v4850_v47, %v2947_v59 }
 0x4ff   : > { %v2972_v16 = vmul.f32 0.5, %v2964_v49  ;;  %v2965_v34 = vmul.f32 0.5, %v2957_v48  ;;  %v2966_v42 = vmul.f32 0.5, %v2958_v3  ;;  %v2971_v13 = vmul.f32 0.5, %v2963_v17 }
 0x500   : > { %v2967_v15 = vmul.f32 0.5, %v2959_v12  ;;  %v2968_v62 = vmul.f32 0.5, %v9161_v24  ;;  %v2969_v61 = vmul.f32 0.5, %v9163_v44  ;;  %v2970_v27 = vmul.f32 0.5, %v9165_v11 }
 0x501   : > { %7216 = vtanh.f32 %v2972_v16 }
 0x502   : > { %7218 = vtanh.f32 %v2965_v34 }
 0x503   : > { %7220 = vtanh.f32 %v2966_v42 }
 0x504   : > { %7222 = vtanh.f32 %v2971_v13 }
 0x505   : > { %7224 = vtanh.f32 %v2967_v15 }
 0x506   : > { %7226 = vtanh.f32 %v2968_v62 }
 0x507   : > { %7228 = vtanh.f32 %v2969_v61  ;;  %v6903_v61 = vpack.c.bf16 %v4886_v33, %v4885_v37  ;;  %v4870_v37 = vld [vmem:[%s9865_s11 + $0x118] sm:$0xff]  ;;  %v4888_v33 = vld [vmem:[%s9865_s11 + $0x1a8] sm:$0xff] }
 0x508   : > { %7230 = vtanh.f32 %v2970_v27 }
 0x50b   : > { %v7217_v60 = vpop.eup %7216 }
 0x50c   : > { %v7219_v41 = vpop.eup %7218  ;;  %v2988_v50 = vmul.f32 0.5, %v7217_v60 }
 0x50d   : > { %v7221_v47 = vpop.eup %7220  ;;  %v2981_v55 = vmul.f32 0.5, %v7219_v41 }
 0x50e   : > { %v7223_v22 = vpop.eup %7222  ;;  %v2996_v56 = vadd.f32 0.5, %v2988_v50  ;;  %v2982_v34 = vmul.f32 0.5, %v7221_v47 }
 0x50f   : > { %v7225_v51 = vpop.eup %7224  ;;  %v2989_v8 = vadd.f32 0.5, %v2981_v55  ;;  %v2987_v54 = vmul.f32 0.5, %v7223_v22 }
 0x510   : > { %v7227_v38 = vpop.eup %7226  ;;  %v9176_v59 = vmul.f32 %v2996_v56, %v2964_v49  ;;  %v2990_v16 = vadd.f32 0.5, %v2982_v34  ;;  %v2983_v42 = vmul.f32 0.5, %v7225_v51  ;;  %v4869_v56 = vld [vmem:[%s9865_s11 + $0x110] sm:$0xff] }
 0x511   : > { %v7229_v13 = vpop.eup %7228  ;;  %v9178_v15 = vmul.f32 %v2989_v8, %v2957_v48  ;;  %v2995_v62 = vadd.f32 0.5, %v2987_v54  ;;  %v2984_v27 = vmul.f32 0.5, %v7227_v38 }
 0x512   : > { %v7231_v60 = vpop.eup %7230  ;;  %6080 = vmatprep.mubr.f32.mxu1 %v9176_v59  ;;  %v9181_v41 = vmul.f32 %v2990_v16, %v2958_v3  ;;  %v3012_v50 = vrot.slane %v9176_v59, 7  ;;  %v2991_v47 = vadd.f32 0.5, %v2983_v42  ;;  %v2985_v55 = vmul.f32 0.5, %v7229_v13 }
 0x513   : > { %6081 = vmatmul.mubr.f32.vlgmr.msra.gmra.mrb[36].mxu1 %v9178_v15  ;;  %v9185_v49 = vmul.f32 %v2995_v62, %v2963_v17  ;;  %v3005_v22 = vrot.slane %v9178_v15, 7  ;;  %v2992_v48 = vadd.f32 0.5, %v2984_v27  ;;  %v2986_v34 = vmul.f32 0.5, %v7231_v60  ;;  %v4887_v17 = vld [vmem:[%s9865_s11 + $0x1a0] sm:$0xff]  ;;  %v4872_v60 = vld [vmem:[%s9865_s11 + $0x128] sm:$0xff] }
 0x514   : > { %6902 = vmatpush3.bf16.msra.mxu1 %v9133_v45  ;;  %6083 = vmatprep.mubr.f32.mxu1 %v9181_v41  ;;  %v9193_v3 = vmul.f32 %v2991_v47, %v2959_v12  ;;  %v2993_v51 = vadd.f32 0.5, %v2985_v55  ;;  %v3006_v45 = vrot.slane %v9181_v41, 7  ;;  %v6871_v42 = vpack.c.bf16 %v4870_v37, %v4869_v56  ;;  %v4871_v27 = vld [vmem:[%s9865_s11 + $0x120] sm:$0xff]  ;;  %v4889_v47 = vld [vmem:[%s9865_s11 + $0x1b0] sm:$0xff]  ;;  %v4890_v55 = vld [vmem:[%s9865_s11 + $0x1b8] sm:$0xff] }
 0x515   : > { %v3011_v8 = vrot.slane %v9185_v49, 7  ;;  %6904 = vmatprep.subr.bf16.mxu1 %v6903_v61  ;;  %v9207_v12 = vmul.f32 %v2992_v48, %v9161_v24  ;;  %v2994_v54 = vadd.f32 0.5, %v2986_v34  ;;  %v9211_v38 = vsel %vm1147_vm2, %v3012_v50, %v3005_v22  ;;  %v4873_v34 = vld [vmem:[%s9865_s11 + $0x130] sm:$0xff] }
 0x516   : > { %v6907_v13 = vpack.c.bf16 %v4888_v33, %v4887_v17  ;;  %v3007_v24 = vrot.slane %v9193_v3, 7  ;;  %v9223_v62 = vmul.f32 %v2993_v51, %v9163_v44  ;;  %v6911_v56 = vpack.c.bf16 %v4890_v55, %v4889_v47  ;;  %v4891_v33 = vld [vmem:[%s9865_s11 + $0x1c0] sm:$0xff]  ;;  %v4892_v51 = vld [vmem:[%s9865_s11 + $0x1c8] sm:$0xff] }
 0x517   : > { %v9217_v16 = vsel %vm1147_vm2, %v3011_v8, %v3012_v50  ;;  %6084 = vmatmul.mubr.f32.gmra.mrb[38].mxu1 %v9193_v3  ;;  %v9234_v50 = vsel %vm1147_vm2, %v3005_v22, %v3006_v45  ;;  %v9239_v44 = vmul.f32 %v2994_v54, %v9165_v11  ;;  %v6875_v22 = vpack.c.bf16 %v4872_v60, %v4871_v27  ;;  %v4875_v54 = vld [vmem:[%s9865_s11 + $0x140] sm:$0xff]  ;;  %v4893_v27 = vld [vmem:[%s9865_s11 + $0x1d0] sm:$0xff]  ;;  %v4894_v60 = vld [vmem:[%s9865_s11 + $0x1d8] sm:$0xff] }
 0x518   : > { %6036 = vmatprep.mubr.f32.mxu0 %v9217_v16  ;;  %6906 = vmatpush3.bf16.msra.mxu1 %v6903_v61  ;;  %v3008_v61 = vrot.slane %v9207_v12, 7  ;;  %v9251_v48 = vsel %vm1147_vm2, %v3006_v45, %v3007_v24  ;;  %v3009_v11 = vrot.slane %v9223_v62, 7  ;;  %v3288_v47 = vrot.slane %v9178_v15, 1 }
 0x519   : > { %6037 = vmatmul.mubr.f32.vlgmr.msra.gmra.mrb[48].mxu0 %v9211_v38  ;;  %6086 = vmatprep.mubr.f32.mxu1 %v9207_v12  ;;  %v3010_v17 = vrot.slane %v9239_v44, 7  ;;  %v9930_v55 = vrot.slane %v9176_v59, 1  ;;  %v3293_v0 = vrot.slane %v9239_v44, 1 }
 0x51a   : > { %6870 = vmatpush3.bf16.msra.mxu0 %v9142_v23  ;;  %6039 = vmatprep.mubr.f32.mxu0 %v9234_v50  ;;  %v4874_v23 = vld [vmem:[%s9865_s11 + $0x138] sm:$0xff]  ;;  %v9264_v37 = vsel %vm1147_vm2, %v3007_v24, %v3008_v61  ;;  %v6915_v24 = vpack.c.bf16 %v4892_v51, %v4891_v33  ;;  %v4895_v33 = vld [vmem:[%s9865_s11 + $0x1e0] sm:$0xff] }
 0x51b   : > { %6872 = vmatprep.subr.bf16.mxu0 %v6871_v42  ;;  %6908 = vmatprep.subr.bf16.mxu1 %v6907_v13  ;;  %v6879_v45 = vpack.c.bf16 %v4874_v23, %v4873_v34  ;;  %v6919_v23 = vpack.c.bf16 %v4894_v60, %v4893_v27  ;;  %v4878_v51 = vld [vmem:[%s9865_s11 + $0x158] sm:$0xff]  ;;  %v4879_v60 = vld [vmem:[%s9865_s11 + $0x160] sm:$0xff] }
 0x51c   : > { %6087 = vmatmul.mubr.f32.gmra.mrb[40].mxu1 %v9223_v62  ;;  %v4898_v27 = vld [vmem:[%s9865_s11 + $0x1f8] sm:$0xff] }
 0x51d   : > { %6040 = vmatmul.mubr.f32.gmra.mrb[50].mxu0 %v9251_v48  ;;  %6910 = vmatpush3.bf16.msra.mxu1 %v6907_v13  ;;  %v9280_v13 = vsel %vm1147_vm2, %v3008_v61, %v3009_v11  ;;  %v9295_v61 = vsel %vm1147_vm2, %v3009_v11, %v3010_v17  ;;  %v4896_v11 = vld [vmem:[%s9865_s11 + $0x1e8] sm:$0xff] }
 0x51e   : > { %6874 = vmatpush3.bf16.msra.mxu0 %v6871_v42  ;;  %6042 = vmatprep.mubr.f32.mxu0 %v9264_v37  ;;  %v4876_v42 = vld [vmem:[%s9865_s11 + $0x148] sm:$0xff] }
 0x51f   : > { %6089 = vmatprep.mubr.f32.mxu1 %v9239_v44  ;;  %6876 = vmatprep.subr.bf16.mxu0 %v6875_v22  ;;  %v6883_v34 = vpack.c.bf16 %v4876_v42, %v4875_v54  ;;  %v9326_v54 = vsel %vm1528_vm3, %v9930_v55, %v3288_v47  ;;  %v4897_v42 = vld [vmem:[%s9865_s11 + $0x1f0] sm:$0xff]  ;;  %v4903_v55 = vld [vmem:[%s9865_s11 + $0x220] sm:$0xff] }
 0x520   : > { %6912 = vmatprep.subr.bf16.mxu1 %v6911_v56  ;;  %6090 = vmatmul.mubr.f32.gmra.mrb[42].mxu1 %v9185_v49 }
 0x521   : > { %6043 = vmatmul.mubr.f32.gmra.mrb[52].mxu0 %v9280_v13  ;;  %6914 = vmatpush3.bf16.msra.mxu1 %v6911_v56  ;;  %v4877_v56 = vld [vmem:[%s9865_s11 + $0x150] sm:$0xff] }
 0x522   : > { %6878 = vmatpush3.bf16.msra.mxu0 %v6875_v22  ;;  %6045 = vmatprep.mubr.f32.mxu0 %v9295_v61  ;;  %v9311_v22 = vsel %vm1147_vm2, %v3010_v17, %v3011_v8  ;;  %v6923_v8 = vpack.c.bf16 %v4896_v11, %v4895_v33  ;;  %v6887_v17 = vpack.c.bf16 %v4878_v51, %v4877_v56  ;;  %v4915_v11 = vld [vmem:[%s9865_s11 + $0x280] sm:$0xff]  ;;  %v4916_v56 = vld [vmem:[%s9865_s11 + $0x288] sm:$0xff]  ;;  %v4881_v51 = vld [vmem:[%s9865_s11 + $0x170] sm:$0xff] }
 0x523   : > { %6168 = vmatprep.mubr.f32.mxu1 %v9211_v38  ;;  %6880 = vmatprep.subr.bf16.mxu0 %v6879_v45 }
 0x524   : > { %6916 = vmatprep.subr.bf16.mxu1 %v6915_v24 }
 0x525   : > { %6046 = vmatmul.mubr.f32.gmra.mrb[54].mxu0 %v9311_v22  ;;  %6918 = vmatpush3.bf16.msra.mxu1 %v6915_v24  ;;  %v6927_v24 = vpack.c.bf16 %v4898_v27, %v4897_v42  ;;  %v4917_v27 = vld [vmem:[%s9865_s11 + $0x290] sm:$0xff] }
 0x526   : > { %6882 = vmatpush3.bf16.msra.mxu0 %v6879_v45  ;;  %6124 = vmatprep.mubr.f32.mxu0 %v9326_v54  ;;  %v4880_v45 = vld [vmem:[%s9865_s11 + $0x168] sm:$0xff] }
 0x527   : > { %6884 = vmatprep.subr.bf16.mxu0 %v6883_v34  ;;  %6920 = vmatprep.subr.bf16.mxu1 %v6919_v23  ;;  %v6891_v33 = vpack.c.bf16 %v4880_v45, %v4879_v60  ;;  %v4918_v60 = vld [vmem:[%s9865_s11 + $0x298] sm:$0xff]  ;;  %v4899_v45 = vld [vmem:[%s9865_s11 + $0x200] sm:$0xff] }
 0x529   : > { %6922 = vmatpush3.bf16.msra.mxu1 %v6919_v23  ;;  %v6963_v23 = vpack.c.bf16 %v4916_v56, %v4915_v11  ;;  %v3289_v56 = vrot.slane %v9181_v41, 1 }
 0x52a   : > { %6886 = vmatpush3.bf16.msra.mxu0 %v6883_v34  ;;  %6924 = vmatprep.subr.bf16.mxu1 %v6923_v8  ;;  %v4882_v34 = vld [vmem:[%s9865_s11 + $0x178] sm:$0xff] }
 0x52b   : > { %6888 = vmatprep.subr.bf16.mxu0 %v6887_v17  ;;  %v6895_v42 = vpack.c.bf16 %v4882_v34, %v4881_v51  ;;  %v4901_v51 = vld [vmem:[%s9865_s11 + $0x210] sm:$0xff]  ;;  %v4902_v34 = vld [vmem:[%s9865_s11 + $0x218] sm:$0xff] }
 0x52d   : > { %6926 = vmatpush3.bf16.msra.mxu1 %v6923_v8  ;;  %v4900_v8 = vld [vmem:[%s9865_s11 + $0x208] sm:$0xff] }
 0x52e   : > { %6890 = vmatpush3.bf16.msra.mxu0 %v6887_v17  ;;  %6928 = vmatprep.subr.bf16.mxu1 %v6927_v24  ;;  %v6967_v17 = vpack.c.bf16 %v4918_v60, %v4917_v27  ;;  %v6931_v11 = vpack.c.bf16 %v4900_v8, %v4899_v45  ;;  %v4920_v27 = vld [vmem:[%s9865_s11 + $0x2a8] sm:$0xff]  ;;  %v6935_v60 = vpack.c.bf16 %v4902_v34, %v4901_v51  ;;  %v4921_v34 = vld [vmem:[%s9865_s11 + $0x2b0] sm:$0xff] }
 0x52f   : > { %6892 = vmatprep.subr.bf16.mxu0 %v6891_v33  ;;  %v9385_v45 = vsel %vm1528_vm3, %v3288_v47, %v3289_v56  ;;  %v3292_v47 = vrot.slane %v9223_v62, 1 }
 0x531   : > { %6930 = vmatpush3.bf16.msra.mxu1 %v6927_v24  ;;  %v3290_v24 = vrot.slane %v9193_v3, 1 }
 0x532   : > { %6894 = vmatpush3.bf16.msra.mxu0 %v6891_v33  ;;  %6964 = vmatprep.subr.bf16.mxu1 %v6963_v23  ;;  %v4919_v33 = vld [vmem:[%s9865_s11 + $0x2a0] sm:$0xff] }
 0x533   : > { %6896 = vmatprep.subr.bf16.mxu0 %v6895_v42  ;;  %v6971_v8 = vpack.c.bf16 %v4920_v27, %v4919_v33  ;;  %v9398_v51 = vsel %vm1528_vm3, %v3289_v56, %v3290_v24  ;;  %v4922_v33 = vld [vmem:[%s9865_s11 + $0x2b8] sm:$0xff] }
 0x534   : > { %6169 = vmatmul.mubr.f32.vlgmr.msra.gmra.mrb[44].mxu1 %v9234_v50  ;;  %v6975_v58 = vpack.c.bf16 %v4922_v33, %v4921_v34 }
 0x535   : > { %6171 = vmatprep.mubr.f32.mxu1 %v9251_v48  ;;  %6966 = vmatpush3.bf16.msra.mxu1 %v6963_v23  ;;  %v3291_v23 = vrot.slane %v9207_v12, 1 }
 0x536   : > { %6898 = vmatpush3.bf16.msra.mxu0 %v6895_v42  ;;  %6968 = vmatprep.subr.bf16.mxu1 %v6967_v17  ;;  %v4904_v42 = vld [vmem:[%s9865_s11 + $0x228] sm:$0xff] }
 0x537   : > { %6932 = vmatprep.subr.bf16.mxu0 %v6931_v11  ;;  %v6939_v27 = vpack.c.bf16 %v4904_v42, %v4903_v55  ;;  %v9411_v56 = vsel %vm1528_vm3, %v3290_v24, %v3291_v23  ;;  %v9424_v55 = vsel %vm1528_vm3, %v3291_v23, %v3292_v47  ;;  %v4923_v24 = vld [vmem:[%s9865_s11 + $0x2c0] sm:$0xff]  ;;  %v4924_v42 = vld [vmem:[%s9865_s11 + $0x2c8] sm:$0xff]  ;;  %v9437_v23 = vsel %vm1528_vm3, %v3292_v47, %v3293_v0 }
 0x538   : > { %6172 = vmatmul.mubr.f32.gmra.mrb[46].mxu1 %v9264_v37  ;;  %v6979_v33 = vpack.c.bf16 %v4924_v42, %v4923_v24  ;;  %v6947_v47 = vpack.c.bf16 %v4908_v4, %v4907_v43  ;;  %v4909_v42 = vld [vmem:[%s9865_s11 + $0x250] sm:$0xff] }
 0x539   : > { %6125 = vmatmul.mubr.f32.vlgmr.msra.gmra.mrb[56].mxu0 %v9385_v45  ;;  %6174 = vmatprep.mubr.f32.mxu1 %v9280_v13  ;;  %v6951_v43 = vpack.c.bf16 %v4910_v57, %v4909_v42  ;;  %v4947_v42 = vld [vmem:[%s9865_s11 + $0x380] sm:$0xff] }
 0x53a   : > { %6127 = vmatprep.mubr.f32.mxu0 %v9398_v51  ;;  %6934 = vmatpush3.bf16.msra.mxu0 %v6931_v11  ;;  %v3294_v11 = vrot.slane %v9185_v49, 1 }
 0x53b   : > { %6970 = vmatpush3.bf16.msra.mxu1 %v6967_v17  ;;  %6936 = vmatprep.subr.bf16.mxu0 %v6935_v60  ;;  %v4906_v17 = vld [vmem:[%s9865_s11 + $0x238] sm:$0xff] }
 0x53c   : > { %6175 = vmatmul.mubr.f32.gmra.mrb[48].mxu1 %v9295_v61  ;;  %6972 = vmatprep.subr.bf16.mxu1 %v6971_v8  ;;  %v6943_v34 = vpack.c.bf16 %v4906_v17, %v4905_v52  ;;  %v9449_v52 = vsel %vm1528_vm3, %v3293_v0, %v3294_v11  ;;  %v10008_v17 = vrot.slane %v9176_v59, 1 }
 0x53d   : > { %6128 = vmatmul.mubr.f32.gmra.mrb[58].mxu0 %v9411_v56  ;;  %6177 = vmatprep.mubr.f32.mxu1 %v9311_v22 }
 0x53e   : > { %6130 = vmatprep.mubr.f32.mxu0 %v9424_v55  ;;  %6938 = vmatpush3.bf16.msra.mxu0 %v6935_v60  ;;  %v4925_v60 = vld [vmem:[%s9865_s11 + $0x2d0] sm:$0xff]  ;;  %v9463_v0 = vsel %vm1528_vm3, %v3294_v11, %v10008_v17  ;;  %v4912_v11 = vld [vmem:[%s9865_s11 + $0x268] sm:$0xff]  ;;  %v4914_v17 = vld [vmem:[%s9865_s11 + $0x278] sm:$0xff] }
 0x53f   : > { %6974 = vmatpush3.bf16.msra.mxu1 %v6971_v8  ;;  %6940 = vmatprep.subr.bf16.mxu0 %v6939_v27  ;;  %v4926_v8 = vld [vmem:[%s9865_s11 + $0x2d8] sm:$0xff] }
 0x540   : > { %6178 = vmatmul.mubr.f32.gmra.mrb[50].mxu1 %v9217_v16  ;;  %6976 = vmatprep.subr.bf16.mxu1 %v6975_v58  ;;  %v6983_v24 = vpack.c.bf16 %v4926_v8, %v4925_v60  ;;  %v4929_v60 = vld [vmem:[%s9865_s11 + $0x2f0] sm:$0xff] }
 0x541   : > { %6131 = vmatmul.mubr.f32.gmra.mrb[60].mxu0 %v9437_v23  ;;  %6256 = vmatprep.mubr.f32.mxu1 %v9385_v45  ;;  %v4913_v8 = vld [vmem:[%s9865_s11 + $0x270] sm:$0xff] }
 0x542   : > { %6133 = vmatprep.mubr.f32.mxu0 %v9449_v52  ;;  %6942 = vmatpush3.bf16.msra.mxu0 %v6939_v27  ;;  %v4911_v27 = vld [vmem:[%s9865_s11 + $0x260] sm:$0xff] }
 0x543   : > { %6978 = vmatpush3.bf16.msra.mxu1 %v6975_v58  ;;  %6944 = vmatprep.subr.bf16.mxu0 %v6943_v34  ;;  %v4927_v58 = vld [vmem:[%s9865_s11 + $0x2e0] sm:$0xff]  ;;  %v6955_v57 = vpack.c.bf16 %v4912_v11, %v4911_v27  ;;  %v4932_v27 = vld [vmem:[%s9865_s11 + $0x308] sm:$0xff]  ;;  %v4949_v11 = vld [vmem:[%s9865_s11 + $0x390] sm:$0xff] }
 0x544   : > { %6980 = vmatprep.subr.bf16.mxu1 %v6979_v33  ;;  %v6987_v4 = vpack.c.bf16 %v4928_v36, %v4927_v58  ;;  %v4931_v36 = vld [vmem:[%s9865_s11 + $0x300] sm:$0xff] }
 0x545   : > { %6134 = vmatmul.mubr.f32.gmra.mrb[62].mxu0 %v9463_v0 }
 0x546   : > { %6946 = vmatpush3.bf16.msra.mxu0 %v6943_v34  ;;  %6212 = vmatprep.mubr.f32.mxu0 %v9178_v15  ;;  %v4930_v34 = vld [vmem:[%s9865_s11 + $0x2f8] sm:$0xff] }
 0x547   : > { %6982 = vmatpush3.bf16.msra.mxu1 %v6979_v33  ;;  %6948 = vmatprep.subr.bf16.mxu0 %v6947_v47  ;;  %v6991_v33 = vpack.c.bf16 %v4930_v34, %v4929_v60  ;;  %v4933_v34 = vld [vmem:[%s9865_s11 + $0x310] sm:$0xff] }
 0x548   : > { %6984 = vmatprep.subr.bf16.mxu1 %v6983_v24 }
 0x54a   : > { %6950 = vmatpush3.bf16.msra.mxu0 %v6947_v47  ;;  %v4948_v47 = vld [vmem:[%s9865_s11 + $0x388] sm:$0xff] }
 0x54b   : > { %6986 = vmatpush3.bf16.msra.mxu1 %v6983_v24  ;;  %6952 = vmatprep.subr.bf16.mxu0 %v6951_v43  ;;  %v6959_v24 = vpack.c.bf16 %v4914_v17, %v4913_v8  ;;  %v7027_v58 = vpack.c.bf16 %v4948_v47, %v4947_v42  ;;  %v4934_v8 = vld [vmem:[%s9865_s11 + $0x318] sm:$0xff]  ;;  %v4935_v47 = vld [vmem:[%s9865_s11 + $0x320] sm:$0xff] }
 0x54c   : > { %6988 = vmatprep.subr.bf16.mxu1 %v6987_v4  ;;  %v6999_v17 = vpack.c.bf16 %v4934_v8, %v4933_v34  ;;  %v4938_v34 = vld [vmem:[%s9865_s11 + $0x338] sm:$0xff] }
 0x54e   : > { %6954 = vmatpush3.bf16.msra.mxu0 %v6951_v43  ;;  %v4950_v43 = vld [vmem:[%s9865_s11 + $0x398] sm:$0xff] }
 0x54f   : > { %6990 = vmatpush3.bf16.msra.mxu1 %v6987_v4  ;;  %6956 = vmatprep.subr.bf16.mxu0 %v6955_v57  ;;  %v6995_v4 = vpack.c.bf16 %v4932_v27, %v4931_v36  ;;  %v7031_v60 = vpack.c.bf16 %v4950_v43, %v4949_v11  ;;  %v4954_v36 = vld [vmem:[%s9865_s11 + $0x3b8] sm:$0xff]  ;;  %v4937_v43 = vld [vmem:[%s9865_s11 + $0x330] sm:$0xff] }
 0x550   : > { %6992 = vmatprep.subr.bf16.mxu1 %v6991_v33  ;;  %v7007_v8 = vpack.c.bf16 %v4938_v34, %v4937_v43  ;;  %v4942_v43 = vld [vmem:[%s9865_s11 + $0x358] sm:$0xff] }
 0x552   : > { %6958 = vmatpush3.bf16.msra.mxu0 %v6955_v57  ;;  %v4951_v57 = vld [vmem:[%s9865_s11 + $0x3a0] sm:$0xff] }
 0x553   : > { %6994 = vmatpush3.bf16.msra.mxu1 %v6991_v33  ;;  %6960 = vmatprep.subr.bf16.mxu0 %v6959_v24  ;;  %v4952_v33 = vld [vmem:[%s9865_s11 + $0x3a8] sm:$0xff] }
 0x554   : > { %7028 = vmatprep.subr.bf16.mxu1 %v7027_v58  ;;  %v7035_v42 = vpack.c.bf16 %v4952_v33, %v4951_v57  ;;  %v4939_v33 = vld [vmem:[%s9865_s11 + $0x340] sm:$0xff] }
 0x556   : > { %6962 = vmatpush3.bf16.msra.mxu0 %v6959_v24  ;;  %6257 = vmatmul.mubr.f32.vlgmr.msra.gmra.mrb[52].mxu1 %v9398_v51  ;;  %v4936_v24 = vld [vmem:[%s9865_s11 + $0x328] sm:$0xff] }
 0x557   : > { %6259 = vmatprep.mubr.f32.mxu1 %v9411_v56  ;;  %7030 = vmatpush3.bf16.msra.mxu1 %v7027_v58  ;;  %v4953_v58 = vld [vmem:[%s9865_s11 + $0x3b0] sm:$0xff]  ;;  %v7003_v27 = vpack.c.bf16 %v4936_v24, %v4935_v47  ;;  %v4940_v47 = vld [vmem:[%s9865_s11 + $0x348] sm:$0xff] }
 0x558   : > { %6996 = vmatprep.subr.bf16.mxu0 %v6995_v4  ;;  %7032 = vmatprep.subr.bf16.mxu1 %v7031_v60  ;;  %v7039_v11 = vpack.c.bf16 %v4954_v36, %v4953_v58  ;;  %v7011_v24 = vpack.c.bf16 %v4940_v47, %v4939_v33  ;;  %v4941_v36 = vld [vmem:[%s9865_s11 + $0x350] sm:$0xff] }
 0x559   : > { %6213 = vmatmul.mubr.f32.vlgmr.msra.gmra.mrb[64].mxu0 %v9181_v41  ;;  %v4945_v47 = vld [vmem:[%s9865_s11 + $0x370] sm:$0xff] }
 0x55a   : > { %6215 = vmatprep.mubr.f32.mxu0 %v9193_v3  ;;  %6260 = vmatmul.mubr.f32.gmra.mrb[54].mxu1 %v9424_v55 }
 0x55b   : > { %6998 = vmatpush3.bf16.msra.mxu0 %v6995_v4  ;;  %6262 = vmatprep.mubr.f32.mxu1 %v9437_v23  ;;  %v4955_v4 = vld [vmem:[%s9865_s11 + $0x3c0] sm:$0xff] }
 0x55c   : > { %7034 = vmatpush3.bf16.msra.mxu1 %v7031_v60  ;;  %7000 = vmatprep.subr.bf16.mxu0 %v6999_v17  ;;  %v4956_v60 = vld [vmem:[%s9865_s11 + $0x3c8] sm:$0xff] }
 0x55d   : > { %6216 = vmatmul.mubr.f32.gmra.mrb[66].mxu0 %v9207_v12  ;;  %7036 = vmatprep.subr.bf16.mxu1 %v7035_v42  ;;  %v7043_v57 = vpack.c.bf16 %v4956_v60, %v4955_v4  ;;  %v4943_v4 = vld [vmem:[%s9865_s11 + $0x360] sm:$0xff]  ;;  %v4961_v60 = vld [vmem:[%s9865_s11 + $0x3f0] sm:$0xff] }
 0x55e   : > { %6218 = vmatprep.mubr.f32.mxu0 %v9223_v62  ;;  %6263 = vmatmul.mubr.f32.gmra.mrb[56].mxu1 %v9449_v52 }
 0x55f   : > { %7002 = vmatpush3.bf16.msra.mxu0 %v6999_v17  ;;  %6265 = vmatprep.mubr.f32.mxu1 %v9463_v0  ;;  %v4957_v17 = vld [vmem:[%s9865_s11 + $0x3d0] sm:$0xff] }
 0x560   : > { %7038 = vmatpush3.bf16.msra.mxu1 %v7035_v42  ;;  %7004 = vmatprep.subr.bf16.mxu0 %v7003_v27  ;;  %v4958_v42 = vld [vmem:[%s9865_s11 + $0x3d8] sm:$0xff] }
 0x561   : > { %6219 = vmatmul.mubr.f32.gmra.mrb[68].mxu0 %v9239_v44  ;;  %7040 = vmatprep.subr.bf16.mxu1 %v7039_v11  ;;  %v7047_v58 = vpack.c.bf16 %v4958_v42, %v4957_v17  ;;  %v4946_v17 = vld [vmem:[%s9865_s11 + $0x378] sm:$0xff] }
 0x562   : > { %6221 = vmatprep.mubr.f32.mxu0 %v9185_v49  ;;  %6266 = vmatmul.mubr.f32.gmra.mrb[58].mxu1 %v9326_v54  ;;  %v7023_v42 = vpack.c.bf16 %v4946_v17, %v4945_v47  ;;  %v10014_v47 = vld [vmem:[#allocation28_spill] sm:$0xff] }
 0x563   : > { %7006 = vmatpush3.bf16.msra.mxu0 %v7003_v27  ;;  %6344 = vmatprep.mubr.f32.mxu1 %v9181_v41  ;;  %v4959_v41 = vld [vmem:[%s9865_s11 + $0x3e0] sm:$0xff]  ;;  %v4960_v27 = vld [vmem:[%s9865_s11 + $0x3e8] sm:$0xff] }
 0x564   : > { %7042 = vmatpush3.bf16.msra.mxu1 %v7039_v11  ;;  %7008 = vmatprep.subr.bf16.mxu0 %v7007_v8  ;;  %v7015_v11 = vpack.c.bf16 %v4942_v43, %v4941_v36  ;;  %v7051_v34 = vpack.c.bf16 %v4960_v27, %v4959_v41  ;;  %v4965_v43 = vld [vmem:[%s9865_s11 + $0x410] sm:$0xff]  ;;  %v4966_v41 = vld [vmem:[%s9865_s11 + $0x418] sm:$0xff] }
 0x565   : > { %6222 = vmatmul.mubr.f32.gmra.mrb[70].mxu0 %v9176_v59  ;;  %7044 = vmatprep.subr.bf16.mxu1 %v7043_v57  ;;  %v7063_v27 = vpack.c.bf16 %v4966_v41, %v4965_v43 }
 0x566   : > { %6300 = vmatprep.mubr.f32.mxu0 %v9234_v50  ;;  %v4944_v50 = vld [vmem:[%s9865_s11 + $0x368] sm:$0xff] }
 0x567   : > { %7010 = vmatpush3.bf16.msra.mxu0 %v7007_v8  ;;  %v4962_v8 = vld [vmem:[%s9865_s11 + $0x3f8] sm:$0xff] }
 0x568   : > { %7046 = vmatpush3.bf16.msra.mxu1 %v7043_v57  ;;  %7012 = vmatprep.subr.bf16.mxu0 %v7011_v24  ;;  %v7019_v57 = vpack.c.bf16 %v4944_v50, %v4943_v4  ;;  %v7055_v33 = vpack.c.bf16 %v4962_v8, %v4961_v60  ;;  %v10011_v4 = vld [vmem:[#allocation23_spill] sm:$0xff]  ;;  %v10012_v50 = vld [vmem:[#allocation22_spill] sm:$0xff] }
 0x569   : > { %7048 = vmatprep.subr.bf16.mxu1 %v7047_v58 }
 0x56b   : > { %7014 = vmatpush3.bf16.msra.mxu0 %v7011_v24  ;;  %v4963_v24 = vld [vmem:[%s9865_s11 + $0x400] sm:$0xff] }
 0x56c   : > { %7050 = vmatpush3.bf16.msra.mxu1 %v7047_v58  ;;  %7016 = vmatprep.subr.bf16.mxu0 %v7015_v11  ;;  %v4964_v58 = vld [vmem:[%s9865_s11 + $0x408] sm:$0xff] }
 0x56d   : > { %7052 = vmatprep.subr.bf16.mxu1 %v7051_v34  ;;  %v7059_v36 = vpack.c.bf16 %v4964_v58, %v4963_v24  ;;  %v10015_v24 = vld [vmem:[#allocation26_spill] sm:$0xff] }
 0x56f   : > { %7018 = vmatpush3.bf16.msra.mxu0 %v7015_v11  ;;  %v4967_v11 = vld [vmem:[%s9865_s11 + $0x420] sm:$0xff] }
 0x570   : > { %7054 = vmatpush3.bf16.msra.mxu1 %v7051_v34  ;;  %7020 = vmatprep.subr.bf16.mxu0 %v7019_v57  ;;  %v4968_v34 = vld [vmem:[%s9865_s11 + $0x428] sm:$0xff] }
 0x571   : > { %7056 = vmatprep.subr.bf16.mxu1 %v7055_v33 }
 0x573   : > { %7022 = vmatpush3.bf16.msra.mxu0 %v7019_v57 }
 0x574   : > { %7058 = vmatpush3.bf16.msra.mxu1 %v7055_v33  ;;  %7024 = vmatprep.subr.bf16.mxu0 %v7023_v42 }
 0x575   : > { %7091 = vmatprep.subr.bf16.mxu1 %v9990_v39 }
 0x577   : > { %7026 = vmatpush3.bf16.msra.mxu0 %v7023_v42  ;;  %6345 = vmatmul.mubr.f32.vlgmr.msra.gmra.mrb[60].mxu1 %v9193_v3  ;;  %v4969_v3 = vld [vmem:[%s9865_s11 + $0x430] sm:$0xff] }
 0x578   : > { %6347 = vmatprep.mubr.f32.mxu1 %v9207_v12  ;;  %7060 = vmatprep.subr.bf16.mxu0 %v7059_v36  ;;  %v4970_v12 = vld [vmem:[%s9865_s11 + $0x438] sm:$0xff] }
 0x579   : > { %7093 = vmatpush3.bf16.msra.mxu1 %v8829_v28  ;;  %v7067_v28 = vpack.c.bf16 %v4968_v34, %v4967_v11 }
 0x57a   : > { %6301 = vmatmul.mubr.f32.vlgmr.msra.gmra.mrb[72].mxu0 %v9251_v48  ;;  %7094 = vmatprep.subr.bf16.mxu1 %v9990_v39 }
 0x57b   : > { %6303 = vmatprep.mubr.f32.mxu0 %v9264_v37  ;;  %6348 = vmatmul.mubr.f32.gmra.mrb[62].mxu1 %v9223_v62  ;;  %v4971_v62 = vld [vmem:[%s9865_s11 + $0x440] sm:$0xff]  ;;  %v4977_v37 = vld [vmem:[%s9865_s11 + $0x470] sm:$0xff] }
 0x57c   : > { %7062 = vmatpush3.bf16.msra.mxu0 %v7059_v36  ;;  %6350 = vmatprep.mubr.f32.mxu1 %v9239_v44  ;;  %v4972_v44 = vld [vmem:[%s9865_s11 + $0x448] sm:$0xff] }
 0x57d   : > { %7064 = vmatprep.subr.bf16.mxu0 %v7063_v27  ;;  %7096 = vmatpush3.bf16.msra.mxu1 %v8843_v2  ;;  %v7071_v2 = vpack.c.bf16 %v4970_v12, %v4969_v3  ;;  %v10018_v12 = vld [vmem:[#allocation36_spill] sm:$0xff] }
 0x57e   : > { %6304 = vmatmul.mubr.f32.gmra.mrb[74].mxu0 %v9280_v13  ;;  %7097 = vmatprep.subr.bf16.mxu1 %v9990_v39 }
 0x57f   : > { %6306 = vmatprep.mubr.f32.mxu0 %v9295_v61  ;;  %6351 = vmatmul.mubr.f32.gmra.mrb[64].mxu1 %v9185_v49  ;;  %v4973_v49 = vld [vmem:[%s9865_s11 + $0x450] sm:$0xff] }
 0x580   : > { %7066 = vmatpush3.bf16.msra.mxu0 %v7063_v27  ;;  %6353 = vmatprep.mubr.f32.mxu1 %v9176_v59  ;;  %v10009_v59 = vmov 0.0  }
 0x581   : > { %7068 = vmatprep.subr.bf16.mxu0 %v7067_v28  ;;  %7099 = vmatpush3.bf16.msra.mxu1 %v8855_v30  ;;  %v7075_v30 = vpack.c.bf16 %v4972_v44, %v4971_v62  ;;  %v10019_v44 = vld [vmem:[#allocation33_spill] sm:$0xff] }
 0x582   : > { %6307 = vmatmul.mubr.f32.gmra.mrb[76].mxu0 %v9311_v22  ;;  %7100 = vmatprep.subr.bf16.mxu1 %v9990_v39 }
 0x583   : > { %6309 = vmatprep.mubr.f32.mxu0 %v9217_v16  ;;  %6354 = vmatmul.mubr.f32.gmra.mrb[66].mxu1 %v9178_v15  ;;  %v4974_v16 = vld [vmem:[%s9865_s11 + $0x458] sm:$0xff] }
 0x584   : > { %7070 = vmatpush3.bf16.msra.mxu0 %v7067_v28  ;;  %6432 = vmatprep.mubr.msk.f32.mxu1 %vm7412_vm0, %v10009_v59  ;;  %v7079_v15 = vpack.c.bf16 %v4974_v16, %v4973_v49  ;;  %v10017_v28 = vld [vmem:[#allocation37_spill] sm:$0xff] }
 0x585   : > { %7072 = vmatprep.subr.bf16.mxu0 %v7071_v2  ;;  %7102 = vmatpush3.bf16.msra.mxu1 %v8863_v26  ;;  %v4975_v26 = vld [vmem:[%s9865_s11 + $0x460] sm:$0xff] }
 0x586   : > { %6310 = vmatmul.mubr.f32.gmra.mrb[78].mxu0 %v9211_v38  ;;  %7103 = vmatprep.subr.bf16.mxu1 %v9990_v39  ;;  %v4976_v38 = vld [vmem:[%s9865_s11 + $0x468] sm:$0xff] }
 0x587   : > { %6388 = vmatprep.mubr.f32.mxu0 %v9398_v51  ;;  %v7083_v48 = vpack.c.bf16 %v4976_v38, %v4975_v26  ;;  %v10010_v51 = vld [vmem:[#allocation24_spill] sm:$0xff]  ;;  %v10021_v38 = vld [vmem:[#allocation47_spill] sm:$0xff] }
 0x588   : > { %7074 = vmatpush3.bf16.msra.mxu0 %v7071_v2 }
 0x589   : > { %7076 = vmatprep.subr.bf16.mxu0 %v7075_v30  ;;  %7105 = vmatpush3.bf16.msra.mxu1 %v8869_v1  ;;  %v4978_v1 = vld [vmem:[%s9865_s11 + $0x478] sm:$0xff] }
 0x58a   : > { %7106 = vmatprep.subr.bf16.mxu1 %v9990_v39  ;;  %v7087_v13 = vpack.c.bf16 %v4978_v1, %v4977_v37  ;;  %v10022_v37 = vld [vmem:[#allocation46_spill] sm:$0xff] }
 0x58c   : > { %7078 = vmatpush3.bf16.msra.mxu0 %v7075_v30  ;;  %v10020_v30 = vld [vmem:[#allocation32_spill] sm:$0xff] }
 0x58d   : > { %7080 = vmatprep.subr.bf16.mxu0 %v7079_v15  ;;  %7108 = vmatpush3.bf16.msra.mxu1 %v8875_v5 }
 0x58e   : > { %7109 = vmatprep.subr.bf16.mxu1 %v9990_v39 }
 0x590   : > { %7082 = vmatpush3.bf16.msra.mxu0 %v7079_v15 }
 0x591   : > { %7084 = vmatprep.subr.bf16.mxu0 %v7083_v48  ;;  %7111 = vmatpush3.bf16.msra.mxu1 %v8880_v35 }
 0x592   : > { %7112 = vmatprep.subr.bf16.mxu1 %v9990_v39 }
 0x594   : > { %7086 = vmatpush3.bf16.msra.mxu0 %v7083_v48 }
 0x595   : > { %7088 = vmatprep.subr.bf16.mxu0 %v7087_v13  ;;  %7114 = vmatpush3.bf16.msra.mxu1 %v8890_v9 }
 0x598   : > { %7090 = vmatpush3.bf16.msra.mxu0 %v7087_v13 }
 0x59b   : > { %6389 = vmatmul.mubr.f32.vlgmr.msra.gmra.mrb[80].mxu0 %v9411_v56 }
 0x59c   : > { %6391 = vmatprep.mubr.f32.mxu0 %v9424_v55 }
 0x59f   : > { %6392 = vmatmul.mubr.f32.gmra.mrb[82].mxu0 %v9437_v23 }
 0x5a0   : > { %6394 = vmatprep.mubr.f32.mxu0 %v9449_v52 }
 0x5a3   : > { %6395 = vmatmul.mubr.f32.gmra.mrb[84].mxu0 %v9463_v0 }
 0x5a4   : > { %6397 = vmatprep.mubr.f32.mxu0 %v9326_v54 }
 0x5a7   : > { %6398 = vmatmul.mubr.f32.gmra.mrb[86].mxu0 %v9385_v45  ;;  %v10013_v45 = vld [vmem:[#allocation29_spill] sm:$0xff] }
 0x5e6   : > { %v6082_v39 = vpop.f32.mrb[36].mxu1 }
 0x5e7   : > { %v3233_v5 = vpop.f32.mrb[37].mxu1  ;;  %v3273_v22 = vmul.f32 %v6082_v39, %v8742_v19  ;;  %v10016_v19 = vld [vmem:[#allocation25_spill] sm:$0xff]  ;;  %v10023_v39 = vld [vmem:[#allocation42_spill] sm:$0xff] }
 0x5e8   : > { %v3272_v23 = vmul.f32 %v3233_v5, %v10011_v4 }
 0x5ea   : > { %v6085_v35 = vpop.f32.mrb[38].mxu1 }
 0x5eb   : > { %v3243_v61 = vpop.f32.mrb[39].mxu1  ;;  %v3275_v33 = vmul.f32 %v6085_v35, %v10013_v45  ;;  %v10024_v35 = vld [vmem:[#allocation41_spill] sm:$0xff] }
 0x5ec   : > { %v6038_v9 = vpop.f32.mrb[48].mxu0  ;;  %v3274_v58 = vmul.f32 %v3243_v61, %v10015_v24 }
 0x5ed   : > { %v3143_v56 = vmul.f32 %v6038_v9, %v10010_v51  ;;  %v3103_v55 = vpop.f32.mrb[49].mxu0 }
 0x5ee   : > { %v3142_v52 = vmul.f32 %v3103_v55, %v10012_v50 }
 0x5ef   : > { %v3281_v60 = vadd.f32 %v3273_v22, %v3143_v56  ;;  %v6088_v0 = vpop.f32.mrb[40].mxu1 }
 0x5f0   : > { %v3280_v8 = vadd.f32 %v3272_v23, %v3142_v52  ;;  %v6041_v54 = vpop.f32.mrb[50].mxu0  ;;  %v3253_v57 = vpop.f32.mrb[41].mxu1  ;;  %v3277_v3 = vmul.f32 %v6088_v0, %v10017_v28  ;;  %v10025_v0 = vld [vmem:[#allocation27_spill] sm:$0xff] }
 0x5f1   : > { %v3145_v17 = vmul.f32 %v6041_v54, %v10014_v47  ;;  %v3113_v42 = vpop.f32.mrb[51].mxu0  ;;  %v3276_v59 = vmul.f32 %v3253_v57, %v10019_v44  ;;  %v10026_v57 = vld [vmem:[#allocation31_spill] sm:$0xff] }
 0x5f2   : > { %v3144_v36 = vmul.f32 %v3113_v42, %v10016_v19  ;;  %v10027_v19 = vld [vmem:[#allocation34_spill] sm:$0xff]  ;;  %v10030_v44 = vld [vmem:[#allocation35_spill] sm:$0xff] }
 0x5f3   : > { %v3283_v43 = vadd.f32 %v3275_v33, %v3145_v17  ;;  %v6091_v41 = vpop.f32.mrb[42].mxu1 }
 0x5f4   : > { %v3282_v27 = vadd.f32 %v3274_v58, %v3144_v36  ;;  %v6044_v11 = vpop.f32.mrb[52].mxu0  ;;  %v3263_v34 = vpop.f32.mrb[43].mxu1  ;;  %v3279_v48 = vmul.f32 %v6091_v41, %v10021_v38 }
 0x5f5   : > { %v3147_v2 = vmul.f32 %v6044_v11, %v10018_v12  ;;  %v3123_v62 = vpop.f32.mrb[53].mxu0  ;;  %v3278_v5 = vmul.f32 %v3263_v34, %v10023_v39  ;;  %v10028_v34 = vld [vmem:[#allocation30_spill] sm:$0xff] }
 0x5f6   : > { %v3146_v49 = vmul.f32 %v3123_v62, %v10020_v30 }
 0x5f7   : > { %v3285_v16 = vadd.f32 %v3277_v3, %v3147_v2 }
 0x5f8   : > { %v3284_v15 = vadd.f32 %v3276_v59, %v3146_v49  ;;  %v6047_v26 = vpop.f32.mrb[54].mxu0 }
 0x5f9   : > { %v3149_v1 = vmul.f32 %v6047_v26, %v10022_v37  ;;  %v3133_v13 = vpop.f32.mrb[55].mxu0 }
 0x5fa   : > { %v3148_v61 = vmul.f32 %v3133_v13, %v10024_v35 }
 0x5fb   : > { %v3287_v9 = vadd.f32 %v3279_v48, %v3149_v1 }
 0x5fc   : > { %v3286_v22 = vadd.f32 %v3278_v5, %v3148_v61  ;;  %v10031_v61 = vld [vmem:[#allocation48_spill] sm:$0xff] }
 0x607   : > { %v6170_v51 = vpop.f32.mrb[44].mxu1 }
 0x608   : > { %v3525_v56 = vpop.f32.mrb[45].mxu1  ;;  %v3565_v45 = vmul.f32 %v6170_v51, %v10026_v57 }
 0x609   : > { %v3564_v17 = vmul.f32 %v3525_v56, %v8765_v29 }
 0x60b   : > { %v6173_v55 = vpop.f32.mrb[46].mxu1 }
 0x60c   : > { %v6126_v4 = vpop.f32.mrb[56].mxu0  ;;  %v3535_v23 = vpop.f32.mrb[47].mxu1 }
 0x60d   : > { %v3427_v50 = vmul.f32 %v6126_v4, %v8756_v46  ;;  %v3387_v52 = vpop.f32.mrb[57].mxu0  ;;  %v10029_v46 = vld [vmem:[#allocation38_spill] sm:$0xff]  ;;  %v3566_v59 = vmul.f32 %v3535_v23, %v10030_v44 }
 0x60e   : > { %v3426_v54 = vmul.f32 %v3387_v52, %v10025_v0  ;;  %v3567_v12 = vmul.f32 %v6173_v55, %v10029_v46  ;;  %v10033_v23 = vld [vmem:[#allocation50_spill] sm:$0xff] }
 0x60f   : > { %v3435_v33 = vadd.f32 %v3427_v50, %v3281_v60  ;;  %v6176_v47 = vpop.f32.mrb[48].mxu1 }
 0x610   : > { %v3434_v42 = vadd.f32 %v3426_v54, %v3280_v8  ;;  %v6129_v24 = vpop.f32.mrb[58].mxu0  ;;  %v3545_v58 = vpop.f32.mrb[49].mxu1  ;;  %v3569_v37 = vmul.f32 %v6176_v47, %v8825_v10 }
 0x611   : > { %v3429_v36 = vmul.f32 %v6129_v24, %v10027_v19  ;;  %v3397_v41 = vpop.f32.mrb[59].mxu0  ;;  %v3573_v11 = vadd.f32 %v3565_v45, %v3435_v33  ;;  %v3568_v13 = vmul.f32 %v3545_v58, %v8795_v20  ;;  %v10035_v33 = vld [vmem:[#allocation39_spill] sm:$0xff]  ;;  %v10036_v19 = vld [vmem:[#allocation49_spill] sm:$0xff] }
 0x612   : > { %v3428_v28 = vmul.f32 %v3397_v41, %v10028_v34  ;;  %v3572_v3 = vadd.f32 %v3564_v17, %v3434_v42 }
 0x613   : > { %v3437_v2 = vadd.f32 %v3429_v36, %v3283_v43  ;;  %v6179_v62 = vpop.f32.mrb[50].mxu1 }
 0x614   : > { %v3436_v60 = vadd.f32 %v3428_v28, %v3282_v27  ;;  %v6132_v30 = vpop.f32.mrb[60].mxu0  ;;  %v3555_v49 = vpop.f32.mrb[51].mxu1  ;;  %v10037_v28 = vld [vmem:[#allocation43_spill] sm:$0xff] }
 0x615   : > { %v3431_v29 = vmul.f32 %v6132_v30, %v8793_v6  ;;  %v3407_v8 = vpop.f32.mrb[61].mxu0  ;;  %v3575_v26 = vadd.f32 %v3567_v12, %v3437_v2  ;;  %v10032_v6 = vld [vmem:[#allocation55_spill] sm:$0xff] }
 0x616   : > { %v3430_v38 = vmul.f32 %v3407_v8, %v8781_v63  ;;  %v3574_v48 = vadd.f32 %v3566_v59, %v3436_v60  ;;  %v3571_v55 = vmul.f32 %v6179_v62, %v10032_v6  ;;  %v3570_v63 = vmul.f32 %v3555_v49, %v10033_v23  ;;  %v10038_v59 = vld [vmem:[#allocation56_spill] sm:$0xff] }
 0x617   : > { %v3439_v1 = vadd.f32 %v3431_v29, %v3285_v16  ;;  %v10039_v29 = vld [vmem:[#allocation51_spill] sm:$0xff] }
 0x618   : > { %v3438_v39 = vadd.f32 %v3430_v38, %v3284_v15  ;;  %v6135_v43 = vpop.f32.mrb[62].mxu0  ;;  %v10034_v15 = vld [vmem:[#allocation40_spill] sm:$0xff] }
 0x619   : > { %v3433_v5 = vmul.f32 %v6135_v43, %v8867_v31  ;;  %v3417_v35 = vpop.f32.mrb[63].mxu0  ;;  %v3577_v27 = vadd.f32 %v3569_v37, %v3439_v1 }
 0x61a   : > { %v3432_v51 = vmul.f32 %v3417_v35, %v10031_v61  ;;  %v3576_v56 = vadd.f32 %v3568_v13, %v3438_v39  ;;  %v10040_v39 = vld [vmem:[#allocation59_spill] sm:$0xff]  ;;  %v10041_v35 = vld [vmem:[#allocation57_spill] sm:$0xff] }
 0x61b   : > { %v3441_v4 = vadd.f32 %v3433_v5, %v3287_v9 }
 0x61c   : > { %v3440_v50 = vadd.f32 %v3432_v51, %v3286_v22 }
 0x61d   : > { %v3579_v52 = vadd.f32 %v3571_v55, %v3441_v4 }
 0x61e   : > { %v3578_v10 = vadd.f32 %v3570_v63, %v3440_v50  ;;  %v10042_v63 = vld [vmem:[#allocation45_spill] sm:$0xff] }
 0x629   : > { %v6258_v16 = vpop.f32.mrb[52].mxu1 }
 0x62a   : > { %v3793_v0 = vpop.f32.mrb[53].mxu1  ;;  %v3833_v54 = vmul.f32 %v6258_v16, %v10034_v15 }
 0x62b   : > { %v3832_v47 = vmul.f32 %v3793_v0, %v10035_v33  ;;  %v10043_v0 = vld [vmem:[#allocation44_spill] sm:$0xff] }
 0x62c   : > { %v6214_v20 = vpop.f32.mrb[64].mxu0 }
 0x62d   : > { %v3703_v57 = vadd.f32 %v6214_v20, %v3573_v11  ;;  %v3663_v31 = vpop.f32.mrb[65].mxu0  ;;  %v6261_v45 = vpop.f32.mrb[54].mxu1 }
 0x62e   : > { %v3702_v17 = vadd.f32 %v3663_v31, %v3572_v3  ;;  %v3803_v42 = vpop.f32.mrb[55].mxu1  ;;  %v3835_v36 = vmul.f32 %v6261_v45, %v10036_v19 }
 0x62f   : > { %v3841_v24 = vadd.f32 %v3833_v54, %v3703_v57  ;;  %v3834_v46 = vmul.f32 %v3803_v42, %v10037_v28  ;;  %v10045_v28 = vld [vmem:[#allocation60_spill] sm:$0xff] }
 0x630   : > { %v3840_v58 = vadd.f32 %v3832_v47, %v3702_v17  ;;  %v6217_v9 = vpop.f32.mrb[66].mxu0 }
 0x631   : > { %v3705_v22 = vadd.f32 %v6217_v9, %v3575_v26  ;;  %v3673_v41 = vpop.f32.mrb[67].mxu0  ;;  %v6264_v34 = vpop.f32.mrb[56].mxu1 }
 0x632   : > { %v3704_v12 = vadd.f32 %v3673_v41, %v3574_v48  ;;  %v3813_v2 = vpop.f32.mrb[57].mxu1  ;;  %v3837_v60 = vmul.f32 %v6264_v34, %v10038_v59 }
 0x633   : > { %v3843_v62 = vadd.f32 %v3835_v36, %v3705_v22  ;;  %v3836_v8 = vmul.f32 %v3813_v2, %v10039_v29  ;;  %v10047_v29 = vld [vmem:[#allocation62_spill] sm:$0xff] }
 0x634   : > { %v3842_v11 = vadd.f32 %v3834_v46, %v3704_v12  ;;  %v6220_v44 = vpop.f32.mrb[68].mxu0 }
 0x635   : > { %v3707_v30 = vadd.f32 %v6220_v44, %v3577_v27  ;;  %v3683_v3 = vpop.f32.mrb[69].mxu0  ;;  %v6267_v49 = vpop.f32.mrb[58].mxu1 }
 0x636   : > { %v3706_v38 = vadd.f32 %v3683_v3, %v3576_v56  ;;  %v3823_v37 = vpop.f32.mrb[59].mxu1  ;;  %v3839_v43 = vmul.f32 %v6267_v49, %v10040_v39  ;;  %v10046_v3 = vld [vmem:[#allocation65_spill] sm:$0xff] }
 0x637   : > { %v3845_v1 = vadd.f32 %v3837_v60, %v3707_v30  ;;  %v3838_v61 = vmul.f32 %v3823_v37, %v10041_v35  ;;  %v10048_v37 = vld [vmem:[#allocation66_spill] sm:$0xff] }
 0x638   : > { %v3844_v26 = vadd.f32 %v3836_v8, %v3706_v38  ;;  %v6223_v13 = vpop.f32.mrb[70].mxu0  ;;  %v10050_v35 = vld [vmem:[#allocation54_spill] sm:$0xff] }
 0x639   : > { %v3709_v5 = vadd.f32 %v6223_v13, %v3579_v52  ;;  %v3693_v48 = vpop.f32.mrb[71].mxu0 }
 0x63a   : > { %v3708_v51 = vadd.f32 %v3693_v48, %v3578_v10  ;;  %v10044_v10 = vld [vmem:[#allocation52_spill] sm:$0xff] }
 0x63b   : > { %v3847_v6 = vadd.f32 %v3839_v43, %v3709_v5 }
 0x63c   : > { %v3846_v55 = vadd.f32 %v3838_v61, %v3708_v51  ;;  %v10051_v61 = vld [vmem:[#allocation53_spill] sm:$0xff] }
 0x64a   : > { %v6346_v4 = vpop.f32.mrb[60].mxu1 }
 0x64b   : > { %v4069_v27 = vpop.f32.mrb[61].mxu1  ;;  %v4109_v54 = vmul.f32 %v6346_v4, %v8861_v53 }
 0x64c   : > { %v4108_v52 = vmul.f32 %v4069_v27, %v8857_v32 }
 0x64d   : > { %v6302_v23 = vpop.f32.mrb[72].mxu0 }
 0x64e   : > { %v3971_v50 = vmul.f32 %v6302_v23, %v10042_v63  ;;  %v3931_v16 = vpop.f32.mrb[73].mxu0  ;;  %v6349_v56 = vpop.f32.mrb[62].mxu1  ;;  %v10052_v63 = vld [vmem:[#allocation61_spill] sm:$0xff] }
 0x64f   : > { %v3970_v20 = vmul.f32 %v3931_v16, %v10043_v0  ;;  %v4079_v15 = vpop.f32.mrb[63].mxu1  ;;  %v4111_v22 = vmul.f32 %v6349_v56, %v8924_v7  ;;  %v10053_v56 = vld [vmem:[#allocation58_spill] sm:$0xff] }
 0x650   : > { %v3979_v57 = vadd.f32 %v3971_v50, %v3841_v24  ;;  %v4110_v34 = vmul.f32 %v4079_v15, %v8896_v40 }
 0x651   : > { %v3978_v31 = vadd.f32 %v3970_v20, %v3840_v58  ;;  %v6305_v45 = vpop.f32.mrb[74].mxu0 }
 0x652   : > { %v3973_v33 = vmul.f32 %v6305_v45, %v10044_v10  ;;  %v3941_v47 = vpop.f32.mrb[75].mxu0  ;;  %v6352_v17 = vpop.f32.mrb[64].mxu1  ;;  %v4117_v42 = vadd.f32 %v4109_v54, %v3979_v57 }
 0x653   : > { %v3972_v9 = vmul.f32 %v3941_v47, %v8847_v21  ;;  %v4089_v19 = vpop.f32.mrb[65].mxu1  ;;  %v4116_v36 = vadd.f32 %v4108_v52, %v3978_v31  ;;  %v4113_v21 = vmul.f32 %v6352_v17, %v8957_v14  ;;  %v10054_v52 = vld [vmem:[#allocation67_spill] sm:$0xff] }
 0x654   : > { %v3981_v41 = vadd.f32 %v3973_v33, %v3843_v62  ;;  %v4112_v30 = vmul.f32 %v4089_v19, %v8933_v25  ;;  %v10055_v17 = vld [vmem:[#allocation63_spill] sm:$0xff] }
 0x655   : > { %v3980_v53 = vadd.f32 %v3972_v9, %v3842_v11  ;;  %v6308_v24 = vpop.f32.mrb[76].mxu0 }
 0x656   : > { %v3975_v32 = vmul.f32 %v6308_v24, %v10045_v28  ;;  %v3951_v58 = vpop.f32.mrb[77].mxu0  ;;  %v6355_v46 = vpop.f32.mrb[66].mxu1  ;;  %v4119_v12 = vadd.f32 %v4111_v22, %v3981_v41 }
 0x657   : > { %v3974_v2 = vmul.f32 %v3951_v58, %v8930_v18  ;;  %v4099_v44 = vpop.f32.mrb[67].mxu1  ;;  %v4118_v59 = vadd.f32 %v4110_v34, %v3980_v53  ;;  %v4115_v13 = vmul.f32 %v6355_v46, %v10048_v37  ;;  %v10049_v18 = vld [vmem:[#allocation64_spill] sm:$0xff] }
 0x658   : > { %v3983_v60 = vadd.f32 %v3975_v32, %v3845_v1  ;;  %v4114_v43 = vmul.f32 %v4099_v44, %v10049_v18  ;;  %v10056_v53 = vld [vmem:[#allocation68_spill] sm:$0xff] }
 0x659   : > { %v3982_v7 = vadd.f32 %v3974_v2, %v3844_v26  ;;  %v6311_v62 = vpop.f32.mrb[78].mxu0 }
 0x65a   : > { %v3977_v40 = vmul.f32 %v6311_v62, %v10046_v3  ;;  %v3961_v11 = vpop.f32.mrb[79].mxu0  ;;  %v4121_v49 = vadd.f32 %v4113_v21, %v3983_v60 }
 0x65b   : > { %v3976_v8 = vmul.f32 %v3961_v11, %v10047_v29  ;;  %v4120_v38 = vadd.f32 %v4112_v30, %v3982_v7 }
 0x65c   : > { %v3985_v39 = vadd.f32 %v3977_v40, %v3847_v6 }
 0x65d   : > { %v3984_v5 = vadd.f32 %v3976_v8, %v3846_v55 }
 0x65e   : > { %v4123_v48 = vadd.f32 %v4115_v13, %v3985_v39 }
 0x65f   : > { %v4122_v14 = vadd.f32 %v4114_v43, %v3984_v5 }
 0x66e   : > { %v6390_v1 = vpop.f32.mrb[80].mxu0 }
 0x66f   : > { %v4247_v25 = vmul.f32 %v6390_v1, %v10050_v35  ;;  %v4207_v26 = vpop.f32.mrb[81].mxu0 }
 0x670   : > { %v4246_v51 = vmul.f32 %v4207_v26, %v10051_v61 }
 0x671   : > { %v9755_v4 = vadd.f32 %v4247_v25, %v4117_v42 }
 0x672   : > { %v9757_v27 = vadd.f32 %v4246_v51, %v4116_v36  ;;  %v6393_v23 = vpop.f32.mrb[82].mxu0 }
 0x673   : > { %v4249_v50 = vmul.f32 %v6393_v23, %v10052_v63  ;;  %v4217_v16 = vpop.f32.mrb[83].mxu0  ;;  %v4276_v6 = vmul.f32 %v9755_v4, %v9755_v4 }
 0x674   : > { %v4275_v55 = vmul.f32 %v9757_v27, %v9757_v27  ;;  %v4248_v0 = vmul.f32 %v4217_v16, %v10053_v56  ;;  %v4262_v15 = vadd.f32 %v9755_v4, %v9757_v27 }
 0x675   : > { %v9765_v20 = vadd.f32 %v4249_v50, %v4119_v12  ;;  %v10057_v12 = vld [vmem:[#allocation69_spill] sm:$0xff] }
 0x676   : > { %v9769_v54 = vadd.f32 %v4248_v0, %v4118_v59  ;;  %v6396_v57 = vpop.f32.mrb[84].mxu0  ;;  %v4283_v10 = vadd.f32 %v4276_v6, %v4275_v55  ;;  %v4979_v6 = vld [vmem:[%s9866_s12] ss:$0 sm:$0xff] }
 0x677   : > { %v4251_v31 = vmul.f32 %v6396_v57, %v10054_v52  ;;  %v4227_v45 = vpop.f32.mrb[85].mxu0  ;;  %v4278_v19 = vmul.f32 %v9765_v20, %v9765_v20  ;;  %v10058_v55 = vld [vmem:[#allocation20_spill] sm:$0xff] }
 0x678   : > { %v4263_v33 = vadd.f32 %v4262_v15, %v9769_v54  ;;  %v4277_v47 = vmul.f32 %v9769_v54, %v9769_v54  ;;  %v4250_v42 = vmul.f32 %v4227_v45, %v10055_v17 }
 0x679   : > { %v9776_v9 = vadd.f32 %v4251_v31, %v4121_v49 }
 0x67a   : > { %v4284_v36 = vadd.f32 %v4283_v10, %v4277_v47  ;;  %v4258_v22 = vadd.f32 %v4250_v42, %v4120_v38  ;;  %v4264_v41 = vadd.f32 %v4263_v33, %v9765_v20  ;;  %v6399_v34 = vpop.f32.mrb[86].mxu0  ;;  %v10059_v10 = vld [vmem:[#allocation21_spill] sm:$0xff] }
 0x67b   : > { %v4253_v24 = vmul.f32 %v6399_v34, %v10056_v53  ;;  %v4237_v28 = vpop.f32.mrb[87].mxu0  ;;  %v4280_v59 = vmul.f32 %v9776_v9, %v9776_v9 }
 0x67c   : > { %v4265_v32 = vadd.f32 %v4264_v41, %v4258_v22  ;;  %v4279_v58 = vmul.f32 %v4258_v22, %v4258_v22  ;;  %v4285_v46 = vadd.f32 %v4284_v36, %v4278_v19  ;;  %v4252_v2 = vmul.f32 %v4237_v28, %v10057_v12  ;;  %v4980_v36 = vld [vmem:[%s10060_s23] ss:$0 sm:$0xff] }
 0x67d   : > { %v4261_v44 = vadd.f32 %v4253_v24, %v4123_v48 }
 0x67e   : > { %v4286_v21 = vadd.f32 %v4285_v46, %v4279_v58  ;;  %v4260_v60 = vadd.f32 %v4252_v2, %v4122_v14  ;;  %v4266_v30 = vadd.f32 %v4265_v32, %v9776_v9 }
 0x67f   : > { %v4282_v40 = vmul.f32 %v4261_v44, %v4261_v44 }
 0x680   : > { %v4267_v7 = vadd.f32 %v4266_v30, %v4260_v60  ;;  %v4281_v62 = vmul.f32 %v4260_v60, %v4260_v60  ;;  %v4287_v3 = vadd.f32 %v4286_v21, %v4280_v59 }
 0x682   : > { %v4268_v11 = vadd.f32 %v4267_v7, %v4261_v44  ;;  %v4288_v49 = vadd.f32 %v4287_v3, %v4281_v62 }
 0x684   : > { %v4269_v29 = vrot.slane %v4268_v11, 4  ;;  %v4289_v8 = vadd.f32 %v4288_v49, %v4282_v40 }
 0x686   : > { %v4270_v38 = vadd.f32 %v4269_v29, %v4268_v11  ;;  %v4290_v37 = vrot.slane %v4289_v8, 4 }
 0x688   : > { %v4271_v13 = vrot.slane %v4270_v38, 2  ;;  %v4291_v39 = vadd.f32 %v4290_v37, %v4289_v8 }
 0x68a   : > { %v4272_v18 = vadd.f32 %v4271_v13, %v4270_v38  ;;  %v4292_v43 = vrot.slane %v4291_v39, 2 }
 0x68c   : > { %v4273_v5 = vrot.slane %v4272_v18, 1  ;;  %v4293_v48 = vadd.f32 %v4292_v43, %v4291_v39 }
 0x68e   : > { %v4294_v1 = vrot.slane %v4293_v48, 1  ;;  %v4274_v14 = vadd.f32 %v4273_v5, %v4272_v18 }
 0x690   : > { %v4295_v35 = vadd.f32 %v4294_v1, %v4293_v48 }
 0x692   : > { %v4296_v25 = vsel %vm954_vm1, %v4274_v14, %v4295_v35 }
 0x693   : > { %6433 = vmatmul.mubr.f32.vlgmr.msra.gmra.mrb[68].mxu1 %v4296_v25 }
 0x766   : > { %v4363_v26 = vpop.f32.mrb[68].mxu1 }
 0x767   : > { %v4367_v61 = vmul.f32 %v4363_v26, %v4363_v26  ;;  %v6434_v51 = vpop.f32.mrb[69].mxu1  ;;  %v4386_v56 = vrot.slane %v4363_v26, %v10058_v55 }
 0x769   : > { %v4369_v23 = vrot.slane %v4367_v61, 7  ;;  %v4387_v57 = vsub.f32 %v9757_v27, %v4386_v56  ;;  %v4388_v52 = vsub.f32 %v9755_v4, %v4386_v56  ;;  %v4389_v31 = vsub.f32 %v9769_v54, %v4386_v56 }
 0x76a   : > { %v4390_v45 = vsub.f32 %v9765_v20, %v4386_v56  ;;  %v4391_v47 = vsub.f32 %v4258_v22, %v4386_v56  ;;  %v4392_v17 = vsub.f32 %v9776_v9, %v4386_v56  ;;  %v4393_v42 = vsub.f32 %v4260_v60, %v4386_v56 }
 0x76b   : > { %v4371_v63 = vsub.f32 %v4363_v26, %v4369_v23  ;;  %v4394_v19 = vsub.f32 %v4261_v44, %v4386_v56 }
 0x76d   : > { %v4372_v50 = vmax.f32 %v4371_v63, 0.0 }
 0x76f   : > { %v4373_v16 = vadd.f32 1e-05, %v4372_v50 }
 0x771   : > { %7232 = vrsqrt.f32 %v4373_v16 }
 0x77b   : > { %v7233_v0 = vpop.eup %7232 }
 0x77c   : > { %v4382_v15 = vmul.f32 %v7233_v0, %v4979_v6 }
 0x77e   : > { %v4398_v33 = vrot.slane %v4382_v15, %v10059_v10 }
 0x780   : > { %v4399_v41 = vmul.f32 %v4398_v33, %v4387_v57  ;;  %v4400_v34 = vmul.f32 %v4398_v33, %v4388_v52  ;;  %v4401_v27 = vmul.f32 %v4398_v33, %v4389_v31  ;;  %v4402_v53 = vmul.f32 %v4398_v33, %v4390_v45 }
 0x781   : > { %v4403_v4 = vmul.f32 %v4398_v33, %v4391_v47  ;;  %v4404_v24 = vmul.f32 %v4398_v33, %v4392_v17  ;;  %v4405_v54 = vmul.f32 %v4398_v33, %v4393_v42  ;;  %v4406_v28 = vmul.f32 %v4398_v33, %v4394_v19 }
 0x782   : > { %v4414_v20 = vadd.f32 %v4980_v36, %v4399_v41  ;;  %v4415_v32 = vadd.f32 %v4980_v36, %v4400_v34  ;;  %v4416_v58 = vadd.f32 %v4980_v36, %v4401_v27  ;;  %v4417_v22 = vadd.f32 %v4980_v36, %v4402_v53 }
 0x783   : > { %v4418_v46 = vadd.f32 %v4980_v36, %v4403_v4  ;;  %v4419_v9 = vadd.f32 %v4980_v36, %v4404_v24  ;;  %v4420_v12 = vadd.f32 %v4980_v36, %v4405_v54  ;;  %v4421_v21 = vadd.f32 %v4980_v36, %v4406_v28 }
 0x784   : > { %v4422_v2 = vmul.f32 0.5, %v4414_v20  ;;  %v4423_v44 = vmul.f32 0.5, %v4415_v32  ;;  %v4424_v59 = vmul.f32 0.5, %v4416_v58  ;;  %v4425_v60 = vmul.f32 0.5, %v4417_v22 }
 0x785   : > { %v4426_v30 = vmul.f32 0.5, %v4418_v46  ;;  %v4427_v7 = vmul.f32 0.5, %v4419_v9  ;;  %v4428_v62 = vmul.f32 0.5, %v4420_v12  ;;  %v4429_v3 = vmul.f32 0.5, %v4421_v21 }
 0x786   : > { %7234 = vtanh.f32 %v4422_v2 }
 0x787   : > { %7236 = vtanh.f32 %v4423_v44 }
 0x788   : > { %7238 = vtanh.f32 %v4424_v59 }
 0x789   : > { %7240 = vtanh.f32 %v4425_v60 }
 0x78a   : > { %7242 = vtanh.f32 %v4426_v30 }
 0x78b   : > { %7244 = vtanh.f32 %v4427_v7 }
 0x78c   : > { %7246 = vtanh.f32 %v4428_v62 }
 0x78d   : > { %7248 = vtanh.f32 %v4429_v3 }
 0x790   : > { %v7235_v40 = vpop.eup %7234 }
 0x791   : > { %v7237_v11 = vpop.eup %7236  ;;  %v4438_v49 = vmul.f32 0.5, %v7235_v40 }
 0x792   : > { %v7239_v29 = vpop.eup %7238  ;;  %v4439_v8 = vmul.f32 0.5, %v7237_v11 }
 0x793   : > { %v7241_v38 = vpop.eup %7240  ;;  %v4440_v37 = vmul.f32 0.5, %v7239_v29  ;;  %v4446_v13 = vadd.f32 0.5, %v4438_v49 }
 0x794   : > { %v7243_v39 = vpop.eup %7242  ;;  %v4441_v18 = vmul.f32 0.5, %v7241_v38  ;;  %v4447_v43 = vadd.f32 0.5, %v4439_v8 }
 0x795   : > { %v7245_v5 = vpop.eup %7244  ;;  %v4442_v48 = vmul.f32 0.5, %v7243_v39  ;;  %v4448_v1 = vadd.f32 0.5, %v4440_v37  ;;  %v4454_v14 = vmul.f32 %v4446_v13, %v4414_v20 }
 0x796   : > { %v7247_v35 = vpop.eup %7246  ;;  %v4443_v25 = vmul.f32 0.5, %v7245_v5  ;;  %v4449_v26 = vadd.f32 0.5, %v4441_v18  ;;  %v4455_v61 = vmul.f32 %v4447_v43, %v4415_v32 }
 0x797   : > { %v7249_v51 = vpop.eup %7248  ;;  %v4444_v23 = vmul.f32 0.5, %v7247_v35  ;;  %v4450_v63 = vadd.f32 0.5, %v4442_v48  ;;  %v4456_v50 = vmul.f32 %v4448_v1, %v4416_v58  ;;  %4462 = vst [vmem:[%s507_s21] sm:$0xff] %v4454_v14 }
 0x798   : > { %v4445_v16 = vmul.f32 0.5, %v7249_v51  ;;  %v4451_v6 = vadd.f32 0.5, %v4443_v25  ;;  %v4457_v55 = vmul.f32 %v4449_v26, %v4417_v22  ;;  %4463 = vst [vmem:[%s507_s21 + $0x8] sm:$0xff] %v4455_v61 }
 0x799   : > { %v4452_v56 = vadd.f32 0.5, %v4444_v23  ;;  %v4458_v0 = vmul.f32 %v4450_v63, %v4418_v46  ;;  %4464 = vst [vmem:[%s507_s21 + $0x10] sm:$0xff] %v4456_v50 }
 0x79a   : > { %v4453_v15 = vadd.f32 0.5, %v4445_v16  ;;  %v4459_v57 = vmul.f32 %v4451_v6, %v4419_v9  ;;  %4465 = vst [vmem:[%s507_s21 + $0x18] sm:$0xff] %v4457_v55 }
 0x79b   : > { %v4460_v52 = vmul.f32 %v4452_v56, %v4420_v12  ;;  %4466 = vst [vmem:[%s507_s21 + $0x20] sm:$0xff] %v4458_v0 }
 0x79c   : > { %v4461_v31 = vmul.f32 %v4453_v15, %v4421_v21  ;;  %4467 = vst [vmem:[%s507_s21 + $0x28] sm:$0xff] %v4459_v57 }
 0x79d   : > { %4468 = vst [vmem:[%s507_s21 + $0x30] sm:$0xff] %v4460_v52 }
 0x79e   : > { %4469 = vst [vmem:[%s507_s21 + $0x38] sm:$0xff] %v4461_v31 }
 0x79f   : > { %7347 = shalt.err (!%p7344_p9)
}
 0x7a0   : > { %s7348_s30 = scalar_lea.hbm %s9807_s25, 1024  ;;  %s7352_s26 = scalar_lea.hbm %s10063_s22, 2048 }
 0x7a1   : > { %p7349_p2 = scmp.ne.s32.totalorder %s9807_s25, %s7348_s30  ;;  %p7353_p5 = scmp.lt.u32.totalorder %s9807_s25, %s10063_s22 }
 0x7a2   : > { %p7354_p10 = scmp.lt.u32.totalorder %s7352_s26, %s7348_s30  ;;  %p7356_p12 = scmp.lt.u32.totalorder %s7348_s30, %s9807_s25 }
 0x7a3   : > { %p7350_p0 = pnand %p7349_p2, %p10064_p7 }
 0x7a4   : > { %p7355_p4 = por %p7354_p10, %p7353_p5 }
 0x7a5   : > { %p7351_p3 = pneg %p7350_p0 }
 0x7a6   : > { %p7357_p8 = por %p7356_p12, %p7355_p4 }
 0x7a8   : > { %p7358_p11 = pnand %p7357_p8, %p7351_p3 }
 0x7aa   : > { %7361 = shalt.err (!%p7358_p11)
}
 0x7ab   : > { %s7416_s29 = smov 128   ;;  %s7417_s13 = smov 8  }
 0x7ac   : > { %7128 = dma.vmem_to_hbm [thread:$0]  (%p10064_p7), %s9809_s27, 1024, %s9807_s25, %s9813_s17, %s7416_s29, %s7416_s29, %s7417_s13  }
 0x7ad PF: > { %s10065_s16 = sld [smem:[#allocation15_spill]]  ;;  %s10066_s28 = sld [smem:[#allocation12_spill]] }
 0x7ae   : > { %s10067_s19 = sld [smem:[#allocation19_spill]] }
 0x7b3   : > { %p7150_p13 = scmp.ge.s32.totalorder %s10065_s16, 2  ;;  %s4499_s14 = sand.u32 1, %s10066_s28  }
 0x7b4   : > { %p10068_p1 = scmp.ne.s32.totalorder %s10067_s19, 0  ;;  %s4500_s15 = scalar_lea.sflag [#allocation4], %s4499_s14 }
 0x7b6   : > { %p7141_p6 = pnand %p7150_p13, %p10068_p1 }
 0x7b8   : > { %7387 = dma.done.wait (!%p7141_p6), %s4500_s15, 1024  }
 0x7b9   : > { %7389 = vsyncadd (!%p7141_p6), %s4500_s15, 4294966272  ;;  %s10069_s16 = sld [smem:[#allocation16_spill]]  ;;  %s10070_s29 = sld [smem:[#allocation13_spill]] }
 0x7ba   : > { %s10071_s30 = sld [smem:[#allocation14_spill]]  ;;  %s10072_s15 = sld [smem:[#allocation17_spill]] }
 0x7bf   : > { %p26_p9 = scmp.ge.s32.totalorder %s10069_s16, 4  }
 0x7c1   :  { %28 = sbr.rel (!%p26_p9) target bundleno = 8 (0x8), region = 160 }
 0x7c8   :  { %4505 = vsyncpa [#allocation3], 1 }
 0x7c9   :  { %4507 = vsyncpa [#allocation3 + $0x1], 1 }
 0x7ca   :  { %4508 = vsyncpa [#allocation6], 1 }
 0x7cb   :  { %4509 = vsyncpa [#allocation4], 1 }
 0x7cc   :  { %4511 = vsyncpa [#allocation4 + $0x1], 1 }

</bundles_post_ra>
